<compile_context>
chip_gen: v7x
topology: tpu7x:2x2x1
jax: 0.10.0
libtpu: 0.0.40
codegen_flags: <defaults>
</compile_context>

<pallas_src>
import functools

import jax
import jax.numpy as jnp
from jax import lax
from jax.experimental import pallas as pl
from jax.experimental.pallas import tpu as pltpu

LANE = 128


def _round_up(x, m):
    return ((x + m - 1) // m) * m


# ----------------------------------------------------------------------------
# Kernel 1: 3x3 / stride-2 max pool (values + PyTorch flat H*W argmax indices)
# ----------------------------------------------------------------------------
def _maxpool_kernel(p00, p01, p10, p11, base_ref, main_ref, idx_ref, *, wq):
    """9-tap max/argmax on the flattened over-grid (row width = Wo + 2).

    p{dh}{dw} : (1, (Ho+2)*wq, C)  stride-2 phase split of the padded image
    base_ref  : (9, Ho*wq, 1)      clamped flat h*W+w index of every tap (int32)
    main_ref  : (1, Ho*wq, C)      pooled values   (cols >= Wo are don't-care)
    idx_ref   : (1, Ho*wq, C)      argmax indices  (cols >= Wo are don't-care)
    """
    phases = ((p00, p01), (p10, p11))
    m_over = main_ref.shape[1]
    best = None
    best_idx = None
    for kh in range(3):
        a_kh, dh = divmod(kh, 2)
        for kw in range(3):
            a_kw, dw = divmod(kw, 2)
            k = kh * 3 + kw
            off = a_kh * wq + a_kw
            tap = phases[dh][dw][0, off:off + m_over, :]
            tidx = jnp.broadcast_to(base_ref[k], tap.shape)
            if best is None:
                best, best_idx = tap, tidx
            else:
                upd = tap > best                      # strict '>' = first-max tie-break
                best = jnp.where(upd, tap, best)
                best_idx = jnp.where(upd, tidx, best_idx)
    main_ref[0] = best
    idx_ref[0] = best_idx


def _maxpool_3x3_s2(x_nhwc, padding):
    """MaxPool2d(3, stride=2, padding, return_indices=True) on NHWC.

    Returns pooled values / indices on the (Ho, Wo+2) over-grid (the trailing
    two columns per row are garbage and are sliced away by the caller)."""
    N, H, W, C = x_nhwc.shape
    Ho = (H + 2 * padding - 3) // 2 + 1
    Wo = (W + 2 * padding - 3) // 2 + 1
    wq = Wo + 2                        # over-grid width == fused-conv over-grid width
    m_over = Ho * wq
    rows_in = (Ho + 2) * wq

    # Pad so the 2x2 phase split covers every tap the over-grid can read.
    xp = jnp.pad(
        x_nhwc,
        ((0, 0),
         (padding, 2 * (Ho + 2) - H - padding),
         (padding, 2 * wq - W - padding),
         (0, 0)),
        constant_values=-jnp.inf)
    # 1x data reorg instead of materializing the 9 window taps in HBM.
    phases = [xp[:, dh::2, dw::2, :].reshape(N, rows_in, C)
              for dh in range(2) for dw in range(2)]

    # Clamped PyTorch flat (h*W + w) index of each tap on the over-grid.
    oh = jnp.arange(Ho, dtype=jnp.int32)[:, None]
    ow = jnp.arange(wq, dtype=jnp.int32)[None, :]
    bases = []
    for kh in range(3):
        for kw in range(3):
            h_in = jnp.clip(2 * oh - padding + kh, 0, H - 1)
            w_in = jnp.clip(2 * ow - padding + kw, 0, W - 1)
            bases.append((h_in * W + w_in).reshape(m_over, 1))
    base = jnp.stack(bases, axis=0).astype(jnp.int32)          # (9, m_over, 1)

    kernel = functools.partial(_maxpool_kernel, wq=wq)
    main, idx = pl.pallas_call(
        kernel,
        out_shape=(jax.ShapeDtypeStruct((N, m_over, C), x_nhwc.dtype),
                   jax.ShapeDtypeStruct((N, m_over, C), jnp.int32)),
        grid=(N,),
        in_specs=[pl.BlockSpec((1, rows_in, C), lambda n: (n, 0, 0))] * 4
                 + [pl.BlockSpec((9, m_over, 1), lambda n: (0, 0, 0))],
        out_specs=(pl.BlockSpec((1, m_over, C), lambda n: (n, 0, 0)),
                   pl.BlockSpec((1, m_over, C), lambda n: (n, 0, 0))),
        compiler_params=pltpu.CompilerParams(
            dimension_semantics=("parallel",),
            vmem_limit_bytes=32 * 1024 * 1024),
    )(*phases, base)
    return main, idx, Ho, Wo


# ----------------------------------------------------------------------------
# Kernel 2: ext_conv1 as a lane-dense GEMM (+ folded BN + ReLU)
# ----------------------------------------------------------------------------
def _gemm_bias_relu_kernel(x_ref, w_ref, b_ref, o_ref):
    acc = jnp.dot(x_ref[...], w_ref[...], preferred_element_type=jnp.float32)
    o_ref[...] = jnp.maximum(acc + b_ref[...], 0.0).astype(o_ref.dtype)


def _gemm_bias_relu(x2d, w, bias, out_dtype, tm=512):
    M, K = x2d.shape
    _, Nout = w.shape
    # >=2 grid steps keeps both v7x TensorCores busy; large tm amortizes overhead.
    tm = max(8, min(tm, _round_up(pl.cdiv(M, 2), 8)))
    Mp = _round_up(M, tm)
    if Mp != M:
        x2d = jnp.pad(x2d, ((0, Mp - M), (0, 0)))
    flops = 2 * Mp * K * Nout
    bytes_accessed = int(Mp * K * x2d.dtype.itemsize + K * Nout * w.dtype.itemsize
                         + Nout * 4 + Mp * Nout * jnp.dtype(out_dtype).itemsize)
    out = pl.pallas_call(
        _gemm_bias_relu_kernel,
        out_shape=jax.ShapeDtypeStruct((Mp, Nout), out_dtype),
        grid=(Mp // tm,),
        in_specs=[pl.BlockSpec((tm, K), lambda i: (i, 0)),
                  pl.BlockSpec((K, Nout), lambda i: (0, 0)),
                  pl.BlockSpec((1, Nout), lambda i: (0, 0))],
        out_specs=pl.BlockSpec((tm, Nout), lambda i: (i, 0)),
        compiler_params=pltpu.CompilerParams(
            dimension_semantics=("parallel",),
            vmem_limit_bytes=32 * 1024 * 1024),
        cost_estimate=pl.CostEstimate(flops=flops, transcendentals=0,
                                      bytes_accessed=bytes_accessed),
    )(x2d, w, bias)
    return out[:M]


# ----------------------------------------------------------------------------
# Kernel 3: fused ext_conv2(3x3)+BN2+ReLU + ext_conv3(1x1)+BN3+ReLU
#           + channel-padded residual add + final ReLU
# ----------------------------------------------------------------------------
def _fused_ext_kernel(e1p_ref, w2_ref, b2_ref, w3_ref, b3_ref, main_ref, o_ref,
                      *, wq):
    """conv2 = 9 shifted matmuls on the flattened padded image (no im2col)."""
    m_over = o_ref.shape[1]
    acc = None
    for kh in range(3):
        for kw in range(3):
            off = kh * wq + kw
            tap = e1p_ref[0, off:off + m_over, :]                 # (m_over, Cpad) bf16
            part = jnp.dot(tap, w2_ref[kh * 3 + kw],
                           preferred_element_type=jnp.float32)
            acc = part if acc is None else acc + part
    e2 = jnp.maximum(acc + b2_ref[...], 0.0)                      # BN2 (folded) + ReLU
    e3 = jnp.dot(e2.astype(jnp.bfloat16), w3_ref[...],
                 preferred_element_type=jnp.float32)              # 1x1 conv3
    e3 = jnp.maximum(e3 + b3_ref[...], 0.0)                       # BN3 (folded) + ReLU
    o_ref[0] = jnp.maximum(e3 + main_ref[0], 0.0)                 # residual + out ReLU


def _fused_ext_branch(e1p_flat, w2, b2, w3, b3, main_over, wq):
    N, r_in, cpad = e1p_flat.shape
    m_over = main_over.shape[1]
    kernel = functools.partial(_fused_ext_kernel, wq=wq)
    flops = 2 * N * m_over * cpad * cpad * 10
    bytes_accessed = int(e1p_flat.size * 2 + w2.size * 2 + w3.size * 2
                         + (b2.size + b3.size) * 4
                         + main_over.size * 4 + N * m_over * cpad * 4)
    return pl.pallas_call(
        kernel,
        out_shape=jax.ShapeDtypeStruct((N, m_over, cpad), jnp.float32),
        grid=(N,),
        in_specs=[pl.BlockSpec((1, r_in, cpad), lambda n: (n, 0, 0)),
                  pl.BlockSpec(w2.shape, lambda n: (0, 0, 0)),
                  pl.BlockSpec(b2.shape, lambda n: (0, 0)),
                  pl.BlockSpec(w3.shape, lambda n: (0, 0)),
                  pl.BlockSpec(b3.shape, lambda n: (0, 0)),
                  pl.BlockSpec((1, m_over, cpad), lambda n: (n, 0, 0))],
        out_specs=pl.BlockSpec((1, m_over, cpad), lambda n: (n, 0, 0)),
        compiler_params=pltpu.CompilerParams(
            dimension_semantics=("parallel",),
            vmem_limit_bytes=32 * 1024 * 1024),
        cost_estimate=pl.CostEstimate(flops=flops, transcendentals=0,
                                      bytes_accessed=bytes_accessed),
    )(e1p_flat, w2, b2, w3, b3, main_over)


# ----------------------------------------------------------------------------
# Module forward
# ----------------------------------------------------------------------------
def downsampling_bottleneck(x_nchw, params, *, out_channels, padding=1):
    N, Cin, H, W = x_nchw.shape
    assert H % 2 == 0 and W % 2 == 0 and padding == 1
    cpad = params["w1"].shape[1]

    # TODO(synk): the surrounding network keeps NCHW (PyTorch layout); staying
    #             NHWC end-to-end would remove these two boundary transposes.
    x = jnp.transpose(x_nchw, (0, 2, 3, 1)).astype(jnp.float32)      # NHWC

    # ---- main branch: fused maxpool (values + indices) ----
    main_over, idx_over, Ho, Wo = _maxpool_3x3_s2(x, padding)
    wq = Wo + 2

    # ---- ext branch ----
    # ext_conv1: 2x2/s2 conv via space-to-depth + lane-dense GEMM, bf16 MXU input.
    H1, W1 = H // 2, W // 2
    x_s2d = x.reshape(N, H1, 2, W1, 2, Cin).transpose(0, 1, 3, 2, 4, 5)
    x_s2d = x_s2d.reshape(N * H1 * W1, 4 * Cin).astype(jnp.bfloat16)
    e1 = _gemm_bias_relu(x_s2d, params["w1"], params["b1"], jnp.bfloat16)
    e1 = e1.reshape(N, H1, W1, cpad)

    # Single spatial pad of e1; conv2's 9 taps are taken in-kernel.
    e1p = jnp.pad(e1, ((0, 0), (1, 2), (1, 1), (0, 0)))
    e1p_flat = e1p.reshape(N, (H1 + 3) * (W1 + 2), cpad)

    # Channel-pad the pooled main branch; the residual add happens in-kernel.
    main_p = jnp.pad(main_over, ((0, 0), (0, 0), (0, cpad - Cin)))

    out_over = _fused_ext_branch(e1p_flat, params["w2"], params["b2"],
                                 params["w3"], params["b3"], main_p, wq)

    out = out_over.reshape(N, Ho, wq, cpad)[:, :, :Wo, :out_channels]
    out = jnp.transpose(out, (0, 3, 1, 2))                           # NCHW
    idx = idx_over.reshape(N, Ho, wq, Cin)[:, :, :Wo, :]
    idx = jnp.transpose(idx, (0, 3, 1, 2))                           # NCHW int32
    return out, idx


# ----------------------------------------------------------------------------
# Parameters (PyTorch layout) + packing (BN folded, lane-padded, bf16 weights)
# ----------------------------------------------------------------------------
def init_params(key, in_channels, out_channels, internal_ratio=4):
    internal = max(1, in_channels // internal_ratio)
    ks = jax.random.split(key, 15)

    def conv_w(k, shape):
        fan_in = shape[1] * shape[2] * shape[3]
        return jax.random.normal(k, shape, jnp.float32) / jnp.sqrt(float(fan_in))

    def bn(kg, kb, km, kv, c):
        return dict(gamma=1.0 + 0.1 * jax.random.normal(kg, (c,), jnp.float32),
                    beta=0.1 * jax.random.normal(kb, (c,), jnp.float32),
                    mean=0.1 * jax.random.normal(km, (c,), jnp.float32),
                    var=jnp.abs(jax.random.normal(kv, (c,), jnp.float32)) + 0.5)

    return dict(w1=conv_w(ks[0], (internal, in_channels, 2, 2)),
                w2=conv_w(ks[1], (internal, internal, 3, 3)),
                w3=conv_w(ks[2], (out_channels, internal, 1, 1)),
                bn1=bn(ks[3], ks[4], ks[5], ks[6], internal),
                bn2=bn(ks[7], ks[8], ks[9], ks[10], internal),
                bn3=bn(ks[11], ks[12], ks[13], ks[14], out_channels))


def _bn_fold(bn, eps=1e-5):
    scale = bn["gamma"] / jnp.sqrt(bn["var"] + eps)
    return scale, bn["beta"] - bn["mean"] * scale


def pack_params(raw, cpad):
    cint, cin = raw["w1"].shape[0], raw["w1"].shape[1]
    cout = raw["w3"].shape[0]
    s1, b1 = _bn_fold(raw["bn1"])
    s2, b2 = _bn_fold(raw["bn2"])
    s3, b3 = _bn_fold(raw["bn3"])

    def pad_last(a, n):
        return jnp.pad(a, [(0, 0)] * (a.ndim - 1) + [(0, n - a.shape[-1])])

    w1 = raw["w1"].transpose(2, 3, 1, 0).reshape(4 * cin, cint) * s1[None, :]
    w2 = raw["w2"].transpose(2, 3, 1, 0).reshape(9, cint, cint) * s2[None, None, :]
    w3 = raw["w3"][:, :, 0, 0].T * s3[None, :]

    w2p = jnp.zeros((9, cpad, cpad), jnp.float32).at[:, :cint, :cint].set(w2)
    w3p = jnp.zeros((cpad, cpad), jnp.float32).at[:cint, :cout].set(w3)
    return dict(w1=pad_last(w1, cpad).astype(jnp.bfloat16),
                b1=pad_last(b1[None, :], cpad),
                w2=w2p.astype(jnp.bfloat16),
                b2=pad_last(b2[None, :], cpad),
                w3=w3p.astype(jnp.bfloat16),
                b3=pad_last(b3[None, :], cpad))


# ----------------------------------------------------------------------------
# Pure-JAX f32 reference (for numeric validation)
# ----------------------------------------------------------------------------
def _reference_forward(x_nchw, raw, *, out_channels, padding=1):
    N, Cin, H, W = x_nchw.shape
    Ho = (H + 2 * padding - 3) // 2 + 1
    Wo = (W + 2 * padding - 3) // 2 + 1
    xp = jnp.pad(x_nchw, ((0, 0), (0, 0), (padding, padding), (padding, padding)),
                 constant_values=-jnp.inf)
    best = bidx = None
    for kh in range(3):
        for kw in range(3):
            tap = xp[:, :, kh:kh + 2 * Ho:2, kw:kw + 2 * Wo:2]
            h_in = 2 * jnp.arange(Ho, dtype=jnp.int32)[:, None] - padding + kh
            w_in = 2 * jnp.arange(Wo, dtype=jnp.int32)[None, :] - padding + kw
            base = jnp.clip(h_in, 0, H - 1) * W + jnp.clip(w_in, 0, W - 1)
            base = jnp.broadcast_to(base, tap.shape)
            if best is None:
                best, bidx = tap, base
            else:
                upd = tap > best
                best = jnp.where(upd, tap, best)
                bidx = jnp.where(upd, base, bidx)
    main, idx = best, bidx

    def conv(x, w, stride, pad):
        return lax.conv_general_dilated(x, w, (stride, stride),
                                        [(pad, pad), (pad, pad)],
                                        dimension_numbers=("NCHW", "OIHW", "NCHW"))

    def bn_relu(x, bn):
        s = bn["gamma"] / jnp.sqrt(bn["var"] + 1e-5)
        b = bn["beta"] - bn["mean"] * s
        return jnp.maximum(x * s[None, :, None, None] + b[None, :, None, None], 0.0)

    e = bn_relu(conv(x_nchw, raw["w1"], 2, 0), raw["bn1"])
    e = bn_relu(conv(e, raw["w2"], 1, padding), raw["bn2"])
    e = bn_relu(conv(e, raw["w3"], 1, 0), raw["bn3"])
    main_pad = jnp.pad(main, ((0, 0), (0, out_channels - Cin), (0, 0), (0, 0)))
    return jnp.maximum(main_pad + e, 0.0), idx


if __name__ == "__main__":
    key = jax.random.PRNGKey(0)
    kx, kp = jax.random.split(key)

    N, Cin, H, W = 2, 8, 16, 16
    Cout = 16
    x = jax.random.normal(kx, (N, Cin, H, W), jnp.float32)
    raw = init_params(kp, Cin, Cout, internal_ratio=4)
    cpad = _round_up(max(Cin, Cout, 1), LANE)
    params = pack_params(raw, cpad)

    fwd = jax.jit(functools.partial(downsampling_bottleneck,
                                    out_channels=Cout, padding=1))
    out, idx = fwd(x, params)
    out, idx = jax.block_until_ready((out, idx))

    assert out.shape == (N, Cout, H // 2, W // 2), out.shape
    assert idx.shape == (N, Cin, H // 2, W // 2), idx.shape
    assert bool(jnp.all(jnp.isfinite(out)))
    assert bool(jnp.all(out >= 0.0))                       # final ReLU
    assert bool(jnp.all((idx >= 0) & (idx < H * W)))       # valid flat H*W indices

    out_ref, idx_ref = _reference_forward(x, raw, out_channels=Cout, padding=1)
    assert bool(jnp.array_equal(idx, idx_ref)), "maxpool indices mismatch"
    err = jnp.abs(out - out_ref)
    assert float(jnp.mean(err)) < 0.05, float(jnp.mean(err))
    assert float(jnp.max(err)) < 0.5, float(jnp.max(err))  # bf16 MXU tolerance
    print("KERNEL_OK")
</pallas_src>

<mosaic_0001>
module attributes {stable_mosaic.version = 11 : i64} {
  func.func @_gemm_bias_relu_kernel(%arg0: i32, %arg1: memref<64x32xbf16, #tpu.memory_space<vmem>>, %arg2: memref<32x128xbf16, #tpu.memory_space<vmem>>, %arg3: memref<1x128xf32, #tpu.memory_space<vmem>>, %arg4: memref<64x128xbf16, #tpu.memory_space<vmem>>) attributes {dimension_semantics = [#tpu.dimension_semantics<parallel>], iteration_bounds = array<i64: 2>, scalar_prefetch = 0 : i64, scratch_operands = 0 : i64, tpu.core_type = #tpu.core_type<tc>, window_params = [{transform_indices = @transform_0, window_bounds = array<i64: 64, 32>}, {pipeline_mode = #tpu.pipeline_mode<synchronous>, transform_indices = @transform_1, window_bounds = array<i64: 32, 128>}, {pipeline_mode = #tpu.pipeline_mode<synchronous>, transform_indices = @transform_2, window_bounds = array<i64: 1, 128>}, {transform_indices = @transform_3, window_bounds = array<i64: 64, 128>}]} {
    %c0 = arith.constant 0 : index
    %c0_0 = arith.constant 0 : index
    %0 = vector.load %arg1[%c0, %c0_0] : memref<64x32xbf16, #tpu.memory_space<vmem>>, vector<64x32xbf16>
    %c0_1 = arith.constant 0 : index
    %c0_2 = arith.constant 0 : index
    %1 = vector.load %arg2[%c0_1, %c0_2] : memref<32x128xbf16, #tpu.memory_space<vmem>>, vector<32x128xbf16>
    %cst = arith.constant dense<0.000000e+00> : vector<64x128xf32>
    %2 = tpu.matmul %0, %1, %cst {dimension_numbers = #tpu.dot_dimension_numbers<[1], [0], [0], [1], [0, 0, 1, 1], [], []>} : vector<64x32xbf16>, vector<32x128xbf16>, vector<64x128xf32> -> vector<64x128xf32>
    %c0_3 = arith.constant 0 : index
    %c0_4 = arith.constant 0 : index
    %3 = vector.load %arg3[%c0_3, %c0_4] : memref<1x128xf32, #tpu.memory_space<vmem>>, vector<1x128xf32>
    %4 = vector.broadcast %3 : vector<1x128xf32> to vector<64x128xf32>
    %5 = arith.addf %2, %4 : vector<64x128xf32>
    %cst_5 = arith.constant 0.000000e+00 : f32
    %6 = vector.broadcast %cst_5 : f32 to vector<64x128xf32>
    %7 = arith.maximumf %5, %6 : vector<64x128xf32>
    %8 = arith.truncf %7 : vector<64x128xf32> to vector<64x128xbf16>
    %c0_6 = arith.constant 0 : index
    %c0_7 = arith.constant 0 : index
    %9 = vector.load %arg4[%c0_6, %c0_7] : memref<64x128xbf16, #tpu.memory_space<vmem>>, vector<64x128xbf16>
    tpu.vector_store %arg4[%c0_6, %c0_7], %8 {strides = array<i32>} : memref<64x128xbf16, #tpu.memory_space<vmem>>, vector<64x128xbf16>,
    return
  }
  func.func @transform_0(%arg0: i32) -> (i32, i32) {
    %c0_i32 = arith.constant 0 : i32
    %c0_i32_0 = arith.constant 0 : i32
    return %arg0, %c0_i32 : i32, i32
  }
  func.func @transform_1(%arg0: i32) -> (i32, i32) {
    %c0_i32 = arith.constant 0 : i32
    %c0_i32_0 = arith.constant 0 : i32
    %c0_i32_1 = arith.constant 0 : i32
    return %c0_i32, %c0_i32_0 : i32, i32
  }
  func.func @transform_2(%arg0: i32) -> (i32, i32) {
    %c0_i32 = arith.constant 0 : i32
    %c0_i32_0 = arith.constant 0 : i32
    %c0_i32_1 = arith.constant 0 : i32
    return %c0_i32, %c0_i32_0 : i32, i32
  }
  func.func @transform_3(%arg0: i32) -> (i32, i32) {
    %c0_i32 = arith.constant 0 : i32
    %c0_i32_0 = arith.constant 0 : i32
    return %arg0, %c0_i32 : i32, i32
  }
}

module attributes {stable_mosaic.version = 11 : i64} {
  func.func @_fused_ext_kernel(%arg0: i32, %arg1: memref<1x110x128xbf16, #tpu.memory_space<vmem>>, %arg2: memref<9x128x128xbf16, #tpu.memory_space<vmem>>, %arg3: memref<1x128xf32, #tpu.memory_space<vmem>>, %arg4: memref<128x128xbf16, #tpu.memory_space<vmem>>, %arg5: memref<1x128xf32, #tpu.memory_space<vmem>>, %arg6: memref<1x80x128xf32, #tpu.memory_space<vmem>>, %arg7: memref<1x80x128xf32, #tpu.memory_space<vmem>>) attributes {dimension_semantics = [#tpu.dimension_semantics<parallel>], iteration_bounds = array<i64: 2>, scalar_prefetch = 0 : i64, scratch_operands = 0 : i64, tpu.core_type = #tpu.core_type<tc>, window_params = [{transform_indices = @transform_0, window_bounds = array<i64: 1, 110, 128>}, {pipeline_mode = #tpu.pipeline_mode<synchronous>, transform_indices = @transform_1, window_bounds = array<i64: 9, 128, 128>}, {pipeline_mode = #tpu.pipeline_mode<synchronous>, transform_indices = @transform_2, window_bounds = array<i64: 1, 128>}, {pipeline_mode = #tpu.pipeline_mode<synchronous>, transform_indices = @transform_3, window_bounds = array<i64: 128, 128>}, {pipeline_mode = #tpu.pipeline_mode<synchronous>, transform_indices = @transform_4, window_bounds = array<i64: 1, 128>}, {transform_indices = @transform_5, window_bounds = array<i64: 1, 80, 128>}, {transform_indices = @transform_6, window_bounds = array<i64: 1, 80, 128>}]} {
    %c0 = arith.constant 0 : index
    %c0_0 = arith.constant 0 : index
    %c0_1 = arith.constant 0 : index
    %0 = vector.load %arg1[%c0, %c0_0, %c0_1] : memref<1x110x128xbf16, #tpu.memory_space<vmem>>, vector<1x80x128xbf16>
    %1 = vector.shape_cast %0 : vector<1x80x128xbf16> to vector<80x128xbf16>
    %c0_2 = arith.constant 0 : index
    %c0_3 = arith.constant 0 : index
    %c0_4 = arith.constant 0 : index
    %2 = vector.load %arg2[%c0_2, %c0_3, %c0_4] : memref<9x128x128xbf16, #tpu.memory_space<vmem>>, vector<1x128x128xbf16>
    %3 = vector.shape_cast %2 : vector<1x128x128xbf16> to vector<128x128xbf16>
    %cst = arith.constant dense<0.000000e+00> : vector<80x128xf32>
    %4 = tpu.matmul %1, %3, %cst {dimension_numbers = #tpu.dot_dimension_numbers<[1], [0], [0], [1], [0, 0, 1, 1], [], []>} : vector<80x128xbf16>, vector<128x128xbf16>, vector<80x128xf32> -> vector<80x128xf32>
    %c0_5 = arith.constant 0 : index
    %c1 = arith.constant 1 : index
    %c0_6 = arith.constant 0 : index
    %5 = vector.load %arg1[%c0_5, %c1, %c0_6] : memref<1x110x128xbf16, #tpu.memory_space<vmem>>, vector<1x80x128xbf16>
    %6 = vector.shape_cast %5 : vector<1x80x128xbf16> to vector<80x128xbf16>
    %c1_7 = arith.constant 1 : index
    %c0_8 = arith.constant 0 : index
    %c0_9 = arith.constant 0 : index
    %7 = vector.load %arg2[%c1_7, %c0_8, %c0_9] : memref<9x128x128xbf16, #tpu.memory_space<vmem>>, vector<1x128x128xbf16>
    %8 = vector.shape_cast %7 : vector<1x128x128xbf16> to vector<128x128xbf16>
    %cst_10 = arith.constant dense<0.000000e+00> : vector<80x128xf32>
    %9 = tpu.matmul %6, %8, %cst_10 {dimension_numbers = #tpu.dot_dimension_numbers<[1], [0], [0], [1], [0, 0, 1, 1], [], []>} : vector<80x128xbf16>, vector<128x128xbf16>, vector<80x128xf32> -> vector<80x128xf32>
    %10 = arith.addf %4, %9 : vector<80x128xf32>
    %c0_11 = arith.constant 0 : index
    %c2 = arith.constant 2 : index
    %c0_12 = arith.constant 0 : index
    %11 = vector.load %arg1[%c0_11, %c2, %c0_12] : memref<1x110x128xbf16, #tpu.memory_space<vmem>>, vector<1x80x128xbf16>
    %12 = vector.shape_cast %11 : vector<1x80x128xbf16> to vector<80x128xbf16>
    %c2_13 = arith.constant 2 : index
    %c0_14 = arith.constant 0 : index
    %c0_15 = arith.constant 0 : index
    %13 = vector.load %arg2[%c2_13, %c0_14, %c0_15] : memref<9x128x128xbf16, #tpu.memory_space<vmem>>, vector<1x128x128xbf16>
    %14 = vector.shape_cast %13 : vector<1x128x128xbf16> to vector<128x128xbf16>
    %cst_16 = arith.constant dense<0.000000e+00> : vector<80x128xf32>
    %15 = tpu.matmul %12, %14, %cst_16 {dimension_numbers = #tpu.dot_dimension_numbers<[1], [0], [0], [1], [0, 0, 1, 1], [], []>} : vector<80x128xbf16>, vector<128x128xbf16>, vector<80x128xf32> -> vector<80x128xf32>
    %16 = arith.addf %10, %15 : vector<80x128xf32>
    %c0_17 = arith.constant 0 : index
    %c10 = arith.constant 10 : index
    %c0_18 = arith.constant 0 : index
    %17 = vector.load %arg1[%c0_17, %c10, %c0_18] : memref<1x110x128xbf16, #tpu.memory_space<vmem>>, vector<1x80x128xbf16>
    %18 = vector.shape_cast %17 : vector<1x80x128xbf16> to vector<80x128xbf16>
    %c3 = arith.constant 3 : index
    %c0_19 = arith.constant 0 : index
    %c0_20 = arith.constant 0 : index
    %19 = vector.load %arg2[%c3, %c0_19, %c0_20] : memref<9x128x128xbf16, #tpu.memory_space<vmem>>, vector<1x128x128xbf16>
    %20 = vector.shape_cast %19 : vector<1x128x128xbf16> to vector<128x128xbf16>
    %cst_21 = arith.constant dense<0.000000e+00> : vector<80x128xf32>
    %21 = tpu.matmul %18, %20, %cst_21 {dimension_numbers = #tpu.dot_dimension_numbers<[1], [0], [0], [1], [0, 0, 1, 1], [], []>} : vector<80x128xbf16>, vector<128x128xbf16>, vector<80x128xf32> -> vector<80x128xf32>
    %22 = arith.addf %16, %21 : vector<80x128xf32>
    %c0_22 = arith.constant 0 : index
    %c11 = arith.constant 11 : index
    %c0_23 = arith.constant 0 : index
    %23 = vector.load %arg1[%c0_22, %c11, %c0_23] : memref<1x110x128xbf16, #tpu.memory_space<vmem>>, vector<1x80x128xbf16>
    %24 = vector.shape_cast %23 : vector<1x80x128xbf16> to vector<80x128xbf16>
    %c4 = arith.constant 4 : index
    %c0_24 = arith.constant 0 : index
    %c0_25 = arith.constant 0 : index
    %25 = vector.load %arg2[%c4, %c0_24, %c0_25] : memref<9x128x128xbf16, #tpu.memory_space<vmem>>, vector<1x128x128xbf16>
    %26 = vector.shape_cast %25 : vector<1x128x128xbf16> to vector<128x128xbf16>
    %cst_26 = arith.constant dense<0.000000e+00> : vector<80x128xf32>
    %27 = tpu.matmul %24, %26, %cst_26 {dimension_numbers = #tpu.dot_dimension_numbers<[1], [0], [0], [1], [0, 0, 1, 1], [], []>} : vector<80x128xbf16>, vector<128x128xbf16>, vector<80x128xf32> -> vector<80x128xf32>
    %28 = arith.addf %22, %27 : vector<80x128xf32>
    %c0_27 = arith.constant 0 : index
    %c12 = arith.constant 12 : index
    %c0_28 = arith.constant 0 : index
    %29 = vector.load %arg1[%c0_27, %c12, %c0_28] : memref<1x110x128xbf16, #tpu.memory_space<vmem>>, vector<1x80x128xbf16>
    %30 = vector.shape_cast %29 : vector<1x80x128xbf16> to vector<80x128xbf16>
    %c5 = arith.constant 5 : index
    %c0_29 = arith.constant 0 : index
    %c0_30 = arith.constant 0 : index
    %31 = vector.load %arg2[%c5, %c0_29, %c0_30] : memref<9x128x128xbf16, #tpu.memory_space<vmem>>, vector<1x128x128xbf16>
    %32 = vector.shape_cast %31 : vector<1x128x128xbf16> to vector<128x128xbf16>
    %cst_31 = arith.constant dense<0.000000e+00> : vector<80x128xf32>
    %33 = tpu.matmul %30, %32, %cst_31 {dimension_numbers = #tpu.dot_dimension_numbers<[1], [0], [0], [1], [0, 0, 1, 1], [], []>} : vector<80x128xbf16>, vector<128x128xbf16>, vector<80x128xf32> -> vector<80x128xf32>
    %34 = arith.addf %28, %33 : vector<80x128xf32>
    %c0_32 = arith.constant 0 : index
    %c20 = arith.constant 20 : index
    %c0_33 = arith.constant 0 : index
    %35 = vector.load %arg1[%c0_32, %c20, %c0_33] : memref<1x110x128xbf16, #tpu.memory_space<vmem>>, vector<1x80x128xbf16>
    %36 = vector.shape_cast %35 : vector<1x80x128xbf16> to vector<80x128xbf16>
    %c6 = arith.constant 6 : index
    %c0_34 = arith.constant 0 : index
    %c0_35 = arith.constant 0 : index
    %37 = vector.load %arg2[%c6, %c0_34, %c0_35] : memref<9x128x128xbf16, #tpu.memory_space<vmem>>, vector<1x128x128xbf16>
    %38 = vector.shape_cast %37 : vector<1x128x128xbf16> to vector<128x128xbf16>
    %cst_36 = arith.constant dense<0.000000e+00> : vector<80x128xf32>
    %39 = tpu.matmul %36, %38, %cst_36 {dimension_numbers = #tpu.dot_dimension_numbers<[1], [0], [0], [1], [0, 0, 1, 1], [], []>} : vector<80x128xbf16>, vector<128x128xbf16>, vector<80x128xf32> -> vector<80x128xf32>
    %40 = arith.addf %34, %39 : vector<80x128xf32>
    %c0_37 = arith.constant 0 : index
    %c21 = arith.constant 21 : index
    %c0_38 = arith.constant 0 : index
    %41 = vector.load %arg1[%c0_37, %c21, %c0_38] : memref<1x110x128xbf16, #tpu.memory_space<vmem>>, vector<1x80x128xbf16>
    %42 = vector.shape_cast %41 : vector<1x80x128xbf16> to vector<80x128xbf16>
    %c7 = arith.constant 7 : index
    %c0_39 = arith.constant 0 : index
    %c0_40 = arith.constant 0 : index
    %43 = vector.load %arg2[%c7, %c0_39, %c0_40] : memref<9x128x128xbf16, #tpu.memory_space<vmem>>, vector<1x128x128xbf16>
    %44 = vector.shape_cast %43 : vector<1x128x128xbf16> to vector<128x128xbf16>
    %cst_41 = arith.constant dense<0.000000e+00> : vector<80x128xf32>
    %45 = tpu.matmul %42, %44, %cst_41 {dimension_numbers = #tpu.dot_dimension_numbers<[1], [0], [0], [1], [0, 0, 1, 1], [], []>} : vector<80x128xbf16>, vector<128x128xbf16>, vector<80x128xf32> -> vector<80x128xf32>
    %46 = arith.addf %40, %45 : vector<80x128xf32>
    %c0_42 = arith.constant 0 : index
    %c22 = arith.constant 22 : index
    %c0_43 = arith.constant 0 : index
    %47 = vector.load %arg1[%c0_42, %c22, %c0_43] : memref<1x110x128xbf16, #tpu.memory_space<vmem>>, vector<1x80x128xbf16>
    %48 = vector.shape_cast %47 : vector<1x80x128xbf16> to vector<80x128xbf16>
    %c8 = arith.constant 8 : index
    %c0_44 = arith.constant 0 : index
    %c0_45 = arith.constant 0 : index
    %49 = vector.load %arg2[%c8, %c0_44, %c0_45] : memref<9x128x128xbf16, #tpu.memory_space<vmem>>, vector<1x128x128xbf16>
    %50 = vector.shape_cast %49 : vector<1x128x128xbf16> to vector<128x128xbf16>
    %cst_46 = arith.constant dense<0.000000e+00> : vector<80x128xf32>
    %51 = tpu.matmul %48, %50, %cst_46 {dimension_numbers = #tpu.dot_dimension_numbers<[1], [0], [0], [1], [0, 0, 1, 1], [], []>} : vector<80x128xbf16>, vector<128x128xbf16>, vector<80x128xf32> -> vector<80x128xf32>
    %52 = arith.addf %46, %51 : vector<80x128xf32>
    %c0_47 = arith.constant 0 : index
    %c0_48 = arith.constant 0 : index
    %53 = vector.load %arg3[%c0_47, %c0_48] : memref<1x128xf32, #tpu.memory_space<vmem>>, vector<1x128xf32>
    %54 = vector.broadcast %53 : vector<1x128xf32> to vector<80x128xf32>
    %55 = arith.addf %52, %54 : vector<80x128xf32>
    %cst_49 = arith.constant 0.000000e+00 : f32
    %56 = vector.broadcast %cst_49 : f32 to vector<80x128xf32>
    %57 = arith.maximumf %55, %56 : vector<80x128xf32>
    %58 = arith.truncf %57 : vector<80x128xf32> to vector<80x128xbf16>
    %c0_50 = arith.constant 0 : index
    %c0_51 = arith.constant 0 : index
    %59 = vector.load %arg4[%c0_50, %c0_51] : memref<128x128xbf16, #tpu.memory_space<vmem>>, vector<128x128xbf16>
    %cst_52 = arith.constant dense<0.000000e+00> : vector<80x128xf32>
    %60 = tpu.matmul %58, %59, %cst_52 {dimension_numbers = #tpu.dot_dimension_numbers<[1], [0], [0], [1], [0, 0, 1, 1], [], []>} : vector<80x128xbf16>, vector<128x128xbf16>, vector<80x128xf32> -> vector<80x128xf32>
    %c0_53 = arith.constant 0 : index
    %c0_54 = arith.constant 0 : index
    %61 = vector.load %arg5[%c0_53, %c0_54] : memref<1x128xf32, #tpu.memory_space<vmem>>, vector<1x128xf32>
    %62 = vector.broadcast %61 : vector<1x128xf32> to vector<80x128xf32>
    %63 = arith.addf %60, %62 : vector<80x128xf32>
    %cst_55 = arith.constant 0.000000e+00 : f32
    %64 = vector.broadcast %cst_55 : f32 to vector<80x128xf32>
    %65 = arith.maximumf %63, %64 : vector<80x128xf32>
    %c0_56 = arith.constant 0 : index
    %c0_57 = arith.constant 0 : index
    %c0_58 = arith.constant 0 : index
    %66 = vector.load %arg6[%c0_56, %c0_57, %c0_58] : memref<1x80x128xf32, #tpu.memory_space<vmem>>, vector<1x80x128xf32>
    %67 = vector.shape_cast %66 : vector<1x80x128xf32> to vector<80x128xf32>
    %68 = arith.addf %65, %67 : vector<80x128xf32>
    %cst_59 = arith.constant 0.000000e+00 : f32
    %69 = vector.broadcast %cst_59 : f32 to vector<80x128xf32>
    %70 = arith.maximumf %68, %69 : vector<80x128xf32>
    %c0_60 = arith.constant 0 : index
    %c0_61 = arith.constant 0 : index
    %c0_62 = arith.constant 0 : index
    %71 = vector.load %arg7[%c0_60, %c0_61, %c0_62] : memref<1x80x128xf32, #tpu.memory_space<vmem>>, vector<1x80x128xf32>
    %72 = vector.shape_cast %71 : vector<1x80x128xf32> to vector<80x128xf32>
    %73 = vector.shape_cast %70 : vector<80x128xf32> to vector<1x80x128xf32>
    tpu.vector_store %arg7[%c0_60, %c0_61, %c0_62], %73 {strides = array<i32>} : memref<1x80x128xf32, #tpu.memory_space<vmem>>, vector<1x80x128xf32>,
    return
  }
  func.func @transform_0(%arg0: i32) -> (i32, i32, i32) {
    %c0_i32 = arith.constant 0 : i32
    %c0_i32_0 = arith.constant 0 : i32
    %c0_i32_1 = arith.constant 0 : i32
    return %arg0, %c0_i32, %c0_i32_0 : i32, i32, i32
  }
  func.func @transform_1(%arg0: i32) -> (i32, i32, i32) {
    %c0_i32 = arith.constant 0 : i32
    %c0_i32_0 = arith.constant 0 : i32
    %c0_i32_1 = arith.constant 0 : i32
    %c0_i32_2 = arith.constant 0 : i32
    return %c0_i32, %c0_i32_0, %c0_i32_1 : i32, i32, i32
  }
  func.func @transform_2(%arg0: i32) -> (i32, i32) {
    %c0_i32 = arith.constant 0 : i32
    %c0_i32_0 = arith.constant 0 : i32
    %c0_i32_1 = arith.constant 0 : i32
    return %c0_i32, %c0_i32_0 : i32, i32
  }
  func.func @transform_3(%arg0: i32) -> (i32, i32) {
    %c0_i32 = arith.constant 0 : i32
    %c0_i32_0 = arith.constant 0 : i32
    %c0_i32_1 = arith.constant 0 : i32
    return %c0_i32, %c0_i32_0 : i32, i32
  }
  func.func @transform_4(%arg0: i32) -> (i32, i32) {
    %c0_i32 = arith.constant 0 : i32
    %c0_i32_0 = arith.constant 0 : i32
    %c0_i32_1 = arith.constant 0 : i32
    return %c0_i32, %c0_i32_0 : i32, i32
  }
  func.func @transform_5(%arg0: i32) -> (i32, i32, i32) {
    %c0_i32 = arith.constant 0 : i32
    %c0_i32_0 = arith.constant 0 : i32
    %c0_i32_1 = arith.constant 0 : i32
    return %arg0, %c0_i32, %c0_i32_0 : i32, i32, i32
  }
  func.func @transform_6(%arg0: i32) -> (i32, i32, i32) {
    %c0_i32 = arith.constant 0 : i32
    %c0_i32_0 = arith.constant 0 : i32
    %c0_i32_1 = arith.constant 0 : i32
    return %arg0, %c0_i32, %c0_i32_0 : i32, i32, i32
  }
}

module attributes {stable_mosaic.version = 11 : i64} {
  func.func @_maxpool_kernel(%arg0: i32, %arg1: memref<1x100x8xf32, #tpu.memory_space<vmem>>, %arg2: memref<1x100x8xf32, #tpu.memory_space<vmem>>, %arg3: memref<1x100x8xf32, #tpu.memory_space<vmem>>, %arg4: memref<1x100x8xf32, #tpu.memory_space<vmem>>, %arg5: memref<9x80x1xi32, #tpu.memory_space<vmem>>, %arg6: memref<1x80x8xf32, #tpu.memory_space<vmem>>, %arg7: memref<1x80x8xi32, #tpu.memory_space<vmem>>) attributes {dimension_semantics = [#tpu.dimension_semantics<parallel>], iteration_bounds = array<i64: 2>, scalar_prefetch = 0 : i64, scratch_operands = 0 : i64, tpu.core_type = #tpu.core_type<tc>, window_params = [{transform_indices = @transform_0, window_bounds = array<i64: 1, 100, 8>}, {transform_indices = @transform_1, window_bounds = array<i64: 1, 100, 8>}, {transform_indices = @transform_2, window_bounds = array<i64: 1, 100, 8>}, {transform_indices = @transform_3, window_bounds = array<i64: 1, 100, 8>}, {pipeline_mode = #tpu.pipeline_mode<synchronous>, transform_indices = @transform_4, window_bounds = array<i64: 9, 80, 1>}, {transform_indices = @transform_5, window_bounds = array<i64: 1, 80, 8>}, {transform_indices = @transform_6, window_bounds = array<i64: 1, 80, 8>}]} {
    %c0 = arith.constant 0 : index
    %c0_0 = arith.constant 0 : index
    %c0_1 = arith.constant 0 : index
    %0 = vector.load %arg1[%c0, %c0_0, %c0_1] : memref<1x100x8xf32, #tpu.memory_space<vmem>>, vector<1x80x8xf32>
    %1 = vector.shape_cast %0 : vector<1x80x8xf32> to vector<80x8xf32>
    %c0_2 = arith.constant 0 : index
    %c0_3 = arith.constant 0 : index
    %c0_4 = arith.constant 0 : index
    %2 = vector.load %arg5[%c0_2, %c0_3, %c0_4] : memref<9x80x1xi32, #tpu.memory_space<vmem>>, vector<1x80x1xi32>
    %3 = vector.shape_cast %2 : vector<1x80x1xi32> to vector<80x1xi32>
    %4 = vector.shape_cast %3 : vector<80x1xi32> to vector<80x1xi32>
    %5 = vector.broadcast %4 : vector<80x1xi32> to vector<80x8xi32>
    %c0_5 = arith.constant 0 : index
    %c0_6 = arith.constant 0 : index
    %c0_7 = arith.constant 0 : index
    %6 = vector.load %arg2[%c0_5, %c0_6, %c0_7] : memref<1x100x8xf32, #tpu.memory_space<vmem>>, vector<1x80x8xf32>
    %7 = vector.shape_cast %6 : vector<1x80x8xf32> to vector<80x8xf32>
    %c1 = arith.constant 1 : index
    %c0_8 = arith.constant 0 : index
    %c0_9 = arith.constant 0 : index
    %8 = vector.load %arg5[%c1, %c0_8, %c0_9] : memref<9x80x1xi32, #tpu.memory_space<vmem>>, vector<1x80x1xi32>
    %9 = vector.shape_cast %8 : vector<1x80x1xi32> to vector<80x1xi32>
    %10 = vector.shape_cast %9 : vector<80x1xi32> to vector<80x1xi32>
    %11 = vector.broadcast %10 : vector<80x1xi32> to vector<80x8xi32>
    %12 = arith.cmpf ogt, %7, %1 : vector<80x8xf32>
    %13 = arith.select %12, %7, %1 : vector<80x8xi1>, vector<80x8xf32>
    %14 = arith.select %12, %11, %5 : vector<80x8xi1>, vector<80x8xi32>
    %c0_10 = arith.constant 0 : index
    %c1_11 = arith.constant 1 : index
    %c0_12 = arith.constant 0 : index
    %15 = vector.load %arg1[%c0_10, %c1_11, %c0_12] : memref<1x100x8xf32, #tpu.memory_space<vmem>>, vector<1x80x8xf32>
    %16 = vector.shape_cast %15 : vector<1x80x8xf32> to vector<80x8xf32>
    %c2 = arith.constant 2 : index
    %c0_13 = arith.constant 0 : index
    %c0_14 = arith.constant 0 : index
    %17 = vector.load %arg5[%c2, %c0_13, %c0_14] : memref<9x80x1xi32, #tpu.memory_space<vmem>>, vector<1x80x1xi32>
    %18 = vector.shape_cast %17 : vector<1x80x1xi32> to vector<80x1xi32>
    %19 = vector.shape_cast %18 : vector<80x1xi32> to vector<80x1xi32>
    %20 = vector.broadcast %19 : vector<80x1xi32> to vector<80x8xi32>
    %21 = arith.cmpf ogt, %16, %13 : vector<80x8xf32>
    %22 = arith.select %21, %16, %13 : vector<80x8xi1>, vector<80x8xf32>
    %23 = arith.select %21, %20, %14 : vector<80x8xi1>, vector<80x8xi32>
    %c0_15 = arith.constant 0 : index
    %c0_16 = arith.constant 0 : index
    %c0_17 = arith.constant 0 : index
    %24 = vector.load %arg3[%c0_15, %c0_16, %c0_17] : memref<1x100x8xf32, #tpu.memory_space<vmem>>, vector<1x80x8xf32>
    %25 = vector.shape_cast %24 : vector<1x80x8xf32> to vector<80x8xf32>
    %c3 = arith.constant 3 : index
    %c0_18 = arith.constant 0 : index
    %c0_19 = arith.constant 0 : index
    %26 = vector.load %arg5[%c3, %c0_18, %c0_19] : memref<9x80x1xi32, #tpu.memory_space<vmem>>, vector<1x80x1xi32>
    %27 = vector.shape_cast %26 : vector<1x80x1xi32> to vector<80x1xi32>
    %28 = vector.shape_cast %27 : vector<80x1xi32> to vector<80x1xi32>
    %29 = vector.broadcast %28 : vector<80x1xi32> to vector<80x8xi32>
    %30 = arith.cmpf ogt, %25, %22 : vector<80x8xf32>
    %31 = arith.select %30, %25, %22 : vector<80x8xi1>, vector<80x8xf32>
    %32 = arith.select %30, %29, %23 : vector<80x8xi1>, vector<80x8xi32>
    %c0_20 = arith.constant 0 : index
    %c0_21 = arith.constant 0 : index
    %c0_22 = arith.constant 0 : index
    %33 = vector.load %arg4[%c0_20, %c0_21, %c0_22] : memref<1x100x8xf32, #tpu.memory_space<vmem>>, vector<1x80x8xf32>
    %34 = vector.shape_cast %33 : vector<1x80x8xf32> to vector<80x8xf32>
    %c4 = arith.constant 4 : index
    %c0_23 = arith.constant 0 : index
    %c0_24 = arith.constant 0 : index
    %35 = vector.load %arg5[%c4, %c0_23, %c0_24] : memref<9x80x1xi32, #tpu.memory_space<vmem>>, vector<1x80x1xi32>
    %36 = vector.shape_cast %35 : vector<1x80x1xi32> to vector<80x1xi32>
    %37 = vector.shape_cast %36 : vector<80x1xi32> to vector<80x1xi32>
    %38 = vector.broadcast %37 : vector<80x1xi32> to vector<80x8xi32>
    %39 = arith.cmpf ogt, %34, %31 : vector<80x8xf32>
    %40 = arith.select %39, %34, %31 : vector<80x8xi1>, vector<80x8xf32>
    %41 = arith.select %39, %38, %32 : vector<80x8xi1>, vector<80x8xi32>
    %c0_25 = arith.constant 0 : index
    %c1_26 = arith.constant 1 : index
    %c0_27 = arith.constant 0 : index
    %42 = vector.load %arg3[%c0_25, %c1_26, %c0_27] : memref<1x100x8xf32, #tpu.memory_space<vmem>>, vector<1x80x8xf32>
    %43 = vector.shape_cast %42 : vector<1x80x8xf32> to vector<80x8xf32>
    %c5 = arith.constant 5 : index
    %c0_28 = arith.constant 0 : index
    %c0_29 = arith.constant 0 : index
    %44 = vector.load %arg5[%c5, %c0_28, %c0_29] : memref<9x80x1xi32, #tpu.memory_space<vmem>>, vector<1x80x1xi32>
    %45 = vector.shape_cast %44 : vector<1x80x1xi32> to vector<80x1xi32>
    %46 = vector.shape_cast %45 : vector<80x1xi32> to vector<80x1xi32>
    %47 = vector.broadcast %46 : vector<80x1xi32> to vector<80x8xi32>
    %48 = arith.cmpf ogt, %43, %40 : vector<80x8xf32>
    %49 = arith.select %48, %43, %40 : vector<80x8xi1>, vector<80x8xf32>
    %50 = arith.select %48, %47, %41 : vector<80x8xi1>, vector<80x8xi32>
    %c0_30 = arith.constant 0 : index
    %c10 = arith.constant 10 : index
    %c0_31 = arith.constant 0 : index
    %51 = vector.load %arg1[%c0_30, %c10, %c0_31] : memref<1x100x8xf32, #tpu.memory_space<vmem>>, vector<1x80x8xf32>
    %52 = vector.shape_cast %51 : vector<1x80x8xf32> to vector<80x8xf32>
    %c6 = arith.constant 6 : index
    %c0_32 = arith.constant 0 : index
    %c0_33 = arith.constant 0 : index
    %53 = vector.load %arg5[%c6, %c0_32, %c0_33] : memref<9x80x1xi32, #tpu.memory_space<vmem>>, vector<1x80x1xi32>
    %54 = vector.shape_cast %53 : vector<1x80x1xi32> to vector<80x1xi32>
    %55 = vector.shape_cast %54 : vector<80x1xi32> to vector<80x1xi32>
    %56 = vector.broadcast %55 : vector<80x1xi32> to vector<80x8xi32>
    %57 = arith.cmpf ogt, %52, %49 : vector<80x8xf32>
    %58 = arith.select %57, %52, %49 : vector<80x8xi1>, vector<80x8xf32>
    %59 = arith.select %57, %56, %50 : vector<80x8xi1>, vector<80x8xi32>
    %c0_34 = arith.constant 0 : index
    %c10_35 = arith.constant 10 : index
    %c0_36 = arith.constant 0 : index
    %60 = vector.load %arg2[%c0_34, %c10_35, %c0_36] : memref<1x100x8xf32, #tpu.memory_space<vmem>>, vector<1x80x8xf32>
    %61 = vector.shape_cast %60 : vector<1x80x8xf32> to vector<80x8xf32>
    %c7 = arith.constant 7 : index
    %c0_37 = arith.constant 0 : index
    %c0_38 = arith.constant 0 : index
    %62 = vector.load %arg5[%c7, %c0_37, %c0_38] : memref<9x80x1xi32, #tpu.memory_space<vmem>>, vector<1x80x1xi32>
    %63 = vector.shape_cast %62 : vector<1x80x1xi32> to vector<80x1xi32>
    %64 = vector.shape_cast %63 : vector<80x1xi32> to vector<80x1xi32>
    %65 = vector.broadcast %64 : vector<80x1xi32> to vector<80x8xi32>
    %66 = arith.cmpf ogt, %61, %58 : vector<80x8xf32>
    %67 = arith.select %66, %61, %58 : vector<80x8xi1>, vector<80x8xf32>
    %68 = arith.select %66, %65, %59 : vector<80x8xi1>, vector<80x8xi32>
    %c0_39 = arith.constant 0 : index
    %c11 = arith.constant 11 : index
    %c0_40 = arith.constant 0 : index
    %69 = vector.load %arg1[%c0_39, %c11, %c0_40] : memref<1x100x8xf32, #tpu.memory_space<vmem>>, vector<1x80x8xf32>
    %70 = vector.shape_cast %69 : vector<1x80x8xf32> to vector<80x8xf32>
    %c8 = arith.constant 8 : index
    %c0_41 = arith.constant 0 : index
    %c0_42 = arith.constant 0 : index
    %71 = vector.load %arg5[%c8, %c0_41, %c0_42] : memref<9x80x1xi32, #tpu.memory_space<vmem>>, vector<1x80x1xi32>
    %72 = vector.shape_cast %71 : vector<1x80x1xi32> to vector<80x1xi32>
    %73 = vector.shape_cast %72 : vector<80x1xi32> to vector<80x1xi32>
    %74 = vector.broadcast %73 : vector<80x1xi32> to vector<80x8xi32>
    %75 = arith.cmpf ogt, %70, %67 : vector<80x8xf32>
    %76 = arith.select %75, %70, %67 : vector<80x8xi1>, vector<80x8xf32>
    %77 = arith.select %75, %74, %68 : vector<80x8xi1>, vector<80x8xi32>
    %c0_43 = arith.constant 0 : index
    %c0_44 = arith.constant 0 : index
    %c0_45 = arith.constant 0 : index
    %78 = vector.load %arg6[%c0_43, %c0_44, %c0_45] : memref<1x80x8xf32, #tpu.memory_space<vmem>>, vector<1x80x8xf32>
    %79 = vector.shape_cast %78 : vector<1x80x8xf32> to vector<80x8xf32>
    %80 = vector.shape_cast %76 : vector<80x8xf32> to vector<1x80x8xf32>
    tpu.vector_store %arg6[%c0_43, %c0_44, %c0_45], %80 {strides = array<i32>} : memref<1x80x8xf32, #tpu.memory_space<vmem>>, vector<1x80x8xf32>,
    %c0_46 = arith.constant 0 : index
    %c0_47 = arith.constant 0 : index
    %c0_48 = arith.constant 0 : index
    %81 = vector.load %arg7[%c0_46, %c0_47, %c0_48] : memref<1x80x8xi32, #tpu.memory_space<vmem>>, vector<1x80x8xi32>
    %82 = vector.shape_cast %81 : vector<1x80x8xi32> to vector<80x8xi32>
    %83 = vector.shape_cast %77 : vector<80x8xi32> to vector<1x80x8xi32>
    tpu.vector_store %arg7[%c0_46, %c0_47, %c0_48], %83 {strides = array<i32>} : memref<1x80x8xi32, #tpu.memory_space<vmem>>, vector<1x80x8xi32>,
    return
  }
  func.func @transform_0(%arg0: i32) -> (i32, i32, i32) {
    %c0_i32 = arith.constant 0 : i32
    %c0_i32_0 = arith.constant 0 : i32
    %c0_i32_1 = arith.constant 0 : i32
    return %arg0, %c0_i32, %c0_i32_0 : i32, i32, i32
  }
  func.func @transform_1(%arg0: i32) -> (i32, i32, i32) {
    %c0_i32 = arith.constant 0 : i32
    %c0_i32_0 = arith.constant 0 : i32
    %c0_i32_1 = arith.constant 0 : i32
    return %arg0, %c0_i32, %c0_i32_0 : i32, i32, i32
  }
  func.func @transform_2(%arg0: i32) -> (i32, i32, i32) {
    %c0_i32 = arith.constant 0 : i32
    %c0_i32_0 = arith.constant 0 : i32
    %c0_i32_1 = arith.constant 0 : i32
    return %arg0, %c0_i32, %c0_i32_0 : i32, i32, i32
  }
  func.func @transform_3(%arg0: i32) -> (i32, i32, i32) {
    %c0_i32 = arith.constant 0 : i32
    %c0_i32_0 = arith.constant 0 : i32
    %c0_i32_1 = arith.constant 0 : i32
    return %arg0, %c0_i32, %c0_i32_0 : i32, i32, i32
  }
  func.func @transform_4(%arg0: i32) -> (i32, i32, i32) {
    %c0_i32 = arith.constant 0 : i32
    %c0_i32_0 = arith.constant 0 : i32
    %c0_i32_1 = arith.constant 0 : i32
    %c0_i32_2 = arith.constant 0 : i32
    return %c0_i32, %c0_i32_0, %c0_i32_1 : i32, i32, i32
  }
  func.func @transform_5(%arg0: i32) -> (i32, i32, i32) {
    %c0_i32 = arith.constant 0 : i32
    %c0_i32_0 = arith.constant 0 : i32
    %c0_i32_1 = arith.constant 0 : i32
    return %arg0, %c0_i32, %c0_i32_0 : i32, i32, i32
  }
  func.func @transform_6(%arg0: i32) -> (i32, i32, i32) {
    %c0_i32 = arith.constant 0 : i32
    %c0_i32_0 = arith.constant 0 : i32
    %c0_i32_1 = arith.constant 0 : i32
    return %arg0, %c0_i32, %c0_i32_0 : i32, i32, i32
  }
}

</mosaic_0001>

<bundles_post_ra>
// kernel: downsampling_bottleneck.4
= control target key start
LH: loop header
LB: loop body
LE: loop exit
PB: predicated region body
PF: predicated region fallthrough
CT: control target
= control target key end

     0   :  { %s533_s12 = smov 0   ;;  %s566_s0 = inlined_call_operand.vmem [shape: bf16[128,32], index: 0, kind: input, shape index: {}]   ;;  %s567_s1 = inlined_call_operand.vmem [shape: bf16[32,128], index: 1, kind: input, shape index: {}]   ;;  %s568_s2 = inlined_call_operand.vmem [shape: f32[1,128], index: 2, kind: input, shape index: {}]   ;;  %s569_s3 = inlined_call_operand.vmem [shape: bf16[128,128], index: 3, kind: output, shape index: {}]  }
   0x1 LB: > { %s408_s13 = sadd.s32 4294967295, %s511_s12   ;;  %p412_p0 = scmp.ge.s32.totalorder %s511_s12, 1  ;;  %s511_s12 = sphi %s533_s12, %s13_s12  }
   0x2   : > { %p138_p1 = scmp.lt.s32.totalorder %s511_s12, 3 }
   0x4   : > { %p139_p2 = pnand %p412_p0, %p138_p1 }
   0x5   : > { %v499_v0 = vld [vmem:[%s567_s1] sm:$0xff] (!%p139_p2)   ;;  %s413_s16 = sshll.u32 (!%p139_p2), %s408_s13, 3  ;;  %v500_v1 = vld [vmem:[%s567_s1 + $0x8] sm:$0xff] (!%p139_p2)   ;;  %vm226_vm0 = vcmask (!%p139_p2), 261120  }
   0x6   : > { %142 = sbr.rel (%p139_p2) target bundleno = 240 (0xf0), region = 32  ;;  %p163_p3 = scmp.lt.s32.totalorder (!%p139_p2), %s413_s16, 15  ;;  %475 = vmatprep.subr.bf16.mxu0 (!%p139_p2), %v499_v0  ;;  %487 = vmatprep.subr.bf16.mxu1 (!%p139_p2), %v499_v0  ;;  %v417_v6 = vld [vmem:[%s568_s2] ss:$0 sm:$0xff] (!%p139_p2) }
   0x7   : > { %476 = vmatpush3.bf16.msra.mxu0 (!%p139_p2), %v499_v0  ;;  %489 = vmatpush3.bf16.msra.mxu1 (!%p139_p2), %v499_v0 }
   0x8   : > { %477 = vmatprep.subr.bf16.mxu0 (!%p139_p2), %v500_v1  ;;  %488 = vmatprep.subr.bf16.mxu1 (!%p139_p2), %v500_v1 }
   0xb   : > { %478 = vmatpush3.bf16.msra.mxu0 (!%p139_p2), %v500_v1  ;;  %490 = vmatpush3.bf16.msra.mxu1 (!%p139_p2), %v500_v1 }
   0xd   : > { %s571_s16 = smov (!%p163_p3, %s413_s16), 15 }
   0xe   : > { %s414_s19 = sshll.u32 %s571_s16, 2 }
   0xf   : > { %s166_s22 = scalar_lea.vmem %s566_s0, %s414_s19  ;;  %s172_s27 = scalar_lea.vmem %s569_s3, %s414_s19 }
  0x10   : > { %v501_v2 = vld [vmem:[%s166_s22] sm:$0xff]   ;;  %v502_v3 = vld [vmem:[%s166_s22 + $0x10] sm:$0xff]   ;;  %v503_v4 = vld [vmem:[%s166_s22 + $0x8] sm:$0xff]  }
  0x11   : > { %479 = vmatprep.mubr.msk.bf16.mxu0 %vm226_vm0, %v501_v2  ;;  %483 = vmatprep.mubr.msk.bf16.mxu1 %vm226_vm0, %v502_v3  ;;  %v504_v5 = vld [vmem:[%s166_s22 + $0x18] sm:$0xff]  }
  0x12   : > { %480 = vmatmul.mubr.msk.bf16.vlgmr.msra.gmra.mrb[0].mxu0 %vm226_vm0, %v503_v4  ;;  %484 = vmatmul.mubr.msk.bf16.vlgmr.msra.gmra.mrb[0].mxu1 %vm226_vm0, %v504_v5 }
  0xe5   : > { %v481_v7 = vpop.f32.mrb[0].mxu0  ;;  %v485_v9 = vpop.f32.mrb[0].mxu1 }
  0xe6   : > { %v282_v8 = vadd.f32 %v481_v7, %v417_v6  ;;  %v273_v10 = vpop.f32.mrb[1].mxu0  ;;  %v298_v11 = vadd.f32 %v485_v9, %v417_v6  ;;  %v289_v13 = vpop.f32.mrb[1].mxu1 }
  0xe7   : > { %v274_v12 = vadd.f32 %v417_v6, %v273_v10  ;;  %v482_v14 = vpop.f32.mrb[2].mxu0  ;;  %v290_v15 = vadd.f32 %v417_v6, %v289_v13  ;;  %v486_v17 = vpop.f32.mrb[2].mxu1 }
  0xe8   : > { %v285_v16 = vadd.f32 %v482_v14, %v417_v6  ;;  %v276_v18 = vpop.f32.mrb[3].mxu0  ;;  %v301_v19 = vadd.f32 %v486_v17, %v417_v6  ;;  %v292_v21 = vpop.f32.mrb[3].mxu1  ;;  %v306_v22 = vmax.f32 %v282_v8, 0.0  ;;  %v310_v25 = vmax.f32 %v298_v11, 0.0 }
  0xe9   : > { %v277_v20 = vadd.f32 %v417_v6, %v276_v18  ;;  %v293_v24 = vadd.f32 %v417_v6, %v292_v21  ;;  %v304_v26 = vmax.f32 %v274_v12, 0.0  ;;  %v308_v29 = vmax.f32 %v290_v15, 0.0 }
  0xea   : > { %v307_v23 = vmax.f32 %v285_v16, 0.0  ;;  %v311_v27 = vmax.f32 %v301_v19, 0.0 }
  0xeb   : > { %v305_v28 = vmax.f32 %v277_v20, 0.0  ;;  %v309_v31 = vmax.f32 %v293_v24, 0.0 }
  0xec   : > { %v454_v30 = vpack.c.bf16 %v307_v23, %v306_v22  ;;  %v464_v32 = vpack.c.bf16 %v311_v27, %v310_v25 }
  0xed   : > { %v449_v33 = vpack.c.bf16 %v305_v28, %v304_v26  ;;  %v459_v34 = vpack.c.bf16 %v309_v31, %v308_v29 }
  0xee   : > { %466 = vst [vmem:[%s172_s27 + $0x8] sm:$0xff] %v454_v30   ;;  %468 = vst [vmem:[%s172_s27 + $0x18] sm:$0xff] %v464_v32  }
  0xef   : > { %450 = vst [vmem:[%s172_s27] sm:$0xff] %v449_v33   ;;  %467 = vst [vmem:[%s172_s27 + $0x10] sm:$0xff] %v459_v34  }
  0xf0 PF: > { %s13_s12 = sadd.s32 1, %s511_s12  }
  0xf1   : > { %p10_p4 = scmp.ge.s32.totalorder %s13_s12, 4  }
  0xf3   :  { %12 = sbr.rel (!%p10_p4) target bundleno = 1 (0x1), region = 62 }

// kernel: downsampling_bottleneck.3
= control target key start
LH: loop header
LB: loop body
LE: loop exit
PB: predicated region body
PF: predicated region fallthrough
CT: control target
= control target key end

     0   :  { %s1318_s21 = smov 0   ;;  %s2993_s0 = inlined_call_operand.vmem [shape: f32[2,100,8], index: 0, kind: input, shape index: {}]   ;;  %s2994_s1 = inlined_call_operand.vmem [shape: f32[2,100,8], index: 1, kind: input, shape index: {}]   ;;  %s2995_s2 = inlined_call_operand.vmem [shape: f32[2,100,8], index: 2, kind: input, shape index: {}]   ;;  %s2996_s3 = inlined_call_operand.vmem [shape: f32[2,100,8], index: 3, kind: input, shape index: {}]   ;;  %s2997_s4 = inlined_call_operand.vmem [shape: s32[9,80,1], index: 4, kind: input, shape index: {}]   ;;  %s2998_s5 = inlined_call_operand.vmem [shape: f32[2,80,8], index: 5, kind: output, shape index: {0}]   ;;  %s2999_s6 = inlined_call_operand.vmem [shape: s32[2,80,8], index: 6, kind: output, shape index: {1}]  }
   0x1 LB: > { %s1168_s22 = sadd.s32 4294967295, %s1280_s21   ;;  %p1172_p0 = scmp.ge.s32.totalorder %s1280_s21, 1  ;;  %s1280_s21 = sphi %s1318_s21, %s17_s21  }
   0x2   : > { %p245_p1 = scmp.lt.s32.totalorder %s1280_s21, 3 }
   0x4   : > { %p246_p2 = pnand %p1172_p0, %p245_p1 }
   0x6   : > { %249 = sbr.rel (%p246_p2) target bundleno = 326 (0x146), region = 40 }
   0xd   : > { %v337_v0 = vld [vmem:[%s2997_s4 + $0x10] sm:$0xff]  ;;  %v335_v1 = vld [vmem:[%s2997_s4] sm:$0xff]  ;;  %v1282_v2 = vmov 0   ;;  %v338_v3 = vld [vmem:[%s2997_s4 + $0x18] sm:$0xff]  ;;  %p295_p3 = scmp.lt.s32.totalorder %s1168_s22, 1 }
   0xe   : > { %1273 = vset.pattern.permute.xlu1 %v1282_v2  ;;  %1272 = vset.pattern.permute.xlu0 %v1282_v2  ;;  %v336_v4 = vld [vmem:[%s2997_s4 + $0x8] sm:$0xff]  ;;  %v339_v6 = vld [vmem:[%s2997_s4 + $0x20] sm:$0xff]  ;;  %v342_v7 = vld [vmem:[%s2997_s4 + $0x38] sm:$0xff] }
   0xf   : > { %352 = vperm.xlu1 %1273, %v337_v0   ;;  %346 = vperm.xlu0 %1272, %v335_v1   ;;  %v340_v5 = vld [vmem:[%s2997_s4 + $0x28] sm:$0xff]  ;;  %v341_v8 = vld [vmem:[%s2997_s4 + $0x30] sm:$0xff]  ;;  %v343_v10 = vld [vmem:[%s2997_s4 + $0x40] sm:$0xff]  ;;  %s3456_s22 = smov (!%p295_p3, %s1168_s22), 1 }
  0x10   : > { %v344_v9 = vld [vmem:[%s2997_s4 + $0x48] sm:$0xff]  ;;  %v1180_v11 = vld [vmem:[%s2997_s4 + $0x58] sm:$0xff]  ;;  %v1179_v12 = vld [vmem:[%s2997_s4 + $0x50] sm:$0xff]  ;;  %s1513_s9 = smul.u32 104, %s3456_s22 }
  0x11   : > { %v1182_v13 = vld [vmem:[%s2997_s4 + $0x68] sm:$0xff]  ;;  %v1181_v14 = vld [vmem:[%s2997_s4 + $0x60] sm:$0xff]  ;;  %v1184_v15 = vld [vmem:[%s2997_s4 + $0x78] sm:$0xff] }
  0x12   : > { %v1183_v16 = vld [vmem:[%s2997_s4 + $0x70] sm:$0xff]  ;;  %v1186_v17 = vld [vmem:[%s2997_s4 + $0x88] sm:$0xff]  ;;  %v1185_v18 = vld [vmem:[%s2997_s4 + $0x80] sm:$0xff]  ;;  %s1525_s16 = scalar_lea.vmem %s2993_s0, %s1513_s9  ;;  %s1531_s19 = scalar_lea.vmem %s2994_s1, %s1513_s9 }
  0x13   : > { %355 = vperm.xlu1 %1273, %v338_v3   ;;  %349 = vperm.xlu0 %1272, %v336_v4   ;;  %v1188_v19 = vld [vmem:[%s2997_s4 + $0x98] sm:$0xff]  ;;  %v1187_v20 = vld [vmem:[%s2997_s4 + $0x90] sm:$0xff]  ;;  %v1190_v21 = vld [vmem:[%s2997_s4 + $0xa8] sm:$0xff]  ;;  %s1686_s15 = scalar_lea.vmem %s2995_s2, %s1513_s9  ;;  %s1832_s28 = scalar_lea.vmem %s2996_s3, %s1513_s9 }
  0x14   : > { %v1189_v22 = vld [vmem:[%s2997_s4 + $0xa0] sm:$0xff]  ;;  %v1192_v23 = vld [vmem:[%s2997_s4 + $0xb8] sm:$0xff]  ;;  %v1191_v24 = vld [vmem:[%s2997_s4 + $0xb0] sm:$0xff]  ;;  %s1262_s9 = smul.u32 80, %s3456_s22 }
  0x15   : > { %v1194_v25 = vld [vmem:[%s2997_s4 + $0xc8] sm:$0xff]  ;;  %v1193_v26 = vld [vmem:[%s2997_s4 + $0xc0] sm:$0xff]  ;;  %v1196_v27 = vld [vmem:[%s2997_s4 + $0xd8] sm:$0xff] }
  0x16   : > { %v1195_v28 = vld [vmem:[%s2997_s4 + $0xd0] sm:$0xff]  ;;  %v1198_v29 = vld [vmem:[%s2997_s4 + $0xe8] sm:$0xff]  ;;  %v1197_v30 = vld [vmem:[%s2997_s4 + $0xe0] sm:$0xff]  ;;  %s2399_s7 = scalar_lea.vmem %s2998_s5, %s1262_s9  ;;  %s2850_s29 = scalar_lea.vmem %s2999_s6, %s1262_s9 }
  0x17   : > { %361 = vperm.xlu1 %1273, %v340_v5   ;;  %358 = vperm.xlu0 %1272, %v339_v6   ;;  %v1200_v31 = vld [vmem:[%s2997_s4 + $0xf8] sm:$0xff]  ;;  %v1199_v32 = vld [vmem:[%s2997_s4 + $0xf0] sm:$0xff]  ;;  %v1202_v33 = vld [vmem:[%s2997_s4 + $0x108] sm:$0xff] }
  0x18   : > { %v1201_v34 = vld [vmem:[%s2997_s4 + $0x100] sm:$0xff]  ;;  %v1204_v35 = vld [vmem:[%s2997_s4 + $0x118] sm:$0xff]  ;;  %v1203_v36 = vld [vmem:[%s2997_s4 + $0x110] sm:$0xff] }
  0x19   : > { %v1206_v37 = vld [vmem:[%s2997_s4 + $0x128] sm:$0xff]  ;;  %v1205_v38 = vld [vmem:[%s2997_s4 + $0x120] sm:$0xff]  ;;  %v1208_v39 = vld [vmem:[%s2997_s4 + $0x138] sm:$0xff] }
  0x1a   : > { %v1207_v40 = vld [vmem:[%s2997_s4 + $0x130] sm:$0xff]  ;;  %v1210_v41 = vld [vmem:[%s2997_s4 + $0x148] sm:$0xff]  ;;  %v1209_v42 = vld [vmem:[%s2997_s4 + $0x140] sm:$0xff] }
  0x1b   : > { %367 = vperm.xlu1 %1273, %v342_v7   ;;  %364 = vperm.xlu0 %1272, %v341_v8   ;;  %v1212_v43 = vld [vmem:[%s2997_s4 + $0x158] sm:$0xff]  ;;  %v1211_v44 = vld [vmem:[%s2997_s4 + $0x150] sm:$0xff]  ;;  %v1214_v45 = vld [vmem:[%s2997_s4 + $0x168] sm:$0xff] }
  0x1c   : > { %v1213_v46 = vld [vmem:[%s2997_s4 + $0x160] sm:$0xff]  ;;  %v1216_v47 = vld [vmem:[%s2997_s4 + $0x178] sm:$0xff]  ;;  %v1215_v48 = vld [vmem:[%s2997_s4 + $0x170] sm:$0xff] }
  0x1d   : > { %v1218_v49 = vld [vmem:[%s2997_s4 + $0x188] sm:$0xff]  ;;  %v1217_v50 = vld [vmem:[%s2997_s4 + $0x180] sm:$0xff]  ;;  %v1220_v51 = vld [vmem:[%s2997_s4 + $0x198] sm:$0xff] }
  0x1e   : > { %v1219_v52 = vld [vmem:[%s2997_s4 + $0x190] sm:$0xff]  ;;  %v1222_v53 = vld [vmem:[%s2997_s4 + $0x1a8] sm:$0xff]  ;;  %v1221_v54 = vld [vmem:[%s2997_s4 + $0x1a0] sm:$0xff] }
  0x1f   : > { %373 = vperm.xlu1 %1273, %v344_v9   ;;  %370 = vperm.xlu0 %1272, %v343_v10   ;;  %v1224_v55 = vld [vmem:[%s2997_s4 + $0x1b8] sm:$0xff]  ;;  %v1223_v56 = vld [vmem:[%s2997_s4 + $0x1b0] sm:$0xff]  ;;  %v1226_v57 = vld [vmem:[%s2997_s4 + $0x1c8] sm:$0xff] }
  0x20   : > { %v1225_v58 = vld [vmem:[%s2997_s4 + $0x1c0] sm:$0xff]  ;;  %v1228_v59 = vld [vmem:[%s2997_s4 + $0x1d8] sm:$0xff]  ;;  %v1227_v60 = vld [vmem:[%s2997_s4 + $0x1d0] sm:$0xff] }
  0x21   : > { %v1230_v61 = vld [vmem:[%s2997_s4 + $0x1e8] sm:$0xff]  ;;  %v1229_v62 = vld [vmem:[%s2997_s4 + $0x1e0] sm:$0xff]  ;;  %v1232_v63 = vld [vmem:[%s2997_s4 + $0x1f8] sm:$0xff] }
  0x22   : > { %v1231_v0 = vld [vmem:[%s2997_s4 + $0x1f0] sm:$0xff]  ;;  %v1234_v1 = vld [vmem:[%s2997_s4 + $0x208] sm:$0xff]  ;;  %v1233_v2 = vld [vmem:[%s2997_s4 + $0x200] sm:$0xff] }
  0x23   : > { %400 = vperm.xlu1 %1273, %v1180_v11   ;;  %397 = vperm.xlu0 %1272, %v1179_v12   ;;  %v1546_v3 = vld [vmem:[%s1525_s16 + $0x8] sm:$0xff]  ;;  %v1552_v5 = vld [vmem:[%s1525_s16] sm:$0xff]  ;;  %v1558_v7 = vld [vmem:[%s1525_s16 + $0x18] sm:$0xff] }
  0x24   : > { %v1549_v4 = vld [vmem:[%s1531_s19 + $0x8] sm:$0xff]  ;;  %v1555_v6 = vld [vmem:[%s1531_s19] sm:$0xff]  ;;  %v1561_v8 = vld [vmem:[%s1531_s19 + $0x18] sm:$0xff] }
  0x25   : > { %v1564_v9 = vld [vmem:[%s1525_s16 + $0x10] sm:$0xff]  ;;  %v1570_v11 = vld [vmem:[%s1525_s16 + $0x28] sm:$0xff]  ;;  %vm427_vm0 = vcmp.gt.f32.partialorder %v1549_v4, %v1546_v3  ;;  %vm426_vm1 = vcmp.gt.f32.partialorder %v1555_v6, %v1552_v5  ;;  %vm429_vm2 = vcmp.gt.f32.partialorder %v1561_v8, %v1558_v7 }
  0x26   : > { %v1567_v10 = vld [vmem:[%s1531_s19 + $0x10] sm:$0xff]  ;;  %v1573_v12 = vld [vmem:[%s1531_s19 + $0x28] sm:$0xff] }
  0x27   : > { %406 = vperm.xlu1 %1273, %v1182_v13   ;;  %403 = vperm.xlu0 %1272, %v1181_v14   ;;  %v1576_v13 = vld [vmem:[%s1525_s16 + $0x20] sm:$0xff]  ;;  %vm428_vm3 = vcmp.gt.f32.partialorder %v1567_v10, %v1564_v9  ;;  %vm431_vm4 = vcmp.gt.f32.partialorder %v1573_v12, %v1570_v11 }
  0x28   : > { %v1579_v14 = vld [vmem:[%s1531_s19 + $0x20] sm:$0xff] }
  0x29   : > { %vm430_vm5 = vcmp.gt.f32.partialorder %v1579_v14, %v1576_v13 }
  0x2b   : > { %412 = vperm.xlu1 %1273, %v1184_v15   ;;  %409 = vperm.xlu0 %1272, %v1183_v16   ;;  %v1582_v15 = vld [vmem:[%s1525_s16 + $0x38] sm:$0xff] }
  0x2c   : > { %v1585_v16 = vld [vmem:[%s1531_s19 + $0x38] sm:$0xff] }
  0x2d   : > { %vm433_vm6 = vcmp.gt.f32.partialorder %v1585_v16, %v1582_v15 }
  0x2f   : > { %418 = vperm.xlu1 %1273, %v1186_v17   ;;  %415 = vperm.xlu0 %1272, %v1185_v18  }
  0x33   : > { %424 = vperm.xlu1 %1273, %v1188_v19   ;;  %421 = vperm.xlu0 %1272, %v1187_v20   ;;  %v1592_v19 = vld [vmem:[%s1525_s16 + $0x30] sm:$0xff] }
  0x34   : > { %v1595_v20 = vld [vmem:[%s1531_s19 + $0x30] sm:$0xff] }
  0x35   : > { %vm432_vm7 = vcmp.gt.f32.partialorder %v1595_v20, %v1592_v19 }
  0x37   : > { %481 = vperm.xlu1 %1273, %v1190_v21   ;;  %478 = vperm.xlu0 %1272, %v1189_v22   ;;  %v1598_v21 = vld [vmem:[%s1525_s16 + $0x48] sm:$0xff] }
  0x38   : > { %v1605_v22 = vld [vmem:[%s1531_s19 + $0x48] sm:$0xff] }
  0x39   : > { %vm3005_vm8 = vcmp.gt.f32.partialorder %v1605_v22, %v1598_v21 }
  0x3b   : > { %487 = vperm.xlu1 %1273, %v1192_v23   ;;  %484 = vperm.xlu0 %1272, %v1191_v24   ;;  %v1608_v23 = vld [vmem:[%s1525_s16 + $0x40] sm:$0xff] }
  0x3c   : > { %v1611_v24 = vld [vmem:[%s1531_s19 + $0x40] sm:$0xff] }
  0x3d   : > { %vm3003_vm9 = vcmp.gt.f32.partialorder %v1611_v24, %v1608_v23 }
  0x3f   : > { %493 = vperm.xlu1 %1273, %v1194_v25   ;;  %490 = vperm.xlu0 %1272, %v1193_v26   ;;  %v1236_v25 = vld [vmem:[%s2997_s4 + $0x218] sm:$0xff]  ;;  %v1235_v26 = vld [vmem:[%s2997_s4 + $0x210] sm:$0xff] }
  0x43   : > { %499 = vperm.xlu1 %1273, %v1196_v27   ;;  %496 = vperm.xlu0 %1272, %v1195_v28   ;;  %v1634_v27 = vsel %vm427_vm0, %v1549_v4, %v1546_v3  ;;  %v1637_v28 = vld [vmem:[%s1525_s16 + $0x9] sm:$0xff]  ;;  %v1245_v3 = vld [vmem:[%s2997_s4 + $0x260] sm:$0xff] }
  0x44   : > { %vm3001_vm10 = vcmp.gt.f32.partialorder %v1637_v28, %v1634_v27 }
  0x47   : > { %505 = vperm.xlu1 %1273, %v1198_v29   ;;  %502 = vperm.xlu0 %1272, %v1197_v30   ;;  %v1644_v29 = vsel %vm426_vm1, %v1555_v6, %v1552_v5  ;;  %v1647_v30 = vld [vmem:[%s1525_s16 + $0x1] sm:$0xff] }
  0x48   : > { %vm3000_vm11 = vcmp.gt.f32.partialorder %v1647_v30, %v1644_v29  ;;  %v2133_v5 = vld [vmem:[%s1686_s15 + $0x21] sm:$0xff] }
  0x49   : > { %3225 = vst [vmem:[#allocation60_spill] sm:$0xff] %v2133_v5 }
  0x4b   : > { %562 = vperm.xlu1 %1273, %v1200_v31   ;;  %559 = vperm.xlu0 %1272, %v1199_v32   ;;  %v1654_v31 = vsel %vm429_vm2, %v1561_v8, %v1558_v7  ;;  %v1657_v32 = vld [vmem:[%s1525_s16 + $0x19] sm:$0xff] }
  0x4c   : > { %vm3002_vm12 = vcmp.gt.f32.partialorder %v1657_v32, %v1654_v31  ;;  %v2215_v8 = vld [vmem:[%s1525_s16 + $0x1a] sm:$0xff] }
  0x4d   : > { %3237 = vst [vmem:[#allocation72_spill] sm:$0xff] %v2215_v8 }
  0x4f   : > { %568 = vperm.xlu1 %1273, %v1202_v33   ;;  %565 = vperm.xlu0 %1272, %v1201_v34  }
  0x53   : > { %574 = vperm.xlu1 %1273, %v1204_v35   ;;  %571 = vperm.xlu0 %1272, %v1203_v36   ;;  %v1238_v35 = vld [vmem:[%s2997_s4 + $0x228] sm:$0xff]  ;;  %v1677_v36 = vsel %vm428_vm3, %v1567_v10, %v1564_v9  ;;  %v1248_v9 = vld [vmem:[%s2997_s4 + $0x278] sm:$0xff]  ;;  %v1247_v10 = vld [vmem:[%s2997_s4 + $0x270] sm:$0xff] }
  0x54   : > { %3167 = vst [vmem:[#allocation2_spill] sm:$0xff] %v1677_v36 }
  0x57   : > { %580 = vperm.xlu1 %1273, %v1206_v37   ;;  %577 = vperm.xlu0 %1272, %v1205_v38   ;;  %v1680_v37 = vld [vmem:[%s1525_s16 + $0x11] sm:$0xff]  ;;  %v1693_v38 = vsel %vm431_vm4, %v1573_v12, %v1570_v11 }
  0x58   : > { %3168 = vst [vmem:[#allocation3_spill] sm:$0xff] %v1680_v37  ;;  %3169 = vst [vmem:[#allocation4_spill] sm:$0xff] %v1693_v38  ;;  %vm3004_vm13 = vcmp.gt.f32.partialorder %v1680_v37, %v1677_v36  ;;  %v2304_v12 = vld [vmem:[%s1525_s16 + $0x2a] sm:$0xff] }
  0x59   : > { %3243 = vst [vmem:[#allocation78_spill] sm:$0xff] %v2304_v12 }
  0x5b   : > { %586 = vperm.xlu1 %1273, %v1208_v39   ;;  %583 = vperm.xlu0 %1272, %v1207_v40   ;;  %v1696_v39 = vld [vmem:[%s1525_s16 + $0x29] sm:$0xff]  ;;  %v1703_v40 = vsel %vm430_vm5, %v1579_v14, %v1576_v13  ;;  %v1249_v13 = vld [vmem:[%s2997_s4 + $0x280] sm:$0xff] }
  0x5c   : > { %3170 = vst [vmem:[#allocation5_spill] sm:$0xff] %v1696_v39  ;;  %3171 = vst [vmem:[#allocation6_spill] sm:$0xff] %v1703_v40  ;;  %vm3045_vm14 = vcmp.gt.f32.partialorder %v1696_v39, %v1693_v38 }
  0x5f   : > { %643 = vperm.xlu1 %1273, %v1210_v41   ;;  %640 = vperm.xlu0 %1272, %v1209_v42   ;;  %v1706_v41 = vld [vmem:[%s1525_s16 + $0x21] sm:$0xff]  ;;  %v1713_v42 = vsel %vm433_vm6, %v1585_v16, %v1582_v15  ;;  %v1252_v16 = vld [vmem:[%s2997_s4 + $0x298] sm:$0xff] }
  0x60   : > { %3172 = vst [vmem:[#allocation7_spill] sm:$0xff] %v1706_v41  ;;  %3173 = vst [vmem:[#allocation8_spill] sm:$0xff] %v1713_v42  ;;  %vm3009_vm15 = vcmp.gt.f32.partialorder %v1706_v41, %v1703_v40 }
  0x63   : > { %649 = vperm.xlu1 %1273, %v1212_v43   ;;  %646 = vperm.xlu0 %1272, %v1211_v44   ;;  %v1716_v43 = vld [vmem:[%s1525_s16 + $0x39] sm:$0xff] }
  0x64   : > { %3174 = vst [vmem:[#allocation9_spill] sm:$0xff] %v1716_v43  ;;  %v1237_v44 = vld [vmem:[%s2997_s4 + $0x220] sm:$0xff] }
  0x67   : > { %655 = vperm.xlu1 %1273, %v1214_v45   ;;  %652 = vperm.xlu0 %1272, %v1213_v46   ;;  %v1732_v45 = vsel %vm432_vm7, %v1595_v20, %v1592_v19  ;;  %v1735_v46 = vld [vmem:[%s1525_s16 + $0x31] sm:$0xff] }
  0x68   : > { %3175 = vst [vmem:[#allocation10_spill] sm:$0xff] %v1732_v45  ;;  %3176 = vst [vmem:[#allocation11_spill] sm:$0xff] %v1735_v46  ;;  %v1251_v19 = vld [vmem:[%s2997_s4 + $0x290] sm:$0xff] }
  0x69   : > { %v2419_v20 = vld [vmem:[%s1531_s19 + $0x32] sm:$0xff] }
  0x6b   : > { %661 = vperm.xlu1 %1273, %v1216_v47   ;;  %658 = vperm.xlu0 %1272, %v1215_v48   ;;  %v1738_v47 = vld [vmem:[%s1525_s16 + $0x49] sm:$0xff]  ;;  %v1745_v48 = vsel %vm3005_vm8, %v1605_v22, %v1598_v21 }
  0x6c   : > { %3177 = vst [vmem:[#allocation12_spill] sm:$0xff] %v1738_v47  ;;  %3178 = vst [vmem:[#allocation13_spill] sm:$0xff] %v1745_v48 }
  0x6f   : > { %667 = vperm.xlu1 %1273, %v1218_v49   ;;  %664 = vperm.xlu0 %1272, %v1217_v50   ;;  %v1752_v49 = vsel %vm3003_vm9, %v1611_v24, %v1608_v23  ;;  %v1755_v50 = vld [vmem:[%s1525_s16 + $0x41] sm:$0xff] }
  0x70   : > { %3179 = vst [vmem:[#allocation14_spill] sm:$0xff] %v1752_v49  ;;  %3180 = vst [vmem:[#allocation15_spill] sm:$0xff] %v1755_v50  ;;  %vm3023_vm9 = vcmp.gt.f32.partialorder %v1755_v50, %v1752_v49 }
  0x73   : > { %724 = vperm.xlu1 %1273, %v1220_v51   ;;  %721 = vperm.xlu0 %1272, %v1219_v52   ;;  %v1762_v51 = vsel %vm3001_vm10, %v1637_v28, %v1634_v27  ;;  %v1765_v52 = vld [vmem:[%s1686_s15 + $0x8] sm:$0xff]  ;;  %vm3037_vm10 = vcmp.gt.f32.partialorder %v1735_v46, %v1732_v45 }
  0x74   : > { %3181 = vst [vmem:[#allocation16_spill] sm:$0xff] %v1762_v51  ;;  %3182 = vst [vmem:[#allocation17_spill] sm:$0xff] %v1765_v52 }
  0x77   : > { %730 = vperm.xlu1 %1273, %v1222_v53   ;;  %727 = vperm.xlu0 %1272, %v1221_v54   ;;  %v1772_v53 = vsel %vm3000_vm11, %v1647_v30, %v1644_v29  ;;  %v1775_v54 = vld [vmem:[%s1686_s15] sm:$0xff]  ;;  %vm3008_vm11 = vcmp.gt.f32.partialorder %v1716_v43, %v1713_v42 }
  0x78   : > { %3183 = vst [vmem:[#allocation18_spill] sm:$0xff] %v1772_v53  ;;  %3184 = vst [vmem:[#allocation19_spill] sm:$0xff] %v1775_v54  ;;  %vm3020_vm8 = vcmp.gt.f32.partialorder %v1775_v54, %v1772_v53 }
  0x7b   : > { %736 = vperm.xlu1 %1273, %v1224_v55   ;;  %733 = vperm.xlu0 %1272, %v1223_v56  }
  0x7f   : > { %742 = vperm.xlu1 %1273, %v1226_v57   ;;  %739 = vperm.xlu0 %1272, %v1225_v58   ;;  %v1796_v57 = vsel %vm3002_vm12, %v1657_v32, %v1654_v31  ;;  %v1799_v58 = vld [vmem:[%s1686_s15 + $0x18] sm:$0xff]  ;;  %vm3024_vm12 = vcmp.gt.f32.partialorder %v1738_v47, %v1745_v48 }
  0x80   : > { %3185 = vst [vmem:[#allocation20_spill] sm:$0xff] %v1796_v57  ;;  %3186 = vst [vmem:[#allocation21_spill] sm:$0xff] %v1799_v58 }
  0x83   : > { %748 = vperm.xlu1 %1273, %v1228_v59   ;;  %745 = vperm.xlu0 %1272, %v1227_v60   ;;  %v1806_v59 = vsel %vm3004_vm13, %v1680_v37, %v1677_v36  ;;  %v1809_v60 = vld [vmem:[%s1686_s15 + $0x10] sm:$0xff]  ;;  %vm3021_vm13 = vcmp.gt.f32.partialorder %v1765_v52, %v1762_v51  ;;  %v2067_v37 = vld [vmem:[%s1686_s15 + $0x19] sm:$0xff] }
  0x84   : > { %3187 = vst [vmem:[#allocation22_spill] sm:$0xff] %v1806_v59  ;;  %3188 = vst [vmem:[#allocation23_spill] sm:$0xff] %v1809_v60 }
  0x85   : > { %3219 = vst [vmem:[#allocation54_spill] sm:$0xff] %v2067_v37 }
  0x87   : > { %805 = vperm.xlu1 %1273, %v1230_v61   ;;  %802 = vperm.xlu0 %1272, %v1229_v62   ;;  %v1240_v61 = vld [vmem:[%s2997_s4 + $0x238] sm:$0xff]  ;;  %v1239_v62 = vld [vmem:[%s2997_s4 + $0x230] sm:$0xff] }
  0x8b   : > { %811 = vperm.xlu1 %1273, %v1232_v63   ;;  %808 = vperm.xlu0 %1272, %v1231_v0   ;;  %v1826_v63 = vld [vmem:[%s1686_s15 + $0x28] sm:$0xff]  ;;  %v1839_v0 = vsel %vm3045_vm14, %v1696_v39, %v1693_v38 }
  0x8c   : > { %3189 = vst [vmem:[#allocation24_spill] sm:$0xff] %v1826_v63  ;;  %3190 = vst [vmem:[#allocation25_spill] sm:$0xff] %v1839_v0 }
  0x8e   : > { %v1587_v17 = vpop.permute.xlu1 %352  ;;  %v1589_v18 = vpop.permute.xlu0 %346 }
  0x8f   : > { %817 = vperm.xlu1 %1273, %v1234_v1   ;;  %814 = vperm.xlu0 %1272, %v1233_v2   ;;  %v1846_v1 = vsel %vm3009_vm15, %v1706_v41, %v1703_v40  ;;  %v1849_v2 = vld [vmem:[%s1686_s15 + $0x20] sm:$0xff]  ;;  %vm3035_vm15 = vcmp.gt.f32.partialorder %v1809_v60, %v1806_v59 }
  0x90   : > { %3191 = vst [vmem:[#allocation26_spill] sm:$0xff] %v1846_v1  ;;  %3192 = vst [vmem:[#allocation27_spill] sm:$0xff] %v1849_v2 }
  0x92   : > { %v1659_v33 = vpop.permute.xlu1 %355  ;;  %v1661_v34 = vpop.permute.xlu0 %349 }
  0x93   : > { %823 = vperm.xlu1 %1273, %v1236_v25   ;;  %820 = vperm.xlu0 %1272, %v1235_v26   ;;  %v1856_v25 = vsel %vm3008_vm11, %v1716_v43, %v1713_v42  ;;  %v1859_v26 = vld [vmem:[%s1686_s15 + $0x38] sm:$0xff]  ;;  %vm3022_vm11 = vcmp.gt.f32.partialorder %v1799_v58, %v1796_v57  ;;  %v1894_v42 = vsel %vm3023_vm9, %v1755_v50, %v1752_v49  ;;  %v1897_v43 = vld [vmem:[%s1686_s15 + $0x40] sm:$0xff]  ;;  %v1963_v50 = vld [vmem:[%s1832_s28 + $0x28] sm:$0xff] }
  0x94   : > { %3193 = vst [vmem:[#allocation28_spill] sm:$0xff] %v1856_v25  ;;  %3194 = vst [vmem:[#allocation29_spill] sm:$0xff] %v1859_v26  ;;  %v1914_v49 = vsel %vm3020_vm8, %v1775_v54, %v1772_v53  ;;  %v1241_v53 = vld [vmem:[%s2997_s4 + $0x240] sm:$0xff]  ;;  %vm3034_vm8 = vcmp.gt.f32.partialorder %v1826_v63, %v1839_v0 }
  0x95   : > { %3199 = vst [vmem:[#allocation34_spill] sm:$0xff] %v1894_v42  ;;  %3200 = vst [vmem:[#allocation35_spill] sm:$0xff] %v1897_v43  ;;  %v1960_v54 = vsel %vm3034_vm8, %v1826_v63, %v1839_v0  ;;  %v1244_v0 = vld [vmem:[%s2997_s4 + $0x258] sm:$0xff]  ;;  %vm3068_vm8 = vcmp.gt.f32.partialorder %v1897_v43, %v1894_v42 }
  0x96   : > { %v1777_v55 = vpop.permute.xlu1 %361  ;;  %v1779_v56 = vpop.permute.xlu0 %358  ;;  %3203 = vst [vmem:[#allocation38_spill] sm:$0xff] %v1914_v49  ;;  %3209 = vst [vmem:[#allocation44_spill] sm:$0xff] %v1960_v54 }
  0x97   : > { %829 = vperm.xlu1 %1273, %v1238_v35   ;;  %826 = vperm.xlu0 %1272, %v1237_v44   ;;  %v1866_v35 = vsel %vm3037_vm10, %v1735_v46, %v1732_v45  ;;  %v1869_v44 = vld [vmem:[%s1686_s15 + $0x30] sm:$0xff]  ;;  %v1884_v45 = vsel %vm3024_vm12, %v1738_v47, %v1745_v48  ;;  %v1887_v46 = vld [vmem:[%s1686_s15 + $0x48] sm:$0xff]  ;;  %v1904_v48 = vsel %vm3021_vm13, %v1765_v52, %v1762_v51  ;;  %v1927_v51 = vld [vmem:[%s1832_s28 + $0x18] sm:$0xff] }
  0x98   : > { %3195 = vst [vmem:[#allocation30_spill] sm:$0xff] %v1866_v35  ;;  %3196 = vst [vmem:[#allocation31_spill] sm:$0xff] %v1869_v44  ;;  %v1907_v47 = vld [vmem:[%s1832_s28 + $0x8] sm:$0xff]  ;;  %vm3036_vm13 = vcmp.gt.f32.partialorder %v1849_v2, %v1846_v1  ;;  %vm3043_vm9 = vcmp.gt.f32.partialorder %v1869_v44, %v1866_v35  ;;  %vm3069_vm12 = vcmp.gt.f32.partialorder %v1887_v46, %v1884_v45 }
  0x99   : > { %3197 = vst [vmem:[#allocation32_spill] sm:$0xff] %v1884_v45  ;;  %3198 = vst [vmem:[#allocation33_spill] sm:$0xff] %v1887_v46  ;;  %v1242_v52 = vld [vmem:[%s2997_s4 + $0x248] sm:$0xff]  ;;  %v2005_v63 = vsel %vm3043_vm9, %v1869_v44, %v1866_v35 }
  0x9a   : > { %v1871_v40 = vpop.permute.xlu1 %367  ;;  %v1873_v41 = vpop.permute.xlu0 %364  ;;  %3201 = vst [vmem:[#allocation36_spill] sm:$0xff] %v1904_v48  ;;  %3202 = vst [vmem:[#allocation37_spill] sm:$0xff] %v1907_v47  ;;  %v2040_v35 = vld [vmem:[%s1686_s15 + $0x9] sm:$0xff] }
  0x9b   : > { %886 = vperm.xlu1 %1273, %v1240_v61   ;;  %883 = vperm.xlu0 %1272, %v1239_v62   ;;  %v1917_v61 = vld [vmem:[%s1832_s28] sm:$0xff]  ;;  %v1924_v62 = vsel %vm3022_vm11, %v1799_v58, %v1796_v57  ;;  %3206 = vst [vmem:[#allocation41_spill] sm:$0xff] %v1927_v51  ;;  %vm3044_vm11 = vcmp.gt.f32.partialorder %v1859_v26, %v1856_v25  ;;  %v1953_v58 = vld [vmem:[%s1832_s28 + $0x10] sm:$0xff]  ;;  %3211 = vst [vmem:[#allocation46_spill] sm:$0xff] %v2005_v63 }
  0x9c   : > { %3204 = vst [vmem:[#allocation39_spill] sm:$0xff] %v1917_v61  ;;  %3205 = vst [vmem:[#allocation40_spill] sm:$0xff] %v1924_v62  ;;  %v1950_v57 = vsel %vm3035_vm15, %v1809_v60, %v1806_v59  ;;  %v1970_v59 = vsel %vm3036_vm13, %v1849_v2, %v1846_v1  ;;  %v1973_v60 = vld [vmem:[%s1832_s28 + $0x20] sm:$0xff]  ;;  %vm3060_vm15 = vcmp.gt.f32.partialorder %v1907_v47, %v1904_v48  ;;  %v1998_v2 = vld [vmem:[%s1832_s28 + $0x38] sm:$0xff] }
  0x9d   : > { %3207 = vst [vmem:[#allocation42_spill] sm:$0xff] %v1950_v57  ;;  %3208 = vst [vmem:[#allocation43_spill] sm:$0xff] %v1953_v58  ;;  %vm3058_vm13 = vcmp.gt.f32.partialorder %v1917_v61, %v1914_v49  ;;  %vm3059_vm10 = vcmp.gt.f32.partialorder %v1927_v51, %v1924_v62  ;;  %v1995_v1 = vsel %vm3044_vm11, %v1859_v26, %v1856_v25  ;;  %v2018_v25 = vld [vmem:[%s1832_s28 + $0x48] sm:$0xff]  ;;  %v1243_v26 = vld [vmem:[%s2997_s4 + $0x250] sm:$0xff] }
  0x9e   : > { %v1975_v38 = vpop.permute.xlu1 %373  ;;  %v1977_v39 = vpop.permute.xlu0 %370  ;;  %3210 = vst [vmem:[#allocation45_spill] sm:$0xff] %v1995_v1  ;;  %vm3067_vm9 = vcmp.gt.f32.partialorder %v1953_v58, %v1950_v57  ;;  %vm3065_vm11 = vcmp.gt.f32.partialorder %v1963_v50, %v1960_v54  ;;  %vm673_vm14 = vcmp.gt.f32.partialorder %v1973_v60, %v1970_v59  ;;  %3214 = vst [vmem:[#allocation49_spill] sm:$0xff] %v2040_v35 }
  0x9f   : > { %892 = vperm.xlu1 %1273, %v1242_v52   ;;  %889 = vperm.xlu0 %1272, %v1241_v53   ;;  %v2008_v52 = vld [vmem:[%s1832_s28 + $0x30] sm:$0xff]  ;;  %v2015_v53 = vsel %vm3069_vm12, %v1887_v46, %v1884_v45  ;;  %v2034_v45 = vsel %vm3068_vm8, %v1897_v43, %v1894_v42  ;;  %v2037_v46 = vld [vmem:[%s1832_s28 + $0x40] sm:$0xff]  ;;  %v2047_v44 = vsel %vm3060_vm15, %v1907_v47, %v1904_v48 }
  0xa0   : > { %3212 = vst [vmem:[#allocation47_spill] sm:$0xff] %v2008_v52  ;;  %3213 = vst [vmem:[#allocation48_spill] sm:$0xff] %v2015_v53  ;;  %v2054_v36 = vsel %vm3058_vm13, %v1917_v61, %v1914_v49  ;;  %v2057_v42 = vld [vmem:[%s1686_s15 + $0x1] sm:$0xff]  ;;  %v2064_v43 = vsel %vm3059_vm10, %v1927_v51, %v1924_v62  ;;  %v2074_v48 = vsel %vm3067_vm9, %v1953_v58, %v1950_v57  ;;  %v2077_v49 = vld [vmem:[%s1686_s15 + $0x11] sm:$0xff] }
  0xa1   : > { %3215 = vst [vmem:[#allocation50_spill] sm:$0xff] %v2047_v44  ;;  %3216 = vst [vmem:[#allocation51_spill] sm:$0xff] %v2054_v36  ;;  %vm676_vm13 = vcmp.gt.f32.partialorder %v1998_v2, %v1995_v1  ;;  %vm675_vm10 = vcmp.gt.f32.partialorder %v2008_v52, %v2005_v63  ;;  %vm678_vm15 = vcmp.gt.f32.partialorder %v2018_v25, %v2015_v53  ;;  %v2093_v58 = vld [vmem:[%s1686_s15 + $0x29] sm:$0xff] }
  0xa2   : > { %3217 = vst [vmem:[#allocation52_spill] sm:$0xff] %v2057_v42  ;;  %3218 = vst [vmem:[#allocation53_spill] sm:$0xff] %v2064_v43  ;;  %v401_v61 = vpop.permute.xlu1 %400  ;;  %v398_v47 = vpop.permute.xlu0 %397  ;;  %v2090_v57 = vsel %vm3065_vm11, %v1963_v50, %v1960_v54  ;;  %vm677_vm11 = vcmp.gt.f32.partialorder %v2037_v46, %v2034_v45  ;;  %v1246_v54 = vld [vmem:[%s2997_s4 + $0x268] sm:$0xff]  ;;  %vm3080_vm9 = vcmp.gt.f32.partialorder %v2067_v37, %v2064_v43 }
  0xa3   : > { %3220 = vst [vmem:[#allocation55_spill] sm:$0xff] %v2074_v48  ;;  %3221 = vst [vmem:[#allocation56_spill] sm:$0xff] %v2077_v49  ;;  %v2099_v62 = vsel %vm427_vm0, %v401_v61, %v1661_v34  ;;  %v2105_v51 = vsel %vm426_vm1, %v398_v47, %v1589_v18  ;;  %898 = vperm.xlu1 %1273, %v1244_v0   ;;  %895 = vperm.xlu0 %1272, %v1243_v26   ;;  %v2143_v18 = vld [vmem:[%s1525_s16 + $0x12] sm:$0xff]  ;;  %v2153_v47 = vld [vmem:[%s1525_s16 + $0xa] sm:$0xff] }
  0xa4   : > { %3222 = vst [vmem:[#allocation57_spill] sm:$0xff] %v2090_v57  ;;  %3223 = vst [vmem:[#allocation58_spill] sm:$0xff] %v2093_v58  ;;  %vm3088_vm0 = vcmp.gt.f32.partialorder %v2040_v35, %v2047_v44  ;;  %vm3087_vm1 = vcmp.gt.f32.partialorder %v2057_v42, %v2054_v36  ;;  %vm3079_vm8 = vcmp.gt.f32.partialorder %v2077_v49, %v2074_v48 }
  0xa5   : > { %vm3085_vm12 = vcmp.gt.f32.partialorder %v2093_v58, %v2090_v57  ;;  %v2130_v4 = vsel %vm673_vm14, %v1973_v60, %v1970_v59  ;;  %v2140_v6 = vsel %vm3088_vm0, %v2040_v35, %v2047_v44  ;;  %v2150_v34 = vsel %vm3087_vm1, %v2057_v42, %v2054_v36  ;;  %3227 = vst [vmem:[#allocation62_spill] sm:$0xff] %v2153_v47  ;;  %v2163_v44 = vld [vmem:[%s1686_s15 + $0x39] sm:$0xff]  ;;  %v2173_v42 = vld [vmem:[%s1686_s15 + $0x31] sm:$0xff] }
  0xa6   : > { %3224 = vst [vmem:[#allocation59_spill] sm:$0xff] %v2130_v4  ;;  %3226 = vst [vmem:[#allocation61_spill] sm:$0xff] %v2150_v34  ;;  %v407_v0 = vpop.permute.xlu1 %406  ;;  %v404_v26 = vpop.permute.xlu0 %403  ;;  %v2160_v61 = vsel %vm676_vm13, %v1998_v2, %v1995_v1  ;;  %v2170_v36 = vsel %vm675_vm10, %v2008_v52, %v2005_v63  ;;  %v2180_v35 = vsel %vm678_vm15, %v2018_v25, %v2015_v53  ;;  %v2202_v53 = vld [vmem:[%s1686_s15 + $0x49] sm:$0xff] }
  0xa7   : > { %3228 = vst [vmem:[#allocation63_spill] sm:$0xff] %v2160_v61  ;;  %3229 = vst [vmem:[#allocation64_spill] sm:$0xff] %v2163_v44  ;;  %v2187_v1 = vsel %vm3080_vm9, %v2067_v37, %v2064_v43  ;;  %v2193_v63 = vsel %vm429_vm2, %v407_v0, %v1659_v33  ;;  %v2199_v52 = vsel %vm428_vm3, %v404_v26, %v1587_v17  ;;  %904 = vperm.xlu1 %1273, %v1246_v54   ;;  %v2205_v43 = vld [vmem:[%s1525_s16 + $0x22] sm:$0xff]  ;;  %v2259_v26 = vld [vmem:[%s1531_s19 + $0x12] sm:$0xff] }
  0xa8   : > { %3230 = vst [vmem:[#allocation65_spill] sm:$0xff] %v2170_v36  ;;  %3231 = vst [vmem:[#allocation66_spill] sm:$0xff] %v2173_v42  ;;  %901 = vperm.xlu0 %1272, %v1245_v3   ;;  %v2212_v7 = vsel %vm3079_vm8, %v2077_v49, %v2074_v48  ;;  %vm3093_vm2 = vcmp.gt.f32.partialorder %v2133_v5, %v2130_v4  ;;  %v2230_v17 = vsel %vm677_vm11, %v2037_v46, %v2034_v45  ;;  %v2233_v33 = vld [vmem:[%s1686_s15 + $0x41] sm:$0xff]  ;;  %v2249_v3 = vld [vmem:[%s1525_s16 + $0x32] sm:$0xff] }
  0xa9   : > { %3232 = vst [vmem:[#allocation67_spill] sm:$0xff] %v2180_v35  ;;  %3233 = vst [vmem:[#allocation68_spill] sm:$0xff] %v2187_v1  ;;  %vm3086_vm3 = vcmp.gt.f32.partialorder %v2143_v18, %v2140_v6  ;;  %vm3092_vm8 = vcmp.gt.f32.partialorder %v2153_v47, %v2150_v34  ;;  %vm3099_vm9 = vcmp.gt.f32.partialorder %v2163_v44, %v2160_v61 }
  0xaa   : > { %3234 = vst [vmem:[#allocation69_spill] sm:$0xff] %v2202_v53  ;;  %3235 = vst [vmem:[#allocation70_spill] sm:$0xff] %v2205_v43  ;;  %v2246_v54 = vsel %vm3085_vm12, %v2093_v58, %v2090_v57  ;;  %v2256_v0 = vsel %vm3086_vm3, %v2143_v18, %v2140_v6  ;;  %v2266_v48 = vsel %vm3092_vm8, %v2153_v47, %v2150_v34  ;;  %v2269_v57 = vld [vmem:[%s1531_s19 + $0xa] sm:$0xff]  ;;  %v413_v58 = vpop.permute.xlu1 %412  ;;  %v410_v49 = vpop.permute.xlu0 %409 }
  0xab   : > { %3236 = vst [vmem:[#allocation71_spill] sm:$0xff] %v2212_v7  ;;  %3238 = vst [vmem:[#allocation73_spill] sm:$0xff] %v2230_v17  ;;  %vm3106_vm12 = vcmp.gt.f32.partialorder %v2173_v42, %v2170_v36  ;;  %vm3124_vm3 = vcmp.gt.f32.partialorder %v2202_v53, %v2180_v35  ;;  %vm3102_vm1 = vcmp.gt.f32.partialorder %v2205_v43, %v2187_v1  ;;  %910 = vperm.xlu1 %1273, %v1248_v9   ;;  %v1250_v47 = vld [vmem:[%s2997_s4 + $0x288] sm:$0xff]  ;;  %v2343_v9 = vld [vmem:[%s1531_s19 + $0x1a] sm:$0xff] }
  0xac   : > { %3239 = vst [vmem:[#allocation74_spill] sm:$0xff] %v2233_v33  ;;  %3240 = vst [vmem:[#allocation75_spill] sm:$0xff] %v2246_v54  ;;  %vm3101_vm0 = vcmp.gt.f32.partialorder %v2215_v8, %v2212_v7  ;;  %v2283_v37 = vsel %vm431_vm4, %v413_v58, %v1777_v55  ;;  %v2289_v34 = vsel %vm430_vm5, %v410_v49, %v1779_v56  ;;  %907 = vperm.xlu0 %1272, %v1247_v10   ;;  %v2319_v49 = vld [vmem:[%s1525_s16 + $0x42] sm:$0xff] }
  0xad   : > { %3241 = vst [vmem:[#allocation76_spill] sm:$0xff] %v2249_v3  ;;  %vm3123_vm8 = vcmp.gt.f32.partialorder %v2233_v33, %v2230_v17  ;;  %v2301_v11 = vsel %vm3093_vm2, %v2133_v5, %v2130_v4  ;;  %vm3112_vm4 = vcmp.gt.f32.partialorder %v2249_v3, %v2246_v54  ;;  %v2316_v14 = vsel %vm3099_vm9, %v2163_v44, %v2160_v61  ;;  %v2326_v55 = vld [vmem:[%s1531_s19 + $0x22] sm:$0xff]  ;;  %v2354_v61 = vld [vmem:[%s1525_s16 + $0x13] sm:$0xff]  ;;  %v2364_v4 = vld [vmem:[%s1525_s16 + $0xb] sm:$0xff] }
  0xae   : > { %3242 = vst [vmem:[#allocation77_spill] sm:$0xff] %v2301_v11  ;;  %3244 = vst [vmem:[#allocation79_spill] sm:$0xff] %v2316_v14  ;;  %vm913_vm5 = vcmp.gt.f32.partialorder %v2259_v26, %v2256_v0  ;;  %vm3107_vm2 = vcmp.gt.f32.partialorder %v2269_v57, %v2266_v48  ;;  %v2333_v56 = vsel %vm3102_vm1, %v2205_v43, %v2187_v1  ;;  %v419_v5 = vpop.permute.xlu1 %418 }
  0xaf   : > { %3245 = vst [vmem:[#allocation80_spill] sm:$0xff] %v2319_v49  ;;  %v2340_v58 = vsel %vm3101_vm0, %v2215_v8, %v2212_v7  ;;  %v2351_v10 = vsel %vm913_vm5, %v2259_v26, %v2256_v0  ;;  %v2361_v44 = vsel %vm3107_vm2, %v2269_v57, %v2266_v48  ;;  %v416_v7 = vpop.permute.xlu0 %415  ;;  %vm3110_vm9 = vcmp.gt.f32.partialorder %v2304_v12, %v2301_v11  ;;  %v3367_v0 = vld [vmem:[#allocation53_spill] sm:$0xff] }
  0xb0   : > { %v2373_v8 = vsel %vm3106_vm12, %v2173_v42, %v2170_v36  ;;  %vm994_vm0 = vcmp.gt.f32.partialorder %v2354_v61, %v2351_v10  ;;  %vm3116_vm1 = vcmp.gt.f32.partialorder %v2364_v4, %v2361_v44  ;;  %v2383_v1 = vsel %vm433_vm6, %v419_v5, %v1871_v40  ;;  %967 = vperm.xlu1 %1273, %v1250_v47   ;;  %v2392_v36 = vld [vmem:[%s1525_s16 + $0x3a] sm:$0xff]  ;;  %v2443_v47 = vld [vmem:[%s1531_s19 + $0x2a] sm:$0xff] }
  0xb1   : > { %3246 = vst [vmem:[#allocation81_spill] sm:$0xff] %v2373_v8  ;;  %v2389_v43 = vsel %vm432_vm7, %v416_v7, %v1873_v41  ;;  %964 = vperm.xlu0 %1272, %v1249_v13   ;;  %3247 = vst [vmem:[#allocation82_spill] sm:$0xff] %v2392_v36  ;;  %vm1023_vm12 = vcmask 64512   ;;  %v1004_v15 = vsel %vm994_vm0, %v2354_v61, %v2351_v10  ;;  %vm3126_vm6 = vcmp.gt.f32.partialorder %v2319_v49, %v2316_v14  ;;  %v2455_v13 = vld [vmem:[%s1525_s16 + $0x23] sm:$0xff]  ;;  %v2465_v42 = vld [vmem:[%s1525_s16 + $0x1b] sm:$0xff] }
  0xb2   : > { %vm3114_vm7 = vcmp.gt.f32.partialorder %v2326_v55, %v2333_v56  ;;  %vm3113_vm2 = vcmp.gt.f32.partialorder %v2343_v9, %v2340_v58  ;;  %1025 = vst.msk [vmem:[%s2399_s7 + $0x8] sm:$0xff] %vm1023_vm12, %v1004_v15  ;;  %v1003_v40 = vsel %vm3116_vm1, %v2364_v4, %v2361_v44  ;;  %v2433_v41 = vsel %vm3112_vm4, %v2249_v3, %v2246_v54  ;;  %v3373_v61 = vld [vmem:[#allocation68_spill] sm:$0xff] }
  0xb3   : > { %v2440_v5 = vsel %vm3110_vm9, %v2304_v12, %v2301_v11  ;;  %1024 = vst.msk [vmem:[%s2399_s7] sm:$0xff] %vm1023_vm12, %v1003_v40  ;;  %v2452_v7 = vsel %vm3114_vm7, %v2326_v55, %v2333_v56  ;;  %v2462_v15 = vsel %vm3113_vm2, %v2343_v9, %v2340_v58  ;;  %v425_v40 = vpop.permute.xlu1 %424  ;;  %v422_v11 = vpop.permute.xlu0 %421  ;;  %vm3125_vm9 = vcmp.gt.f32.partialorder %v2392_v36, %v2373_v8 }
  0xb4   : > { %v2474_v12 = vsel %vm3124_vm3, %v2202_v53, %v2180_v35  ;;  %vm996_vm4 = vcmp.gt.f32.partialorder %v2455_v13, %v2452_v7  ;;  %vm995_vm2 = vcmp.gt.f32.partialorder %v2465_v42, %v2462_v15  ;;  %vm3249_vm7 = vcmp.gt.f32.partialorder %v1605_v22, %v1598_v21  ;;  %973 = vperm.xlu1 %1273, %v1252_v16   ;;  %v1254_v35 = vld [vmem:[%s2997_s4 + $0x2a8] sm:$0xff]  ;;  %v2496_v53 = vld [vmem:[%s1525_s16 + $0x52] sm:$0xff]  ;;  %v1253_v22 = vld [vmem:[%s2997_s4 + $0x2a0] sm:$0xff] }
  0xb5   : > { %3248 = vst [vmem:[#allocation83_spill] sm:$0xff] %v2474_v12  ;;  %v2484_v54 = vsel %vm3249_vm7, %v425_v40, %v1975_v38  ;;  %vm3250_vm1 = vcmp.gt.f32.partialorder %v1611_v24, %v1608_v23  ;;  %970 = vperm.xlu0 %1272, %v1251_v19   ;;  %3251 = vst [vmem:[#allocation84_spill] sm:$0xff] %v2496_v53  ;;  %v1006_v21 = vsel %vm996_vm4, %v2455_v13, %v2452_v7  ;;  %v2514_v24 = vld [vmem:[%s1525_s16 + $0x4a] sm:$0xff]  ;;  %v2521_v38 = vld [vmem:[%s1531_s19 + $0x42] sm:$0xff] }
  0xb6   : > { %v2490_v3 = vsel %vm3250_vm1, %v422_v11, %v1977_v39  ;;  %v2511_v23 = vsel %vm3123_vm8, %v2233_v33, %v2230_v17  ;;  %3253 = vst [vmem:[#allocation86_spill] sm:$0xff] %v2514_v24  ;;  %vm3131_vm1 = vcmp.gt.f32.partialorder %v2419_v20, %v2433_v41  ;;  %vm3128_vm7 = vcmp.gt.f32.partialorder %v2443_v47, %v2440_v5  ;;  %v2545_v19 = vld [vmem:[%s1531_s19 + $0x3a] sm:$0xff]  ;;  %v2567_v33 = vld [vmem:[%s1525_s16 + $0x2b] sm:$0xff] }
  0xb7   : > { %3252 = vst [vmem:[#allocation85_spill] sm:$0xff] %v2511_v23  ;;  %3254 = vst [vmem:[#allocation87_spill] sm:$0xff] %v2521_v38  ;;  %v1005_v39 = vsel %vm995_vm2, %v2465_v42, %v2462_v15  ;;  %v2535_v11 = vsel %vm3126_vm6, %v2319_v49, %v2316_v14  ;;  %v2542_v16 = vsel %vm3125_vm9, %v2392_v36, %v2373_v8  ;;  %v479_v8 = vpop.permute.xlu0 %478  ;;  %v3386_v7 = vld [vmem:[#allocation76_spill] sm:$0xff]  ;;  %v3387_v13 = vld [vmem:[#allocation75_spill] sm:$0xff] }
  0xb8   : > { %1027 = vst.msk [vmem:[%s2399_s7 + $0x18] sm:$0xff] %vm1023_vm12, %v1006_v21  ;;  %3255 = vst [vmem:[#allocation88_spill] sm:$0xff] %v2535_v11  ;;  %v2554_v40 = vsel %vm3131_vm1, %v2419_v20, %v2433_v41  ;;  %v2557_v21 = vld [vmem:[%s1525_s16 + $0x33] sm:$0xff]  ;;  %v2564_v17 = vsel %vm3128_vm7, %v2443_v47, %v2440_v5  ;;  %vm3134_vm8 = vcmp.gt.f32.partialorder %v2496_v53, %v2474_v12  ;;  %979 = vperm.xlu1 %1273, %v1254_v35   ;;  %v3389_v15 = vld [vmem:[#allocation78_spill] sm:$0xff] }
  0xb9   : > { %3256 = vst [vmem:[#allocation89_spill] sm:$0xff] %v2542_v16  ;;  %3257 = vst [vmem:[#allocation90_spill] sm:$0xff] %v2545_v19  ;;  %vm998_vm3 = vcmp.gt.f32.partialorder %v2557_v21, %v2554_v40  ;;  %vm3160_vm9 = vcmp.gt.f32.partialorder %v2567_v33, %v2564_v17  ;;  %vm3262_vm6 = vcmp.gt.f32.partialorder %v1637_v28, %v1634_v27  ;;  %976 = vperm.xlu0 %1272, %v1253_v22   ;;  %v1256_v27 = vld [vmem:[%s2997_s4 + $0x2b8] sm:$0xff]  ;;  %v1255_v28 = vld [vmem:[%s2997_s4 + $0x2b0] sm:$0xff] }
  0xba   : > { %1026 = vst.msk [vmem:[%s2399_s7 + $0x10] sm:$0xff] %vm1023_vm12, %v1005_v39  ;;  %3258 = vst [vmem:[#allocation91_spill] sm:$0xff] %v2554_v40  ;;  %v482_v39 = vpop.permute.xlu1 %481  ;;  %vm3263_vm7 = vcmp.gt.f32.partialorder %v1647_v30, %v1644_v29  ;;  %v1008_v49 = vsel %vm998_vm3, %v2557_v21, %v2554_v40  ;;  %vm3139_vm1 = vcmp.gt.f32.partialorder %v2545_v19, %v2542_v16  ;;  %v2605_v29 = vld [vmem:[%s1531_s19 + $0x52] sm:$0xff] }
  0xbb   : > { %3259 = vst [vmem:[#allocation92_spill] sm:$0xff] %v2557_v21  ;;  %3260 = vst [vmem:[#allocation93_spill] sm:$0xff] %v2564_v17  ;;  %v2579_v36 = vsel %vm3262_vm6, %v482_v39, %v2099_v62  ;;  %v2585_v14 = vsel %vm3263_vm7, %v479_v8, %v2105_v51  ;;  %vm3133_vm6 = vcmp.gt.f32.partialorder %v2514_v24, %v2511_v23  ;;  %v2629_v62 = vld [vmem:[%s1531_s19 + $0x4a] sm:$0xff]  ;;  %v2651_v39 = vld [vmem:[%s1525_s16 + $0x3b] sm:$0xff] }
  0xbc   : > { %3261 = vst [vmem:[#allocation94_spill] sm:$0xff] %v2567_v33  ;;  %vm3135_vm7 = vcmp.gt.f32.partialorder %v2521_v38, %v2535_v11  ;;  %3264 = vst [vmem:[#allocation95_spill] sm:$0xff] %v2605_v29  ;;  %v1007_v30 = vsel %vm3160_vm9, %v2567_v33, %v2564_v17  ;;  %v2619_v51 = vsel %vm3134_vm8, %v2496_v53, %v2474_v12  ;;  %v3273_v12 = vld [vmem:[#allocation3_spill] sm:$0xff]  ;;  %v3274_v53 = vld [vmem:[#allocation2_spill] sm:$0xff]  ;;  %985 = vperm.xlu1 %1273, %v1256_v27  }
  0xbd   : > { %1029 = vst.msk [vmem:[%s2399_s7 + $0x28] sm:$0xff] %vm1023_vm12, %v1008_v49  ;;  %3265 = vst [vmem:[#allocation96_spill] sm:$0xff] %v2619_v51  ;;  %v2626_v35 = vsel %vm3133_vm6, %v2514_v24, %v2511_v23  ;;  %v2638_v8 = vsel %vm3135_vm7, %v2521_v38, %v2535_v11  ;;  %v2641_v49 = vld [vmem:[%s1525_s16 + $0x43] sm:$0xff]  ;;  %v2648_v22 = vsel %vm3139_vm1, %v2545_v19, %v2542_v16  ;;  %v485_v23 = vpop.permute.xlu0 %484  ;;  %982 = vperm.xlu0 %1272, %v1255_v28   ;;  %v3280_v27 = vld [vmem:[#allocation5_spill] sm:$0xff] }
  0xbe   : > { %3266 = vst [vmem:[#allocation97_spill] sm:$0xff] %v2626_v35  ;;  %3267 = vst [vmem:[#allocation98_spill] sm:$0xff] %v2629_v62  ;;  %vm3145_vm6 = vcmp.gt.f32.partialorder %v2641_v49, %v2638_v8  ;;  %vm3143_vm8 = vcmp.gt.f32.partialorder %v2651_v39, %v2648_v22  ;;  %vm3272_vm7 = vcmp.gt.f32.partialorder %v1657_v32, %v1654_v31  ;;  %v1258_v11 = vld [vmem:[%s2997_s4 + $0x2c8] sm:$0xff]  ;;  %v1257_v31 = vld [vmem:[%s2997_s4 + $0x2c0] sm:$0xff] }
  0xbf   : > { %1028 = vst.msk [vmem:[%s2399_s7 + $0x20] sm:$0xff] %vm1023_vm12, %v1007_v30  ;;  %3268 = vst [vmem:[#allocation99_spill] sm:$0xff] %v2638_v8  ;;  %v488_v30 = vpop.permute.xlu1 %487  ;;  %vm3275_vm1 = vcmp.gt.f32.partialorder %v3273_v12, %v3274_v53  ;;  %v1010_v19 = vsel %vm3145_vm6, %v2641_v49, %v2638_v8  ;;  %v1009_v32 = vsel %vm3143_vm8, %v2651_v39, %v2648_v22  ;;  %v2707_v12 = vld [vmem:[%s1525_s16 + $0x4b] sm:$0xff]  ;;  %v3355_v38 = vld [vmem:[#allocation50_spill] sm:$0xff] }
  0xc0   : > { %3269 = vst [vmem:[#allocation100_spill] sm:$0xff] %v2641_v49  ;;  %3270 = vst [vmem:[#allocation101_spill] sm:$0xff] %v2648_v22  ;;  %v530_v24 = vsel %vm3272_vm7, %v488_v30, %v2193_v63  ;;  %v529_v16 = vsel %vm3275_vm1, %v485_v23, %v2199_v52  ;;  %vm3144_vm7 = vcmp.gt.f32.partialorder %v2605_v29, %v2619_v51  ;;  %v2697_v52 = vld [vmem:[%s1525_s16 + $0x53] sm:$0xff]  ;;  %991 = vperm.xlu1 %1273, %v1258_v11   ;;  %v3358_v17 = vld [vmem:[#allocation51_spill] sm:$0xff] }
  0xc1   : > { %3271 = vst [vmem:[#allocation102_spill] sm:$0xff] %v2651_v39  ;;  %vm3147_vm1 = vcmp.gt.f32.partialorder %v2629_v62, %v2626_v35  ;;  %1031 = vst.msk [vmem:[%s2399_s7 + $0x38] sm:$0xff] %vm1023_vm12, %v1010_v19  ;;  %v2694_v63 = vsel %vm3144_vm7, %v2605_v29, %v2619_v51  ;;  %v491_v19 = vpop.permute.xlu0 %490  ;;  %v3281_v28 = vld [vmem:[#allocation4_spill] sm:$0xff]  ;;  %v3284_v51 = vld [vmem:[#allocation6_spill] sm:$0xff]  ;;  %988 = vperm.xlu0 %1272, %v1257_v31  }
  0xc2   : > { %1030 = vst.msk [vmem:[%s2399_s7 + $0x30] sm:$0xff] %vm1023_vm12, %v1009_v32  ;;  %3276 = vst [vmem:[#allocation3_spill] sm:$0xff] %v2694_v63  ;;  %v2704_v53 = vsel %vm3147_vm1, %v2629_v62, %v2626_v35  ;;  %vm3155_vm8 = vcmp.gt.f32.partialorder %v2697_v52, %v2694_v63  ;;  %vm3282_vm6 = vcmp.gt.f32.partialorder %v3280_v27, %v3281_v28  ;;  %v3283_v32 = vld [vmem:[#allocation7_spill] sm:$0xff]  ;;  %v3286_v11 = vld [vmem:[#allocation9_spill] sm:$0xff] }
  0xc3   : > { %3277 = vst [vmem:[#allocation2_spill] sm:$0xff] %v2697_v52  ;;  %3278 = vst [vmem:[#allocation103_spill] sm:$0xff] %v2704_v53  ;;  %v494_v23 = vpop.permute.xlu1 %493  ;;  %vm3152_vm7 = vcmp.gt.f32.partialorder %v2707_v12, %v2704_v53  ;;  %vm3285_vm1 = vcmp.gt.f32.partialorder %v3283_v32, %v3284_v51  ;;  %v1012_v62 = vsel %vm3155_vm8, %v2697_v52, %v2694_v63  ;;  %v3287_v31 = vld [vmem:[#allocation8_spill] sm:$0xff]  ;;  %v3290_v27 = vld [vmem:[#allocation10_spill] sm:$0xff] }
  0xc4   : > { %3279 = vst [vmem:[#allocation104_spill] sm:$0xff] %v2707_v12  ;;  %v532_v30 = vsel %vm3282_vm6, %v494_v23, %v2283_v37  ;;  %v531_v35 = vsel %vm3285_vm1, %v491_v19, %v2289_v34  ;;  %1033 = vst.msk [vmem:[%s2399_s7 + $0x48] sm:$0xff] %vm1023_vm12, %v1012_v62  ;;  %v1011_v37 = vsel %vm3152_vm7, %v2707_v12, %v2704_v53  ;;  %v3289_v19 = vld [vmem:[#allocation11_spill] sm:$0xff]  ;;  %v3292_v63 = vld [vmem:[#allocation12_spill] sm:$0xff] }
  0xc5   : > { %1032 = vst.msk [vmem:[%s2399_s7 + $0x40] sm:$0xff] %vm1023_vm12, %v1011_v37  ;;  %v497_v34 = vpop.permute.xlu0 %496  ;;  %vm3288_vm6 = vcmp.gt.f32.partialorder %v3286_v11, %v3287_v31  ;;  %vm3291_vm1 = vcmp.gt.f32.partialorder %v3289_v19, %v3290_v27  ;;  %v3293_v52 = vld [vmem:[#allocation13_spill] sm:$0xff]  ;;  %v3295_v37 = vld [vmem:[#allocation15_spill] sm:$0xff]  ;;  %v3296_v12 = vld [vmem:[#allocation14_spill] sm:$0xff] }
  0xc6   : > { %v533_v62 = vsel %vm3291_vm1, %v497_v34, %v2389_v43  ;;  %vm3294_vm7 = vcmp.gt.f32.partialorder %v3292_v63, %v3293_v52  ;;  %vm3297_vm8 = vcmp.gt.f32.partialorder %v3295_v37, %v3296_v12  ;;  %v3301_v43 = vld [vmem:[#allocation19_spill] sm:$0xff]  ;;  %v3302_v34 = vld [vmem:[#allocation18_spill] sm:$0xff]  ;;  %v3305_v52 = vld [vmem:[#allocation20_spill] sm:$0xff] }
  0xc7   : > { %v500_v51 = vpop.permute.xlu1 %499  ;;  %vm3303_vm1 = vcmp.gt.f32.partialorder %v3301_v43, %v3302_v34  ;;  %v3307_v12 = vld [vmem:[#allocation23_spill] sm:$0xff]  ;;  %v3310_v8 = vld [vmem:[#allocation24_spill] sm:$0xff]  ;;  %v3316_v34 = vld [vmem:[#allocation29_spill] sm:$0xff] }
  0xc8   : > { %v534_v23 = vsel %vm3288_vm6, %v500_v51, %v2383_v1  ;;  %v3298_v1 = vld [vmem:[#allocation17_spill] sm:$0xff]  ;;  %v3299_v51 = vld [vmem:[#allocation16_spill] sm:$0xff]  ;;  %v3361_v33 = vld [vmem:[#allocation62_spill] sm:$0xff] }
  0xc9   : > { %v503_v32 = vpop.permute.xlu0 %502  ;;  %vm3300_vm6 = vcmp.gt.f32.partialorder %v3298_v1, %v3299_v51  ;;  %v3311_v1 = vld [vmem:[#allocation25_spill] sm:$0xff]  ;;  %v3314_v51 = vld [vmem:[#allocation26_spill] sm:$0xff]  ;;  %v3317_v49 = vld [vmem:[#allocation28_spill] sm:$0xff] }
  0xca   : > { %v535_v29 = vsel %vm3297_vm8, %v503_v32, %v2490_v3  ;;  %v3308_v3 = vld [vmem:[#allocation22_spill] sm:$0xff]  ;;  %v3362_v40 = vld [vmem:[#allocation61_spill] sm:$0xff] }
  0xcb   : > { %v506_v28 = vpop.permute.xlu1 %505  ;;  %vm3309_vm8 = vcmp.gt.f32.partialorder %v3307_v12, %v3308_v3  ;;  %v3322_v12 = vld [vmem:[#allocation33_spill] sm:$0xff]  ;;  %v3323_v3 = vld [vmem:[#allocation32_spill] sm:$0xff] }
  0xcc   : > { %v536_v53 = vsel %vm3294_vm7, %v506_v28, %v2484_v54  ;;  %v3304_v54 = vld [vmem:[#allocation21_spill] sm:$0xff] }
  0xcd   : > { %v560_v11 = vpop.permute.xlu0 %559  ;;  %vm3306_vm7 = vcmp.gt.f32.partialorder %v3304_v54, %v3305_v52  ;;  %v3320_v54 = vld [vmem:[#allocation30_spill] sm:$0xff] }
  0xce   : > { %v608_v19 = vsel %vm3303_vm1, %v560_v11, %v2585_v14  ;;  %vm3318_vm1 = vcmp.gt.f32.partialorder %v3316_v34, %v3317_v49 }
  0xcf   : > { %v563_v22 = vpop.permute.xlu1 %562 }
  0xd0   : > { %v609_v31 = vsel %vm3300_vm6, %v563_v22, %v2579_v36  ;;  %vm3312_vm6 = vcmp.gt.f32.partialorder %v3310_v8, %v3311_v1  ;;  %v3313_v22 = vld [vmem:[#allocation27_spill] sm:$0xff] }
  0xd1   : > { %v566_v63 = vpop.permute.xlu0 %565  ;;  %vm3315_vm9 = vcmp.gt.f32.partialorder %v3313_v22, %v3314_v51  ;;  %v3328_v22 = vld [vmem:[#allocation37_spill] sm:$0xff]  ;;  %v3329_v51 = vld [vmem:[#allocation36_spill] sm:$0xff] }
  0xd2   : > { %v610_v32 = vsel %vm3309_vm8, %v566_v63, %v529_v16  ;;  %vm3324_vm8 = vcmp.gt.f32.partialorder %v3322_v12, %v3323_v3  ;;  %v3338_v12 = vld [vmem:[#allocation42_spill] sm:$0xff] }
  0xd3   : > { %v569_v27 = vpop.permute.xlu1 %568 }
  0xd4   : > { %v611_v28 = vsel %vm3306_vm7, %v569_v27, %v530_v24  ;;  %v3319_v27 = vld [vmem:[#allocation31_spill] sm:$0xff] }
  0xd5   : > { %v572_v39 = vpop.permute.xlu0 %571  ;;  %vm3321_vm7 = vcmp.gt.f32.partialorder %v3319_v27, %v3320_v54  ;;  %v3334_v27 = vld [vmem:[#allocation41_spill] sm:$0xff]  ;;  %v3335_v54 = vld [vmem:[#allocation40_spill] sm:$0xff] }
  0xd6   : > { %v612_v14 = vsel %vm3315_vm9, %v572_v39, %v531_v35  ;;  %vm3330_vm9 = vcmp.gt.f32.partialorder %v3328_v22, %v3329_v51 }
  0xd7   : > { %v575_v37 = vpop.permute.xlu1 %574 }
  0xd8   : > { %v613_v36 = vsel %vm3312_vm6, %v575_v37, %v532_v30  ;;  %v3325_v30 = vld [vmem:[#allocation35_spill] sm:$0xff]  ;;  %v3326_v37 = vld [vmem:[#allocation34_spill] sm:$0xff] }
  0xd9   : > { %v578_v43 = vpop.permute.xlu0 %577  ;;  %vm3327_vm6 = vcmp.gt.f32.partialorder %v3325_v30, %v3326_v37  ;;  %v3340_v30 = vld [vmem:[#allocation44_spill] sm:$0xff] }
  0xda   : > { %v614_v16 = vsel %vm3321_vm7, %v578_v43, %v533_v62  ;;  %vm3336_vm7 = vcmp.gt.f32.partialorder %v3334_v27, %v3335_v54 }
  0xdb   : > { %v581_v11 = vpop.permute.xlu1 %580 }
  0xdc   : > { %v615_v24 = vsel %vm3318_vm1, %v581_v11, %v534_v23  ;;  %v3331_v23 = vld [vmem:[#allocation39_spill] sm:$0xff]  ;;  %v3332_v11 = vld [vmem:[#allocation38_spill] sm:$0xff] }
  0xdd   : > { %v584_v52 = vpop.permute.xlu0 %583  ;;  %vm3333_vm1 = vcmp.gt.f32.partialorder %v3331_v23, %v3332_v11 }
  0xde   : > { %v616_v35 = vsel %vm3327_vm6, %v584_v52, %v535_v29  ;;  %vm3341_vm6 = vcmp.gt.f32.partialorder %v1963_v50, %v3340_v30 }
  0xdf   : > { %v587_v63 = vpop.permute.xlu1 %586 }
  0xe0   : > { %v617_v8 = vsel %vm3324_vm8, %v587_v63, %v536_v53  ;;  %v3337_v63 = vld [vmem:[#allocation43_spill] sm:$0xff] }
  0xe1   : > { %v641_v1 = vpop.permute.xlu0 %640  ;;  %vm3339_vm8 = vcmp.gt.f32.partialorder %v3337_v63, %v3338_v12 }
  0xe2   : > { %v689_v62 = vsel %vm3333_vm1, %v641_v1, %v608_v19 }
  0xe3   : > { %v644_v39 = vpop.permute.xlu1 %643 }
  0xe4   : > { %v690_v49 = vsel %vm3330_vm9, %v644_v39, %v609_v31  ;;  %vm3365_vm9 = vcmp.gt.f32.partialorder %v2364_v4, %v2361_v44  ;;  %v3375_v44 = vld [vmem:[#allocation72_spill] sm:$0xff]  ;;  %v3376_v4 = vld [vmem:[#allocation71_spill] sm:$0xff] }
  0xe5   : > { %v647_v34 = vpop.permute.xlu0 %646 }
  0xe6   : > { %v691_v29 = vsel %vm3339_vm8, %v647_v34, %v610_v32  ;;  %vm3378_vm8 = vcmp.gt.f32.partialorder %v2326_v55, %v2333_v56  ;;  %v3383_v56 = vld [vmem:[#allocation60_spill] sm:$0xff] }
  0xe7   : > { %v650_v43 = vpop.permute.xlu1 %649 }
  0xe8   : > { %v692_v53 = vsel %vm3336_vm7, %v650_v43, %v611_v28  ;;  %vm3377_vm7 = vcmp.gt.f32.partialorder %v3375_v44, %v3376_v4  ;;  %v3427_v4 = vld [vmem:[#allocation69_spill] sm:$0xff] }
  0xe9   : > { %v653_v3 = vpop.permute.xlu0 %652 }
  0xea   : > { %v2803_v19 = vsel %vm673_vm14, %v653_v3, %v612_v14  ;;  %vm3363_vm14 = vcmp.gt.f32.partialorder %v3361_v33, %v3362_v40 }
  0xeb   : > { %v656_v52 = vpop.permute.xlu1 %655 }
  0xec   : > { %v2798_v31 = vsel %vm3341_vm6, %v656_v52, %v613_v36  ;;  %vm3379_vm6 = vcmp.gt.f32.partialorder %v2343_v9, %v2340_v58  ;;  %v3384_v58 = vld [vmem:[#allocation59_spill] sm:$0xff] }
  0xed   : > { %v659_v39 = vpop.permute.xlu0 %658 }
  0xee   : > { %v2813_v51 = vsel %vm675_vm10, %v659_v39, %v614_v16 }
  0xef   : > { %v662_v37 = vpop.permute.xlu1 %661  ;;  %3346 = vst [vmem:[#allocation4_spill] sm:$0xff] %v2813_v51 }
  0xf0   : > { %v2808_v1 = vsel %vm676_vm13, %v662_v37, %v615_v24  ;;  %vm3360_vm13 = vcmp.gt.f32.partialorder %v2143_v18, %v2140_v6 }
  0xf1   : > { %3343 = vst [vmem:[#allocation5_spill] sm:$0xff] %v2808_v1  ;;  %v665_v36 = vpop.permute.xlu0 %664  ;;  %v3357_v1 = vld [vmem:[#allocation52_spill] sm:$0xff] }
  0xf2   : > { %v2823_v60 = vsel %vm677_vm11, %v665_v36, %v616_v35  ;;  %vm3359_vm11 = vcmp.gt.f32.partialorder %v3357_v1, %v3358_v17  ;;  %v3370_v1 = vld [vmem:[#allocation55_spill] sm:$0xff] }
  0xf3   : > { %v668_v50 = vpop.permute.xlu1 %667  ;;  %3349 = vst [vmem:[#allocation6_spill] sm:$0xff] %v2823_v60 }
  0xf4   : > { %v2818_v59 = vsel %vm678_vm15, %v668_v50, %v617_v8  ;;  %vm3364_vm15 = vcmp.gt.f32.partialorder %v2269_v57, %v2266_v48  ;;  %v3372_v57 = vld [vmem:[#allocation70_spill] sm:$0xff] }
  0xf5   : > { %3348 = vst [vmem:[#allocation7_spill] sm:$0xff] %v2818_v59  ;;  %v722_v14 = vpop.permute.xlu0 %721  ;;  %v3354_v59 = vld [vmem:[#allocation49_spill] sm:$0xff] }
  0xf6   : > { %vm3356_vm10 = vcmp.gt.f32.partialorder %v3354_v59, %v3355_v38 }
  0xf7   : > { %v725_v2 = vpop.permute.xlu1 %724 }
  0xf8   : > { %v771_v51 = vsel %vm3356_vm10, %v725_v2, %v690_v49  ;;  %v3366_v49 = vld [vmem:[#allocation54_spill] sm:$0xff] }
  0xf9   : > { %v728_v11 = vpop.permute.xlu0 %727  ;;  %vm3368_vm1 = vcmp.gt.f32.partialorder %v3366_v49, %v3367_v0  ;;  %v3416_v49 = vld [vmem:[#allocation90_spill] sm:$0xff]  ;;  %v3417_v0 = vld [vmem:[#allocation89_spill] sm:$0xff] }
  0xfb   : > { %v731_v24 = vpop.permute.xlu1 %730 }
  0xfc   : > { %v773_v26 = vsel %vm3368_vm1, %v731_v24, %v692_v53  ;;  %v3380_v24 = vld [vmem:[#allocation58_spill] sm:$0xff] }
  0xfd   : > { %v734_v34 = vpop.permute.xlu0 %733 }
  0xff   : > { %v737_v43 = vpop.permute.xlu1 %736 }
 0x101   : > { %v740_v27 = vpop.permute.xlu0 %739 }
 0x103   : > { %v743_v16 = vpop.permute.xlu1 %742 }
 0x105   : > { %v2827_v63 = vpop.permute.xlu0 %745 }
 0x106   : > { %3351 = vst [vmem:[#allocation8_spill] sm:$0xff] %v2827_v63 }
 0x107   : > { %v2825_v54 = vpop.permute.xlu1 %748 }
 0x108   : > { %3350 = vst [vmem:[#allocation9_spill] sm:$0xff] %v2825_v54 }
 0x109   : > { %v803_v8 = vpop.permute.xlu0 %802 }
 0x10b   : > { %v806_v25 = vpop.permute.xlu1 %805 }
 0x10d   : > { %v809_v52 = vpop.permute.xlu0 %808 }
 0x10f   : > { %v812_v12 = vpop.permute.xlu1 %811  ;;  %v3426_v44 = vld [vmem:[#allocation9_spill] sm:$0xff] }
 0x111   : > { %v815_v45 = vpop.permute.xlu0 %814 }
 0x113   : > { %v818_v3 = vpop.permute.xlu1 %817 }
 0x115   : > { %v821_v35 = vpop.permute.xlu0 %820 }
 0x117   : > { %v824_v46 = vpop.permute.xlu1 %823 }
 0x119   : > { %v2831_v37 = vpop.permute.xlu0 %826 }
 0x11a   : > { %3353 = vst [vmem:[#allocation10_spill] sm:$0xff] %v2831_v37  ;;  %v852_v37 = vsel %vm3360_vm13, %v806_v25, %v771_v51  ;;  %v3390_v25 = vld [vmem:[#allocation77_spill] sm:$0xff]  ;;  %vm3392_vm13 = vcmp.gt.f32.partialorder %v2419_v20, %v2433_v41  ;;  %v3403_v41 = vld [vmem:[#allocation4_spill] sm:$0xff] }
 0x11b   : > { %v2829_v30 = vpop.permute.xlu1 %829 }
 0x11c   : > { %3352 = vst [vmem:[#allocation11_spill] sm:$0xff] %v2829_v30  ;;  %v770_v30 = vsel %vm3359_vm11, %v722_v14, %v689_v62  ;;  %v3369_v62 = vld [vmem:[#allocation56_spill] sm:$0xff]  ;;  %vm3385_vm11 = vcmp.gt.f32.partialorder %v3383_v56, %v3384_v58  ;;  %v3440_v56 = vld [vmem:[#allocation86_spill] sm:$0xff]  ;;  %v3441_v58 = vld [vmem:[#allocation85_spill] sm:$0xff] }
 0x11d   : > { %v884_v28 = vpop.permute.xlu0 %883  ;;  %v851_v21 = vsel %vm3363_vm14, %v803_v8, %v770_v30  ;;  %v774_v9 = vsel %vm3385_vm11, %v734_v34, %v2803_v19  ;;  %vm3393_vm14 = vcmp.gt.f32.partialorder %v2443_v47, %v2440_v5  ;;  %v3404_v5 = vld [vmem:[#allocation66_spill] sm:$0xff]  ;;  %v3405_v47 = vld [vmem:[#allocation65_spill] sm:$0xff] }
 0x11e   : > { %v932_v6 = vsel %vm3364_vm15, %v884_v28, %v851_v21  ;;  %v3400_v28 = vld [vmem:[#allocation64_spill] sm:$0xff]  ;;  %vm3406_vm1 = vcmp.gt.f32.partialorder %v3404_v5, %v3405_v47 }
 0x11f   : > { %v887_v39 = vpop.permute.xlu1 %886 }
 0x120   : > { %v933_v17 = vsel %vm913_vm5, %v887_v39, %v852_v37  ;;  %vm3371_vm5 = vcmp.gt.f32.partialorder %v3369_v62, %v3370_v1  ;;  %v3396_v37 = vld [vmem:[#allocation94_spill] sm:$0xff]  ;;  %v3419_v1 = vld [vmem:[#allocation100_spill] sm:$0xff] }
 0x121   : > { %v890_v22 = vpop.permute.xlu0 %889  ;;  %v772_v48 = vsel %vm3371_vm5, %v728_v11, %v691_v29  ;;  %v3381_v11 = vld [vmem:[#allocation57_spill] sm:$0xff] }
 0x122   : > { %v853_v21 = vsel %vm3377_vm7, %v809_v52, %v772_v48  ;;  %vm3382_vm10 = vcmp.gt.f32.partialorder %v3380_v24, %v3381_v11  ;;  %vm3418_vm7 = vcmp.gt.f32.partialorder %v3416_v49, %v3417_v0  ;;  %v3420_v48 = vld [vmem:[#allocation99_spill] sm:$0xff]  ;;  %v3452_v52 = vld [vmem:[#allocation104_spill] sm:$0xff] }
 0x123   : > { %v893_v32 = vpop.permute.xlu1 %892  ;;  %v934_v29 = vsel %vm3379_vm6, %v890_v22, %v853_v21  ;;  %v775_v55 = vsel %vm3382_vm10, %v737_v43, %v2798_v31  ;;  %v776_v22 = vsel %vm3406_vm1, %v740_v27, %v3403_v41  ;;  %v3437_v24 = vld [vmem:[#allocation83_spill] sm:$0xff] }
 0x125   : > { %v896_v36 = vpop.permute.xlu0 %895 }
 0x127   : > { %v899_v50 = vpop.permute.xlu1 %898 }
 0x129   : > { %v902_v63 = vpop.permute.xlu0 %901 }
 0x12b   : > { %v905_v23 = vpop.permute.xlu1 %904 }
 0x12d   : > { %v908_v54 = vpop.permute.xlu0 %907 }
 0x12f   : > { %v911_v60 = vpop.permute.xlu1 %910 }
 0x131   : > { %v965_v38 = vpop.permute.xlu0 %964 }
 0x132   : > { %v1013_v40 = vsel %vm3365_vm9, %v965_v38, %v932_v6  ;;  %v3410_v6 = vld [vmem:[#allocation82_spill] sm:$0xff] }
 0x133   : > { %v968_v18 = vpop.permute.xlu1 %967  ;;  %1034 = vst.msk [vmem:[%s2850_s29] sm:$0xff] %vm1023_vm12, %v1013_v40  ;;  %v3414_v40 = vld [vmem:[#allocation88_spill] sm:$0xff] }
 0x134   : > { %v1014_v33 = vsel %vm994_vm0, %v968_v18, %v933_v17  ;;  %vm3374_vm0 = vcmp.gt.f32.partialorder %v3372_v57, %v3373_v61  ;;  %v3411_v18 = vld [vmem:[#allocation81_spill] sm:$0xff]  ;;  %v3422_v57 = vld [vmem:[#allocation102_spill] sm:$0xff] }
 0x135   : > { %1035 = vst.msk [vmem:[%s2850_s29 + $0x8] sm:$0xff] %vm1023_vm12, %v1014_v33  ;;  %v854_v10 = vsel %vm3374_vm0, %v812_v12, %v773_v26  ;;  %v971_v59 = vpop.permute.xlu0 %970  ;;  %vm3412_vm5 = vcmp.gt.f32.partialorder %v3410_v6, %v3411_v18  ;;  %v3413_v33 = vld [vmem:[#allocation87_spill] sm:$0xff]  ;;  %v3423_v61 = vld [vmem:[#allocation101_spill] sm:$0xff] }
 0x136   : > { %v935_v53 = vsel %vm3378_vm8, %v893_v32, %v854_v10  ;;  %v1015_v14 = vsel %vm995_vm2, %v971_v59, %v934_v29  ;;  %vm3391_vm2 = vcmp.gt.f32.partialorder %v3389_v15, %v3390_v25  ;;  %v3401_v32 = vld [vmem:[#allocation63_spill] sm:$0xff]  ;;  %v857_v38 = vsel %vm3412_vm5, %v821_v35, %v776_v22  ;;  %v3432_v29 = vld [vmem:[#allocation74_spill] sm:$0xff]  ;;  %v3447_v25 = vld [vmem:[#allocation97_spill] sm:$0xff] }
 0x137   : > { %v974_v51 = vpop.permute.xlu1 %973  ;;  %1036 = vst.msk [vmem:[%s2850_s29 + $0x10] sm:$0xff] %vm1023_vm12, %v1015_v14  ;;  %v855_v8 = vsel %vm3391_vm2, %v815_v45, %v774_v9  ;;  %v3399_v45 = vld [vmem:[#allocation5_spill] sm:$0xff]  ;;  %vm3402_vm9 = vcmp.gt.f32.partialorder %v3400_v28, %v3401_v32  ;;  %vm3415_vm0 = vcmp.gt.f32.partialorder %v3413_v33, %v3414_v40  ;;  %v938_v27 = vsel %vm3418_vm7, %v902_v63, %v857_v38  ;;  %v3425_v10 = vld [vmem:[#allocation7_spill] sm:$0xff]  ;;  %v3431_v63 = vld [vmem:[#allocation8_spill] sm:$0xff] }
 0x138   : > { %v1016_v2 = vsel %vm996_vm4, %v974_v51, %v935_v53  ;;  %vm3388_vm4 = vcmp.gt.f32.partialorder %v3386_v7, %v3387_v13  ;;  %v936_v19 = vsel %vm3393_vm14, %v896_v36, %v855_v8  ;;  %v777_v20 = vsel %vm3402_vm9, %v743_v16, %v3399_v45  ;;  %v3408_v36 = vld [vmem:[#allocation79_spill] sm:$0xff]  ;;  %v3430_v53 = vld [vmem:[#allocation6_spill] sm:$0xff]  ;;  %v3433_v51 = vld [vmem:[#allocation73_spill] sm:$0xff] }
 0x139   : > { %1037 = vst.msk [vmem:[%s2850_s29 + $0x18] sm:$0xff] %vm1023_vm12, %v1016_v2  ;;  %v856_v42 = vsel %vm3388_vm4, %v818_v3, %v775_v55  ;;  %v977_v34 = vpop.permute.xlu0 %976  ;;  %v3397_v3 = vld [vmem:[#allocation93_spill] sm:$0xff]  ;;  %vm3421_vm8 = vcmp.gt.f32.partialorder %v3419_v1, %v3420_v48  ;;  %vm3424_vm6 = vcmp.gt.f32.partialorder %v3422_v57, %v3423_v61  ;;  %vm3434_vm11 = vcmp.gt.f32.partialorder %v3432_v29, %v3433_v51  ;;  %v3435_v2 = vld [vmem:[#allocation11_spill] sm:$0xff]  ;;  %v3436_v14 = vld [vmem:[#allocation84_spill] sm:$0xff] }
 0x13a   : > { %v937_v31 = vsel %vm3392_vm13, %v899_v50, %v856_v42  ;;  %vm3398_vm15 = vcmp.gt.f32.partialorder %v3396_v37, %v3397_v3  ;;  %v3407_v50 = vld [vmem:[#allocation80_spill] sm:$0xff]  ;;  %v778_v59 = vsel %vm3434_vm11, %v3431_v63, %v3430_v53  ;;  %vm3438_vm4 = vcmp.gt.f32.partialorder %v3436_v14, %v3437_v24  ;;  %v3439_v55 = vld [vmem:[#allocation10_spill] sm:$0xff]  ;;  %v3443_v7 = vld [vmem:[#allocation95_spill] sm:$0xff] }
 0x13b   : > { %v980_v43 = vpop.permute.xlu1 %979  ;;  %v1017_v39 = vsel %vm3398_vm15, %v977_v34, %v936_v19  ;;  %vm3442_vm2 = vcmp.gt.f32.partialorder %v3440_v56, %v3441_v58  ;;  %v3444_v13 = vld [vmem:[#allocation96_spill] sm:$0xff]  ;;  %v3446_v15 = vld [vmem:[#allocation98_spill] sm:$0xff]  ;;  %v3450_v34 = vld [vmem:[#allocation3_spill] sm:$0xff] }
 0x13c   : > { %v1018_v30 = vsel %vm998_vm3, %v980_v43, %v937_v31  ;;  %1038 = vst.msk [vmem:[%s2850_s29 + $0x20] sm:$0xff] %vm1023_vm12, %v1017_v39  ;;  %vm3409_vm3 = vcmp.gt.f32.partialorder %v3407_v50, %v3408_v36  ;;  %v859_v9 = vsel %vm3442_vm2, %v3439_v55, %v778_v59  ;;  %vm3445_vm13 = vcmp.gt.f32.partialorder %v3443_v7, %v3444_v13  ;;  %v3449_v43 = vld [vmem:[#allocation2_spill] sm:$0xff] }
 0x13d   : > { %1039 = vst.msk [vmem:[%s2850_s29 + $0x28] sm:$0xff] %vm1023_vm12, %v1018_v30  ;;  %v858_v17 = vsel %vm3409_vm3, %v824_v46, %v777_v20  ;;  %v983_v62 = vpop.permute.xlu0 %982  ;;  %vm3448_vm14 = vcmp.gt.f32.partialorder %v3446_v15, %v3447_v25  ;;  %vm3451_vm15 = vcmp.gt.f32.partialorder %v3449_v43, %v3450_v34  ;;  %v3453_v30 = vld [vmem:[#allocation103_spill] sm:$0xff] }
 0x13e   : > { %v939_v16 = vsel %vm3415_vm0, %v905_v23, %v858_v17  ;;  %v1019_v35 = vsel %vm3424_vm6, %v983_v62, %v938_v27  ;;  %v3428_v23 = vld [vmem:[#allocation67_spill] sm:$0xff]  ;;  %v940_v8 = vsel %vm3448_vm14, %v908_v54, %v859_v9  ;;  %vm3454_vm9 = vcmp.gt.f32.partialorder %v3452_v52, %v3453_v30 }
 0x13f   : > { %v986_v26 = vpop.permute.xlu1 %985  ;;  %vm3429_vm10 = vcmp.gt.f32.partialorder %v3427_v4, %v3428_v23  ;;  %1040 = vst.msk [vmem:[%s2850_s29 + $0x30] sm:$0xff] %vm1023_vm12, %v1019_v35 }
 0x140   : > { %v1020_v46 = vsel %vm3421_vm8, %v986_v26, %v939_v16  ;;  %v779_v21 = vsel %vm3429_vm10, %v3426_v44, %v3425_v10 }
 0x141   : > { %1041 = vst.msk [vmem:[%s2850_s29 + $0x38] sm:$0xff] %vm1023_vm12, %v1020_v46  ;;  %v860_v11 = vsel %vm3438_vm4, %v3435_v2, %v779_v21  ;;  %v989_v19 = vpop.permute.xlu0 %988 }
 0x142   : > { %v941_v42 = vsel %vm3445_vm13, %v911_v60, %v860_v11  ;;  %v1021_v37 = vsel %vm3454_vm9, %v989_v19, %v940_v8 }
 0x143   : > { %v992_v31 = vpop.permute.xlu1 %991  ;;  %1042 = vst.msk [vmem:[%s2850_s29 + $0x40] sm:$0xff] %vm1023_vm12, %v1021_v37 }
 0x144   : > { %v1022_v12 = vsel %vm3451_vm15, %v992_v31, %v941_v42 }
 0x145   : > { %1043 = vst.msk [vmem:[%s2850_s29 + $0x48] sm:$0xff] %vm1023_vm12, %v1022_v12 }
 0x146 PF: > { %s17_s21 = sadd.s32 1, %s1280_s21  }
 0x147   : > { %p14_p4 = scmp.ge.s32.totalorder %s17_s21, 4  }
 0x149   :  { %16 = sbr.rel (!%p14_p4) target bundleno = 1 (0x1), region = 99 }

// kernel: downsampling_bottleneck.5
= control target key start
LH: loop header
LB: loop body
LE: loop exit
PB: predicated region body
PF: predicated region fallthrough
CT: control target
= control target key end

     0   :  { %s3163_s21 = smov 0   ;;  %s3834_s0 = inlined_call_operand.vmem [shape: bf16[2,110,128], index: 0, kind: input, shape index: {}]   ;;  %s3835_s1 = inlined_call_operand.vmem [shape: bf16[9,128,128], index: 1, kind: input, shape index: {}]   ;;  %s3836_s2 = inlined_call_operand.vmem [shape: f32[1,128], index: 2, kind: input, shape index: {}]   ;;  %s3837_s3 = inlined_call_operand.vmem [shape: bf16[128,128], index: 3, kind: input, shape index: {}]   ;;  %s3838_s4 = inlined_call_operand.vmem [shape: f32[1,128], index: 4, kind: input, shape index: {}]   ;;  %s3839_s5 = inlined_call_operand.vmem [shape: f32[2,80,128], index: 5, kind: input, shape index: {}]   ;;  %s3840_s6 = inlined_call_operand.vmem [shape: f32[2,80,128], index: 6, kind: output, shape index: {}]  }
   0x1 LB: > { %s2270_s22 = sadd.s32 4294967295, %s3124_s21   ;;  %p2274_p0 = scmp.ge.s32.totalorder %s3124_s21, 1  ;;  %s3124_s21 = sphi %s3163_s21, %s16_s21  }
   0x2   : > { %p222_p1 = scmp.lt.s32.totalorder %s3124_s21, 3 }
   0x4   : > { %p223_p2 = pnand %p2274_p0, %p222_p1 }
   0x5   : > { %v3015_v0 = vld [vmem:[%s3835_s1 + $0x40] sm:$0xff] (!%p223_p2)   ;;  %v3126_v1 = vmov (!%p223_p2), 0.0   ;;  %v3017_v3 = vld [vmem:[%s3835_s1 + $0x48] sm:$0xff] (!%p223_p2)   ;;  %vm3127_vm0 = vmmov (!%p223_p2), 0   ;;  %p257_p3 = scmp.lt.s32.totalorder (!%p223_p2), %s2270_s22, 1  ;;  %v3019_v5 = vld [vmem:[%s3835_s1 + $0x50] sm:$0xff] (!%p223_p2)  }
   0x6   : > { %226 = sbr.rel (%p223_p2) target bundleno = 675 (0x2a3), region = 44  ;;  %2643 = vmatprep.subr.bf16.mxu0 (!%p223_p2), %v3126_v1  ;;  %2679 = vmatprep.subr.bf16.mxu1 (!%p223_p2), %v3126_v1  ;;  %v3016_v2 = vld [vmem:[%s3835_s1] sm:$0xff] (!%p223_p2)   ;;  %v3018_v4 = vld [vmem:[%s3835_s1 + $0x8] sm:$0xff] (!%p223_p2)   ;;  %v3020_v6 = vld [vmem:[%s3835_s1 + $0x10] sm:$0xff] (!%p223_p2)   ;;  %vm345_vm1 = vsmask.f32 (!%p223_p2), 7424 }
   0x7   : > { %2644 = vmatpush3.bf16.msra.mxu0 (!%p223_p2), %v3015_v0  ;;  %2659 = vmatprep.mubr.msk.bf16.mxu0 (!%p223_p2), %vm3127_vm0, %v3126_v1  ;;  %v3021_v7 = vld [vmem:[%s3835_s1 + $0x58] sm:$0xff] (!%p223_p2)   ;;  %v3023_v9 = vld [vmem:[%s3835_s1 + $0x60] sm:$0xff] (!%p223_p2)   ;;  %v3025_v13 = vld [vmem:[%s3835_s1 + $0x68] sm:$0xff] (!%p223_p2)   ;;  %vm663_vm2 = vcmask (!%p223_p2), 1046528   ;;  %vm1035_vm3 = vsmask.f32 (!%p223_p2), 6400 }
   0x8   : > { %2680 = vmatpush3.bf16.msra.mxu1 (!%p223_p2), %v3016_v2  ;;  %2645 = vmatprep.subr.bf16.mxu0 (!%p223_p2), %v3126_v1  ;;  %v3022_v8 = vld [vmem:[%s3835_s1 + $0x18] sm:$0xff] (!%p223_p2)   ;;  %v3024_v10 = vld [vmem:[%s3835_s1 + $0x20] sm:$0xff] (!%p223_p2)   ;;  %v3026_v16 = vld [vmem:[%s3835_s1 + $0x28] sm:$0xff] (!%p223_p2)   ;;  %vm1246_vm4 = vcmask (!%p223_p2), 1045504   ;;  %vm1618_vm5 = vsmask.f32 (!%p223_p2), 5376 }
   0x9   : > { %2681 = vmatprep.subr.bf16.mxu1 (!%p223_p2), %v3126_v1  ;;  %2695 = vmatprep.mubr.msk.bf16.mxu1 (!%p223_p2), %vm3127_vm0, %v3126_v1  ;;  %v3027_v18 = vld [vmem:[%s3835_s1 + $0x70] sm:$0xff] (!%p223_p2)   ;;  %v3029_v23 = vld [vmem:[%s3835_s1 + $0x78] sm:$0xff] (!%p223_p2)   ;;  %v3033_v28 = vld [vmem:[%s3835_s1 + $0x80] sm:$0xff] (!%p223_p2)   ;;  %vm1829_vm6 = vcmask (!%p223_p2), 1044480  }
   0xa   : > { %v3028_v22 = vld [vmem:[%s3835_s1 + $0x30] sm:$0xff] (!%p223_p2)   ;;  %v3030_v24 = vld [vmem:[%s3835_s1 + $0x38] sm:$0xff] (!%p223_p2)   ;;  %v3037_v32 = vld [vmem:[%s3835_s1 + $0xc0] sm:$0xff] (!%p223_p2)  }
   0xb   : > { %2646 = vmatpush3.bf16.msra.mxu0 (!%p223_p2), %v3017_v3  ;;  %v3034_v33 = vld [vmem:[%s3835_s1 + $0x88] sm:$0xff] (!%p223_p2)   ;;  %v3036_v38 = vld [vmem:[%s3835_s1 + $0x90] sm:$0xff] (!%p223_p2)   ;;  %v3040_v43 = vld [vmem:[%s3835_s1 + $0x98] sm:$0xff] (!%p223_p2)  }
   0xc   : > { %2682 = vmatpush3.bf16.msra.mxu1 (!%p223_p2), %v3018_v4  ;;  %2647 = vmatprep.subr.bf16.mxu0 (!%p223_p2), %v3126_v1  ;;  %v3038_v37 = vld [vmem:[%s3835_s1 + $0xc8] sm:$0xff] (!%p223_p2)   ;;  %v3041_v42 = vld [vmem:[%s3835_s1 + $0xd0] sm:$0xff] (!%p223_p2)   ;;  %v3043_v47 = vld [vmem:[%s3835_s1 + $0xd8] sm:$0xff] (!%p223_p2)  }
   0xd   : > { %s3842_s22 = smov (!%p257_p3, %s2270_s22), 1  ;;  %2683 = vmatprep.subr.bf16.mxu1 %v3126_v1  ;;  %v3042_v48 = vld [vmem:[%s3835_s1 + $0xa0] sm:$0xff]   ;;  %v3045_v56 = vld [vmem:[%s3835_s1 + $0xa8] sm:$0xff]   ;;  %v3047_v61 = vld [vmem:[%s3835_s1 + $0xb0] sm:$0xff]  }
   0xe   : > { %s3003_s11 = smul.u32 56, %s3842_s22  ;;  %v3046_v52 = vld [vmem:[%s3835_s1 + $0xe0] sm:$0xff]   ;;  %v3048_v57 = vld [vmem:[%s3835_s1 + $0xe8] sm:$0xff]   ;;  %v3050_v62 = vld [vmem:[%s3835_s1 + $0xf0] sm:$0xff]  }
   0xf   : > { %2648 = vmatpush3.bf16.msra.mxu0 %v3019_v5  ;;  %v3051_v63 = vld [vmem:[%s3835_s1 + $0xb8] sm:$0xff]   ;;  %s3004_s16 = smul.u32 80, %s3842_s22 }
  0x10   : > { %2684 = vmatpush3.bf16.msra.mxu1 %v3020_v6  ;;  %2649 = vmatprep.subr.bf16.mxu0 %v3126_v1  ;;  %s3213_s18 = scalar_lea.vmem %s3834_s0, %s3003_s11  ;;  %v3052_v4 = vld [vmem:[%s3835_s1 + $0xf8] sm:$0xff]  }
  0x11   : > { %2685 = vmatprep.subr.bf16.mxu1 %v3126_v1  ;;  %v273_v11 = vld [vmem:[%s3213_s18] sm:$0xf]  ;;  %v3225_v12 = vld [vmem:[%s3213_s18 + $0x4] sm:$0xf]  ;;  %v3232_v15 = vld [vmem:[%s3213_s18 + $0x8] sm:$0xff]   ;;  %s3794_s23 = scalar_lea.vmem %s3839_s5, %s3004_s16  ;;  %s3803_s25 = scalar_lea.vmem %s3840_s6, %s3004_s16 }
  0x12   : > { %v2294_v14 = vcombine.low %v273_v11, %v3225_v12  ;;  %v354_v21 = vshll.u32 %v3232_v15, 16  ;;  %v3255_v27 = vld [vmem:[%s3213_s18 + $0x10] sm:$0xff]   ;;  %v358_v30 = vshrl.u32 %v3232_v15, 16  ;;  %v3274_v36 = vld [vmem:[%s3213_s18 + $0x18] sm:$0xff]   ;;  %v3301_v46 = vld [vmem:[%s3213_s18 + $0x20] sm:$0xff]  }
  0x13   : > { %2650 = vmatpush3.bf16.msra.mxu0 %v3021_v7  ;;  %v362_v31 = vshll.u32 %v3255_v27, 16  ;;  %v366_v40 = vshrl.u32 %v3255_v27, 16  ;;  %v370_v41 = vshll.u32 %v3274_v36, 16  ;;  %v374_v50 = vshrl.u32 %v3274_v36, 16  ;;  %v642_v0 = vld [vmem:[%s3213_s18] sm:$0xe] }
  0x14   : > { %2686 = vmatpush3.bf16.msra.mxu1 %v3022_v8  ;;  %2651 = vmatprep.subr.bf16.mxu0 %v3126_v1  ;;  %v349_v17 = vshll.u32 %v2294_v14, 16  ;;  %v347_v19 = vshrl.u32 %v2294_v14, 16  ;;  %v356_v26 = vrot.slane %v354_v21, 1  ;;  %v378_v51 = vshll.u32 %v3301_v46, 16  ;;  %v811_v5 = vld [vmem:[%s3213_s18 + $0x4] sm:$0xe] }
  0x15   : > { %2687 = vmatprep.subr.bf16.mxu1 %v3126_v1  ;;  %v364_v35 = vrot.slane %v362_v31, 1  ;;  %v372_v45 = vrot.slane %v370_v41, 1  ;;  %v3323_v53 = vld [vmem:[%s3213_s18 + $0x28] ss:$0 sps:$4 sm:$0x11]   ;;  %v382_v59 = vshrl.u32 %v3301_v46, 16  ;;  %v2332_v8 = vcombine.low %v642_v0, %v3225_v12 }
  0x16   : > { %v351_v20 = vrot.slane %v349_v17, 1  ;;  %v360_v34 = vor.u32 %v358_v30, %v356_v26  ;;  %v380_v55 = vrot.slane %v378_v51, 1  ;;  %v386_v60 = vshll.u32 %v3323_v53, 16  ;;  %v3365_v6 = vld [vmem:[%s3213_s18 + $0x8] sm:$0xf]  ;;  %v3054_v17 = vld [vmem:[%s3835_s1 + $0x100] sm:$0xff]  }
  0x17   : > { %2652 = vmatpush3.bf16.msra.mxu0 %v3023_v9  ;;  %v368_v44 = vor.u32 %v366_v40, %v364_v35  ;;  %v376_v54 = vor.u32 %v374_v50, %v372_v45  ;;  %v3371_v9 = vcombine.low %v811_v5, %v3365_v6  ;;  %v664_v11 = vrot.slane %v2332_v8, 1  ;;  %v3062_v30 = vld [vmem:[%s3835_s1 + $0x118] sm:$0xff]   ;;  %v3071_v41 = vld [vmem:[%s3835_s1 + $0x168] sm:$0xff]   ;;  %v3073_v51 = vld [vmem:[%s3835_s1 + $0x170] sm:$0xff]  }
  0x18   : > { %2688 = vmatpush3.bf16.msra.mxu1 %v3024_v10  ;;  %2653 = vmatprep.subr.bf16.mxu0 %v3126_v1  ;;  %v352_v25 = vor.u32 %v351_v20, %v347_v19  ;;  %v365_v39 = vsel %vm345_vm1, %v360_v34, %v364_v35  ;;  %v384_v2 = vor.u32 %v382_v59, %v380_v55  ;;  %v388_v3 = vrot.slane %v386_v60, 1  ;;  %v3374_v10 = vld [vmem:[%s3213_s18 + $0xc] sm:$0xff]   ;;  %v3392_v19 = vld [vmem:[%s3213_s18 + $0x14] sm:$0xff]   ;;  %v3065_v34 = vld [vmem:[%s3835_s1 + $0x120] sm:$0xff]  }
  0x19   : > { %2689 = vmatprep.subr.bf16.mxu1 %v3126_v1  ;;  %v373_v49 = vsel %vm345_vm1, %v368_v44, %v372_v45  ;;  %v381_v58 = vsel %vm345_vm1, %v376_v54, %v380_v55  ;;  %v665_v12 = vrot.slane %v3232_v15, 1  ;;  %v3057_v20 = vld [vmem:[%s3835_s1 + $0x108] sm:$0xff]   ;;  %v667_v21 = vrot.slane %v3255_v27, 1  ;;  %v1225_v59 = vld [vmem:[%s3213_s18 + $0x4] sm:$0xc] }
  0x1a   : > { %v357_v29 = vsel %vm345_vm1, %v352_v25, %v356_v26  ;;  %v389_v7 = vsel %vm345_vm1, %v384_v2, %v388_v3  ;;  %v3059_v25 = vld [vmem:[%s3835_s1 + $0x110] sm:$0xff]   ;;  %v1045_v44 = vshrl.u32 %v3374_v10, 16  ;;  %v673_v50 = vrot.slane %v3323_v53, 1  ;;  %v3075_v53 = vld [vmem:[%s3835_s1 + $0x178] sm:$0xff]  }
  0x1b   : > { %2654 = vmatpush3.bf16.msra.mxu0 %v3025_v13  ;;  %v867_v13 = vrot.slane %v3371_v9, 1  ;;  %v1054_v2 = vshrl.u32 %v3392_v19, 16  ;;  %v1057_v3 = vshll.u32 %v3392_v19, 16  ;;  %v1248_v5 = vrot.slane %v3374_v10, 2 }
  0x1c   : > { %2690 = vmatpush3.bf16.msra.mxu1 %v3026_v16  ;;  %2655 = vmatprep.subr.bf16.mxu0 %v3126_v1  ;;  %v666_v16 = vsel %vm663_vm2, %v664_v11, %v665_v12  ;;  %v1047_v55 = vrot.slane %v1045_v44, 1  ;;  %v1394_v44 = vld [vmem:[%s3213_s18 + $0x8] sm:$0xc] }
  0x1d   : > { %2691 = vmatprep.subr.bf16.mxu1 %v3126_v1  ;;  %v1056_v8 = vrot.slane %v1054_v2, 1 }
  0x1f   : > { %2656 = vmatpush3.bf16.msra.mxu0 %v3027_v18 }
  0x20   : > { %2692 = vmatpush3.bf16.msra.mxu1 %v3028_v22  ;;  %2657 = vmatprep.subr.bf16.mxu0 %v3126_v1  ;;  %v870_v22 = vrot.slane %v3392_v19, 1 }
  0x21   : > { %2693 = vmatprep.subr.bf16.mxu1 %v3126_v1 }
  0x23   : > { %2658 = vmatpush3.bf16.msra.mxu0 %v3029_v23  ;;  %v3061_v23 = vld [vmem:[%s3835_s1 + $0x148] sm:$0xff]  }
  0x24   : > { %2694 = vmatpush3.bf16.msra.mxu1 %v3030_v24  ;;  %2715 = vmatprep.subr.bf16.mxu0 %v3126_v1  ;;  %v668_v24 = vsel %vm663_vm2, %v665_v12, %v667_v21  ;;  %v3080_v12 = vld [vmem:[%s3835_s1 + $0x1c0] sm:$0xff]  }
  0x25   : > { %2751 = vmatprep.subr.bf16.mxu1 %v3126_v1 }
  0x26   : > { %2660 = vmatmul.mubr.bf16.vlgmr.msra.gmra.mrb[0].mxu0 %v357_v29  ;;  %v669_v29 = vrot.slane %v3274_v36, 1 }
  0x27   : > { %2696 = vmatmul.mubr.bf16.vlgmr.msra.gmra.mrb[0].mxu1 %v2294_v14  ;;  %2716 = vmatpush3.bf16.msra.mxu0 %v3033_v28  ;;  %v868_v14 = vrot.slane %v3374_v10, 1  ;;  %v3064_v28 = vld [vmem:[%s3835_s1 + $0x150] sm:$0xff]  }
  0x28   : > { %2717 = vmatprep.subr.bf16.mxu0 %v3126_v1  ;;  %2663 = vmatprep.mubr.msk.bf16.mxu0 %vm3127_vm0, %v3126_v1 }
  0x29   : > { %2699 = vmatprep.mubr.msk.bf16.mxu1 %vm3127_vm0, %v3126_v1  ;;  %2752 = vmatpush3.bf16.msra.mxu1 %v3037_v32  ;;  %v869_v18 = vsel %vm663_vm2, %v867_v13, %v868_v14  ;;  %v871_v26 = vsel %vm663_vm2, %v868_v14, %v870_v22  ;;  %v3066_v32 = vld [vmem:[%s3835_s1 + $0x158] sm:$0xff]  }
  0x2a   : > { %2753 = vmatprep.subr.bf16.mxu1 %v3126_v1 }
  0x2b   : > { %2718 = vmatpush3.bf16.msra.mxu0 %v3034_v33  ;;  %v670_v33 = vsel %vm663_vm2, %v667_v21, %v669_v29 }
  0x2c   : > { %2719 = vmatprep.subr.bf16.mxu0 %v3126_v1 }
  0x2d   : > { %2754 = vmatpush3.bf16.msra.mxu1 %v3038_v37  ;;  %v3069_v37 = vld [vmem:[%s3835_s1 + $0x160] sm:$0xff]  }
  0x2e   : > { %2664 = vmatmul.mubr.bf16.gmra.mrb[4].mxu0 %v365_v39  ;;  %2755 = vmatprep.subr.bf16.mxu1 %v3126_v1  ;;  %v3068_v39 = vld [vmem:[%s3835_s1 + $0x128] sm:$0xff]  }
  0x2f   : > { %2700 = vmatmul.mubr.bf16.gmra.mrb[4].mxu1 %v3232_v15  ;;  %2720 = vmatpush3.bf16.msra.mxu0 %v3036_v38  ;;  %v3060_v15 = vld [vmem:[%s3835_s1 + $0x140] sm:$0xff]   ;;  %v671_v38 = vrot.slane %v3301_v46, 1 }
  0x30   : > { %2667 = vmatprep.mubr.msk.bf16.mxu0 %vm3127_vm0, %v3126_v1  ;;  %2703 = vmatprep.mubr.msk.bf16.mxu1 %vm3127_vm0, %v3126_v1 }
  0x31   : > { %2721 = vmatprep.subr.bf16.mxu0 %v3126_v1  ;;  %2756 = vmatpush3.bf16.msra.mxu1 %v3041_v42  ;;  %v1037_v42 = vshrl.u32 %v3371_v9, 16  ;;  %v672_v45 = vsel %vm663_vm2, %v669_v29, %v671_v38  ;;  %v674_v60 = vsel %vm663_vm2, %v671_v38, %v673_v50 }
  0x32   : > { %2757 = vmatprep.subr.bf16.mxu1 %v3126_v1 }
  0x33   : > { %2722 = vmatpush3.bf16.msra.mxu0 %v3040_v43  ;;  %v1040_v43 = vshll.u32 %v3371_v9, 16  ;;  %v1059_v9 = vrot.slane %v1057_v3, 2 }
  0x34   : > { %2723 = vmatprep.subr.bf16.mxu0 %v3126_v1 }
  0x35   : > { %2758 = vmatpush3.bf16.msra.mxu1 %v3043_v47  ;;  %v1048_v47 = vshll.u32 %v3374_v10, 16  ;;  %v1042_v54 = vrot.slane %v1040_v43, 2  ;;  %v3078_v10 = vld [vmem:[%s3835_s1 + $0x188] sm:$0xff]   ;;  %v1060_v13 = vor.u32 %v1059_v9, %v1056_v8 }
  0x36   : > { %2668 = vmatmul.mubr.bf16.gmra.mrb[8].mxu0 %v373_v49  ;;  %2759 = vmatprep.subr.bf16.mxu1 %v3126_v1  ;;  %v3070_v49 = vld [vmem:[%s3835_s1 + $0x130] sm:$0xff]   ;;  %v3089_v43 = vld [vmem:[%s3835_s1 + $0x1e8] sm:$0xff]  }
  0x37   : > { %2704 = vmatmul.mubr.bf16.gmra.mrb[8].mxu1 %v3255_v27  ;;  %2724 = vmatpush3.bf16.msra.mxu0 %v3042_v48  ;;  %v3418_v27 = vld [vmem:[%s3213_s18 + $0x1c] sm:$0xff]  }
  0x38   : > { %2671 = vmatprep.mubr.msk.bf16.mxu0 %vm3127_vm0, %v3126_v1  ;;  %2707 = vmatprep.mubr.msk.bf16.mxu1 %vm3127_vm0, %v3126_v1  ;;  %v872_v31 = vrot.slane %v3418_v27, 1  ;;  %v1063_v14 = vshrl.u32 %v3418_v27, 16  ;;  %v1252_v29 = vrot.slane %v3418_v27, 2 }
  0x39   : > { %2725 = vmatprep.subr.bf16.mxu0 %v3126_v1  ;;  %2760 = vmatpush3.bf16.msra.mxu1 %v3046_v52  ;;  %v1039_v52 = vrot.slane %v1037_v42, 1 }
  0x3a   : > { %2761 = vmatprep.subr.bf16.mxu1 %v3126_v1  ;;  %v873_v35 = vsel %vm663_vm2, %v870_v22, %v872_v31  ;;  %v1065_v21 = vrot.slane %v1063_v14, 1 }
  0x3b   : > { %2726 = vmatpush3.bf16.msra.mxu0 %v3045_v56 }
  0x3c   : > { %2727 = vmatprep.subr.bf16.mxu0 %v3126_v1 }
  0x3d   : > { %2762 = vmatpush3.bf16.msra.mxu1 %v3048_v57  ;;  %v3074_v57 = vld [vmem:[%s3835_s1 + $0x138] sm:$0xff]  }
  0x3e   : > { %2672 = vmatmul.mubr.bf16.gmra.mrb[12].mxu0 %v381_v58  ;;  %2763 = vmatprep.subr.bf16.mxu1 %v3126_v1  ;;  %v1050_v58 = vrot.slane %v1048_v47, 2 }
  0x3f   : > { %2708 = vmatmul.mubr.bf16.gmra.mrb[12].mxu1 %v3274_v36  ;;  %2675 = vmatprep.mubr.msk.bf16.mxu0 %vm3127_vm0, %v3126_v1  ;;  %v3445_v36 = vld [vmem:[%s3213_s18 + $0x24] sm:$0xff]  }
  0x40   : > { %2711 = vmatprep.mubr.msk.bf16.mxu1 %vm3127_vm0, %v3126_v1  ;;  %2728 = vmatpush3.bf16.msra.mxu0 %v3047_v61  ;;  %v874_v40 = vrot.slane %v3445_v36, 1  ;;  %v1051_v0 = vor.u32 %v1050_v58, %v1047_v55  ;;  %v1254_v42 = vrot.slane %v3445_v36, 2 }
  0x41   : > { %2729 = vmatprep.subr.bf16.mxu0 %v3126_v1  ;;  %2764 = vmatpush3.bf16.msra.mxu1 %v3050_v62  ;;  %v2412_v62 = vcombine.low %v1225_v59, %v3365_v6 }
  0x42   : > { %2765 = vmatprep.subr.bf16.mxu1 %v3126_v1  ;;  %v875_v48 = vsel %vm663_vm2, %v872_v31, %v874_v40 }
  0x44   : > { %2730 = vmatpush3.bf16.msra.mxu0 %v3051_v63  ;;  %v1043_v63 = vor.u32 %v1042_v54, %v1039_v52  ;;  %v3091_v52 = vld [vmem:[%s3835_s1 + $0x1f0] sm:$0xff]  }
  0x45   : > { %2766 = vmatpush3.bf16.msra.mxu1 %v3052_v4  ;;  %2787 = vmatprep.subr.bf16.mxu0 %v3126_v1  ;;  %v1247_v4 = vrot.slane %v2412_v62, 2 }
  0x46   : > { %2676 = vmatmul.mubr.bf16.gmra.mrb[16].mxu0 %v389_v7  ;;  %2823 = vmatprep.subr.bf16.mxu1 %v3126_v1  ;;  %v1052_v6 = vsel %vm1035_vm3, %v1043_v63, %v1051_v0  ;;  %v3076_v7 = vld [vmem:[%s3835_s1 + $0x180] sm:$0xff]  }
  0x47   : > { %2712 = vmatmul.mubr.bf16.gmra.mrb[16].mxu1 %v3301_v46  ;;  %2731 = vmatprep.mubr.msk.bf16.mxu0 %vm3127_vm0, %v3126_v1  ;;  %v3072_v46 = vld [vmem:[%s3213_s18 + $0x2c] ss:$0 sps:$4 sm:$0x11]   ;;  %v1249_v11 = vsel %vm1246_vm4, %v1247_v4, %v1248_v5  ;;  %v3613_v4 = vld [vmem:[%s3213_s18 + $0x18] sm:$0xff]  }
  0x48   : > { %2767 = vmatprep.mubr.msk.bf16.mxu1 %vm3127_vm0, %v3126_v1  ;;  %v876_v56 = vrot.slane %v3072_v46, 1  ;;  %v1637_v9 = vshrl.u32 %v3613_v4, 16 }
  0x4a   : > { %v877_v61 = vsel %vm663_vm2, %v874_v40, %v876_v56  ;;  %v3092_v56 = vld [vmem:[%s3835_s1 + $0x1b8] sm:$0xff]   ;;  %v1639_v14 = vrot.slane %v1637_v9, 2 }
  0x4e   : > { %2732 = vmatmul.mubr.bf16.vlgmr.msra.gmra.mrb[20].mxu0 %v666_v16  ;;  %v1066_v16 = vshll.u32 %v3418_v27, 16  ;;  %v3090_v27 = vld [vmem:[%s3213_s18 + $0x2c] ss:$0 sps:$4 sm:$0x33]  }
  0x4f   : > { %2788 = vmatpush3.bf16.msra.mxu0 %v3054_v17  ;;  %2768 = vmatmul.mubr.bf16.vlgmr.msra.gmra.mrb[20].mxu1 %v869_v18  ;;  %v1250_v17 = vrot.slane %v3392_v19, 2  ;;  %v3081_v18 = vld [vmem:[%s3835_s1 + $0x1c8] sm:$0xff]   ;;  %v1081_v40 = vshrl.u32 %v3090_v27, 16  ;;  %v1256_v55 = vrot.slane %v3090_v27, 2 }
  0x50   : > { %2789 = vmatprep.subr.bf16.mxu0 %v3126_v1  ;;  %2735 = vmatprep.mubr.msk.bf16.mxu0 %vm3127_vm0, %v3126_v1  ;;  %v1068_v22 = vrot.slane %v1066_v16, 2 }
  0x51   : > { %2771 = vmatprep.mubr.msk.bf16.mxu1 %vm3127_vm0, %v3126_v1  ;;  %2824 = vmatpush3.bf16.msra.mxu1 %v3060_v15  ;;  %v1061_v15 = vsel %vm1035_vm3, %v1051_v0, %v1060_v13  ;;  %v1251_v19 = vsel %vm1246_vm4, %v1248_v5, %v1250_v17  ;;  %v1083_v47 = vrot.slane %v1081_v40, 1  ;;  %v1257_v62 = vsel %vm1246_vm4, %v1254_v42, %v1256_v55  ;;  %v3108_v55 = vld [vmem:[%s3835_s1 + $0x238] sm:$0xff]  }
  0x52   : > { %2825 = vmatprep.subr.bf16.mxu1 %v3126_v1 }
  0x53   : > { %2790 = vmatpush3.bf16.msra.mxu0 %v3057_v20  ;;  %v3079_v20 = vld [vmem:[%s3835_s1 + $0x190] sm:$0xff]  }
  0x54   : > { %2791 = vmatprep.subr.bf16.mxu0 %v3126_v1 }
  0x55   : > { %2826 = vmatpush3.bf16.msra.mxu1 %v3061_v23  ;;  %v3083_v23 = vld [vmem:[%s3835_s1 + $0x1d0] sm:$0xff]  }
  0x56   : > { %2736 = vmatmul.mubr.bf16.gmra.mrb[24].mxu0 %v668_v24  ;;  %2827 = vmatprep.subr.bf16.mxu1 %v3126_v1  ;;  %v1069_v24 = vor.u32 %v1068_v22, %v1065_v21 }
  0x57   : > { %2772 = vmatmul.mubr.bf16.gmra.mrb[24].mxu1 %v871_v26  ;;  %2792 = vmatpush3.bf16.msra.mxu0 %v3059_v25  ;;  %v3082_v25 = vld [vmem:[%s3835_s1 + $0x198] sm:$0xff]   ;;  %v1072_v26 = vshrl.u32 %v3445_v36, 16 }
  0x58   : > { %2739 = vmatprep.mubr.msk.bf16.mxu0 %vm3127_vm0, %v3126_v1  ;;  %2793 = vmatprep.subr.bf16.mxu0 %v3126_v1  ;;  %v1070_v31 = vsel %vm1035_vm3, %v1060_v13, %v1069_v24 }
  0x59   : > { %2775 = vmatprep.mubr.msk.bf16.mxu1 %vm3127_vm0, %v3126_v1  ;;  %2828 = vmatpush3.bf16.msra.mxu1 %v3064_v28  ;;  %v1075_v28 = vshll.u32 %v3445_v36, 16  ;;  %v3088_v36 = vld [vmem:[%s3835_s1 + $0x1b0] sm:$0xff]  }
  0x5a   : > { %2829 = vmatprep.subr.bf16.mxu1 %v3126_v1 }
  0x5b   : > { %2794 = vmatpush3.bf16.msra.mxu0 %v3062_v30  ;;  %v3085_v30 = vld [vmem:[%s3835_s1 + $0x1d8] sm:$0xff]  }
  0x5c   : > { %2795 = vmatprep.subr.bf16.mxu0 %v3126_v1 }
  0x5d   : > { %2830 = vmatpush3.bf16.msra.mxu1 %v3066_v32  ;;  %v3084_v32 = vld [vmem:[%s3835_s1 + $0x1a0] sm:$0xff]  }
  0x5e   : > { %2740 = vmatmul.mubr.bf16.gmra.mrb[28].mxu0 %v670_v33  ;;  %2831 = vmatprep.subr.bf16.mxu1 %v3126_v1  ;;  %v1074_v33 = vrot.slane %v1072_v26, 1 }
  0x5f   : > { %2776 = vmatmul.mubr.bf16.gmra.mrb[28].mxu1 %v873_v35  ;;  %2796 = vmatpush3.bf16.msra.mxu0 %v3065_v34  ;;  %v1077_v34 = vrot.slane %v1075_v28, 2  ;;  %v1253_v35 = vsel %vm1246_vm4, %v1250_v17, %v1252_v29  ;;  %v3630_v17 = vld [vmem:[%s3213_s18 + $0x20] sm:$0xff]   ;;  %v3650_v28 = vld [vmem:[%s3213_s18 + $0x28] sm:$0xff]  }
  0x60   : > { %2743 = vmatprep.mubr.msk.bf16.mxu0 %vm3127_vm0, %v3126_v1  ;;  %2779 = vmatprep.mubr.msk.bf16.mxu1 %vm3127_vm0, %v3126_v1  ;;  %v1646_v21 = vshrl.u32 %v3630_v17, 16  ;;  %v1649_v22 = vshll.u32 %v3630_v17, 16  ;;  %v1457_v40 = vrot.slane %v3650_v28, 2 }
  0x61   : > { %2797 = vmatprep.subr.bf16.mxu0 %v3126_v1  ;;  %2832 = vmatpush3.bf16.msra.mxu1 %v3069_v37  ;;  %v3087_v37 = vld [vmem:[%s3835_s1 + $0x1e0] sm:$0xff]   ;;  %v1078_v38 = vor.u32 %v1077_v34, %v1074_v33  ;;  %v1658_v33 = vshll.u32 %v3650_v28, 16 }
  0x62   : > { %2833 = vmatprep.subr.bf16.mxu1 %v3126_v1  ;;  %v1651_v26 = vrot.slane %v1649_v22, 3 }
  0x63   : > { %2798 = vmatpush3.bf16.msra.mxu0 %v3068_v39  ;;  %v3086_v39 = vld [vmem:[%s3835_s1 + $0x1a8] sm:$0xff]   ;;  %v1079_v46 = vsel %vm1035_vm3, %v1069_v24, %v1078_v38 }
  0x64   : > { %2799 = vmatprep.subr.bf16.mxu0 %v3126_v1 }
  0x65   : > { %2834 = vmatpush3.bf16.msra.mxu1 %v3071_v41  ;;  %v1084_v41 = vshll.u32 %v3090_v27, 16  ;;  %v3102_v27 = vld [vmem:[%s3835_s1 + $0x220] sm:$0xff]  }
  0x66   : > { %2744 = vmatmul.mubr.bf16.gmra.mrb[32].mxu0 %v672_v45  ;;  %2835 = vmatprep.subr.bf16.mxu1 %v3126_v1  ;;  %v3579_v45 = vld [vmem:[%s3213_s18 + $0xc] sm:$0xf] }
  0x67   : > { %2780 = vmatmul.mubr.bf16.gmra.mrb[32].mxu1 %v875_v48  ;;  %2747 = vmatprep.mubr.msk.bf16.mxu0 %vm3127_vm0, %v3126_v1  ;;  %v1086_v48 = vrot.slane %v1084_v41, 2  ;;  %v2437_v50 = vcombine.low %v1394_v44, %v3579_v45  ;;  %v3104_v41 = vld [vmem:[%s3835_s1 + $0x228] sm:$0xff]  }
  0x68   : > { %2800 = vmatpush3.bf16.msra.mxu0 %v3070_v49  ;;  %2783 = vmatprep.mubr.msk.bf16.mxu1 %vm3127_vm0, %v3126_v1  ;;  %v1255_v49 = vsel %vm1246_vm4, %v1252_v29, %v1254_v42  ;;  %v1455_v29 = vrot.slane %v3630_v17, 2 }
  0x69   : > { %2801 = vmatprep.subr.bf16.mxu0 %v3126_v1  ;;  %2836 = vmatpush3.bf16.msra.mxu1 %v3073_v51  ;;  %v3590_v51 = vld [vmem:[%s3213_s18 + $0x10] sm:$0xff]   ;;  %v1087_v54 = vor.u32 %v1086_v48, %v1083_v47  ;;  %v1450_v5 = vrot.slane %v2437_v50, 2 }
  0x6a   : > { %2837 = vmatprep.subr.bf16.mxu1 %v3126_v1  ;;  %v1628_v58 = vshrl.u32 %v3590_v51, 16  ;;  %v1631_v59 = vshll.u32 %v3590_v51, 16  ;;  %v3106_v47 = vld [vmem:[%s3213_s18 + $0x30] ss:$0 sps:$4 sm:$0x33]  }
  0x6c   : > { %2802 = vmatpush3.bf16.msra.mxu0 %v3074_v57  ;;  %v1620_v57 = vshrl.u32 %v2437_v50, 16  ;;  %v1630_v2 = vrot.slane %v1628_v58, 2  ;;  %v1633_v3 = vrot.slane %v1631_v59, 3 }
  0x6d   : > { %2838 = vmatpush3.bf16.msra.mxu1 %v3075_v53  ;;  %2859 = vmatprep.subr.bf16.mxu0 %v3126_v1  ;;  %v1623_v53 = vshll.u32 %v2437_v50, 16 }
  0x6e   : > { %2748 = vmatmul.mubr.bf16.gmra.mrb[36].mxu0 %v674_v60  ;;  %2895 = vmatprep.subr.bf16.mxu1 %v3126_v1  ;;  %v3093_v60 = vld [vmem:[%s3835_s1 + $0x1f8] sm:$0xff]   ;;  %v1622_v63 = vrot.slane %v1620_v57, 2  ;;  %v1634_v8 = vor.u32 %v1633_v3, %v1630_v2 }
  0x6f   : > { %2784 = vmatmul.mubr.bf16.gmra.mrb[36].mxu1 %v877_v61  ;;  %2803 = vmatprep.mubr.msk.bf16.mxu0 %vm3127_vm0, %v3126_v1  ;;  %v1088_v61 = vsel %vm1035_vm3, %v1078_v38, %v1087_v54  ;;  %v1625_v0 = vrot.slane %v1623_v53, 3  ;;  %v1660_v38 = vrot.slane %v1658_v33, 3 }
  0x70   : > { %2839 = vmatprep.mubr.msk.bf16.mxu1 %vm3127_vm0, %v3126_v1 }
  0x76   : > { %2804 = vmatmul.mubr.bf16.vlgmr.msra.gmra.mrb[40].mxu0 %v1052_v6  ;;  %v1451_v6 = vrot.slane %v3590_v51, 2 }
  0x77   : > { %2860 = vmatpush3.bf16.msra.mxu0 %v3076_v7  ;;  %2840 = vmatmul.mubr.bf16.vlgmr.msra.gmra.mrb[40].mxu1 %v1249_v11  ;;  %v1626_v7 = vor.u32 %v1625_v0, %v1622_v63  ;;  %v1640_v11 = vshll.u32 %v3613_v4, 16  ;;  %v1837_v0 = vrot.slane %v3650_v28, 3 }
  0x78   : > { %2861 = vmatprep.subr.bf16.mxu0 %v3126_v1  ;;  %2807 = vmatprep.mubr.msk.bf16.mxu0 %vm3127_vm0, %v3126_v1 }
  0x79   : > { %2843 = vmatprep.mubr.msk.bf16.mxu1 %vm3127_vm0, %v3126_v1  ;;  %2896 = vmatpush3.bf16.msra.mxu1 %v3080_v12  ;;  %v1452_v12 = vsel %vm1246_vm4, %v1450_v5, %v1451_v6  ;;  %v1635_v13 = vsel %vm1618_vm5, %v1626_v7, %v1634_v8  ;;  %v1642_v16 = vrot.slane %v1640_v11, 3 }
  0x7a   : > { %2897 = vmatprep.subr.bf16.mxu1 %v3126_v1 }
  0x7b   : > { %2862 = vmatpush3.bf16.msra.mxu0 %v3078_v10  ;;  %v3096_v10 = vld [vmem:[%s3835_s1 + $0x200] sm:$0xff]  }
  0x7c   : > { %2863 = vmatprep.subr.bf16.mxu0 %v3126_v1 }
  0x7d   : > { %2898 = vmatpush3.bf16.msra.mxu1 %v3081_v18  ;;  %v3097_v18 = vld [vmem:[%s3835_s1 + $0x208] sm:$0xff]  }
  0x7e   : > { %2808 = vmatmul.mubr.bf16.gmra.mrb[44].mxu0 %v1061_v15  ;;  %2899 = vmatprep.subr.bf16.mxu1 %v3126_v1  ;;  %v1453_v15 = vrot.slane %v3613_v4, 2 }
  0x7f   : > { %2844 = vmatmul.mubr.bf16.gmra.mrb[44].mxu1 %v1251_v19  ;;  %2864 = vmatpush3.bf16.msra.mxu0 %v3079_v20  ;;  %v1643_v20 = vor.u32 %v1642_v16, %v1639_v14  ;;  %v3110_v16 = vld [vmem:[%s3837_s3] sm:$0xff]  }
  0x80   : > { %2811 = vmatprep.mubr.msk.bf16.mxu0 %vm3127_vm0, %v3126_v1  ;;  %2865 = vmatprep.subr.bf16.mxu0 %v3126_v1  ;;  %v1454_v19 = vsel %vm1246_vm4, %v1451_v6, %v1453_v15  ;;  %v1456_v34 = vsel %vm1246_vm4, %v1453_v15, %v1455_v29 }
  0x81   : > { %2847 = vmatprep.mubr.msk.bf16.mxu1 %vm3127_vm0, %v3126_v1  ;;  %2900 = vmatpush3.bf16.msra.mxu1 %v3083_v23  ;;  %v3099_v23 = vld [vmem:[%s3835_s1 + $0x210] sm:$0xff]   ;;  %v1644_v24 = vsel %vm1618_vm5, %v1634_v8, %v1643_v20 }
  0x82   : > { %2901 = vmatprep.subr.bf16.mxu1 %v3126_v1 }
  0x83   : > { %2866 = vmatpush3.bf16.msra.mxu0 %v3082_v25  ;;  %v1648_v25 = vrot.slane %v1646_v21, 2 }
  0x84   : > { %2867 = vmatprep.subr.bf16.mxu0 %v3126_v1 }
  0x85   : > { %2902 = vmatpush3.bf16.msra.mxu1 %v3085_v30  ;;  %v3101_v30 = vld [vmem:[%s3835_s1 + $0x218] sm:$0xff]  }
  0x86   : > { %2812 = vmatmul.mubr.bf16.gmra.mrb[48].mxu0 %v1070_v31  ;;  %2903 = vmatprep.subr.bf16.mxu1 %v3126_v1  ;;  %v1652_v31 = vor.u32 %v1651_v26, %v1648_v25 }
  0x87   : > { %2848 = vmatmul.mubr.bf16.gmra.mrb[48].mxu1 %v1253_v35  ;;  %2868 = vmatpush3.bf16.msra.mxu0 %v3084_v32  ;;  %v1655_v32 = vshrl.u32 %v3650_v28, 16  ;;  %v3112_v28 = vld [vmem:[%s3837_s3 + $0x10] sm:$0xff]  }
  0x88   : > { %2815 = vmatprep.mubr.msk.bf16.mxu0 %vm3127_vm0, %v3126_v1  ;;  %2851 = vmatprep.mubr.msk.bf16.mxu1 %vm3127_vm0, %v3126_v1  ;;  %v1653_v35 = vsel %vm1618_vm5, %v1643_v20, %v1652_v31  ;;  %v3111_v20 = vld [vmem:[%s3837_s3 + $0x8] sm:$0xff]  }
  0x89   : > { %2869 = vmatprep.subr.bf16.mxu0 %v3126_v1  ;;  %2904 = vmatpush3.bf16.msra.mxu1 %v3087_v37  ;;  %v1657_v37 = vrot.slane %v1655_v32, 2 }
  0x8a   : > { %2905 = vmatprep.subr.bf16.mxu1 %v3126_v1 }
  0x8b   : > { %2870 = vmatpush3.bf16.msra.mxu0 %v3086_v39  ;;  %v3107_v39 = vld [vmem:[%s3213_s18 + $0x30] ss:$0 sps:$4 sm:$0x77]   ;;  %v1661_v42 = vor.u32 %v1660_v38, %v1657_v37  ;;  %v3113_v37 = vld [vmem:[%s3837_s3 + $0x18] sm:$0xff]  }
  0x8c   : > { %2871 = vmatprep.subr.bf16.mxu0 %v3126_v1  ;;  %v1667_v44 = vshll.u32 %v3107_v39, 16  ;;  %v1839_v3 = vrot.slane %v3107_v39, 3 }
  0x8d   : > { %2906 = vmatpush3.bf16.msra.mxu1 %v3089_v43  ;;  %v1664_v43 = vshrl.u32 %v3107_v39, 16  ;;  %v1662_v48 = vsel %vm1618_vm5, %v1652_v31, %v1661_v42 }
  0x8e   : > { %2816 = vmatmul.mubr.bf16.gmra.mrb[52].mxu0 %v1079_v46  ;;  %2907 = vmatprep.subr.bf16.mxu1 %v3126_v1  ;;  %v1458_v46 = vsel %vm1246_vm4, %v1455_v29, %v1457_v40  ;;  %v1669_v50 = vrot.slane %v1667_v44, 3 }
  0x8f   : > { %2852 = vmatmul.mubr.bf16.gmra.mrb[52].mxu1 %v1255_v49  ;;  %2819 = vmatprep.mubr.msk.bf16.mxu0 %vm3127_vm0, %v3126_v1  ;;  %v3105_v49 = vld [vmem:[%s3835_s1 + $0x230] sm:$0xff]  }
  0x90   : > { %2872 = vmatpush3.bf16.msra.mxu0 %v3088_v36  ;;  %2855 = vmatprep.mubr.msk.bf16.mxu1 %vm3127_vm0, %v3126_v1  ;;  %v1666_v36 = vrot.slane %v1664_v43, 2  ;;  %v3114_v43 = vld [vmem:[%s3837_s3 + $0x20] sm:$0xff]  }
  0x91   : > { %2873 = vmatprep.subr.bf16.mxu0 %v3126_v1  ;;  %2908 = vmatpush3.bf16.msra.mxu1 %v3091_v52  ;;  %v1459_v52 = vrot.slane %v3106_v47, 2 }
  0x92   : > { %2909 = vmatprep.subr.bf16.mxu1 %v3126_v1  ;;  %v1670_v54 = vor.u32 %v1669_v50, %v1666_v36 }
  0x93   : > { %v1460_v57 = vsel %vm1246_vm4, %v1457_v40, %v1459_v52  ;;  %v3115_v52 = vld [vmem:[%s3837_s3 + $0x28] sm:$0xff]  }
  0x94   : > { %2874 = vmatpush3.bf16.msra.mxu0 %v3092_v56  ;;  %v1808_v56 = vld [vmem:[%s3213_s18 + $0x8] sm:$0x8]  ;;  %v1671_v58 = vsel %vm1618_vm5, %v1661_v42, %v1670_v54 }
  0x95   : > { %2910 = vmatpush3.bf16.msra.mxu1 %v3093_v60  ;;  %2931 = vmatprep.subr.bf16.mxu0 %v3126_v1  ;;  %v2492_v53 = vcombine.low %v1808_v56, %v3579_v45  ;;  %v1831_v60 = vrot.slane %v3590_v51, 3  ;;  %v1833_v45 = vrot.slane %v3613_v4, 3  ;;  %v1835_v51 = vrot.slane %v3630_v17, 3 }
  0x96   : > { %2820 = vmatmul.mubr.bf16.gmra.mrb[56].mxu0 %v1088_v61  ;;  %2967 = vmatprep.subr.bf16.mxu1 %v3126_v1  ;;  %v1840_v4 = vsel %vm1829_vm6, %v1837_v0, %v1839_v3 }
  0x97   : > { %2856 = vmatmul.mubr.bf16.gmra.mrb[56].mxu1 %v1257_v62  ;;  %2875 = vmatprep.mubr.msk.bf16.mxu0 %vm3127_vm0, %v3126_v1  ;;  %v1830_v59 = vrot.slane %v2492_v53, 3  ;;  %v1834_v62 = vsel %vm1829_vm6, %v1831_v60, %v1833_v45  ;;  %v1836_v63 = vsel %vm1829_vm6, %v1833_v45, %v1835_v51  ;;  %v1838_v2 = vsel %vm1829_vm6, %v1835_v51, %v1837_v0  ;;  %v3117_v51 = vld [vmem:[%s3837_s3 + $0x38] sm:$0xff]  }
  0x98   : > { %2911 = vmatprep.mubr.msk.bf16.mxu1 %vm3127_vm0, %v3126_v1 }
  0x99   : > { %v1832_v61 = vsel %vm1829_vm6, %v1830_v59, %v1831_v60 }
  0x9e   : > { %2876 = vmatmul.mubr.bf16.vlgmr.msra.gmra.mrb[60].mxu0 %v1452_v12 }
  0x9f   : > { %2932 = vmatpush3.bf16.msra.mxu0 %v3096_v10  ;;  %2912 = vmatmul.mubr.bf16.vlgmr.msra.gmra.mrb[60].mxu1 %v1635_v13 }
  0xa0   : > { %2933 = vmatprep.subr.bf16.mxu0 %v3126_v1  ;;  %2879 = vmatprep.mubr.msk.bf16.mxu0 %vm3127_vm0, %v3126_v1 }
  0xa1   : > { %2915 = vmatprep.mubr.msk.bf16.mxu1 %vm3127_vm0, %v3126_v1  ;;  %2968 = vmatpush3.bf16.msra.mxu1 %v3110_v16 }
  0xa2   : > { %2969 = vmatprep.subr.bf16.mxu1 %v3126_v1 }
  0xa3   : > { %2934 = vmatpush3.bf16.msra.mxu0 %v3097_v18 }
  0xa4   : > { %2935 = vmatprep.subr.bf16.mxu0 %v3126_v1 }
  0xa5   : > { %2970 = vmatpush3.bf16.msra.mxu1 %v3111_v20 }
  0xa6   : > { %2880 = vmatmul.mubr.bf16.gmra.mrb[64].mxu0 %v1454_v19  ;;  %2971 = vmatprep.subr.bf16.mxu1 %v3126_v1 }
  0xa7   : > { %2916 = vmatmul.mubr.bf16.gmra.mrb[64].mxu1 %v1644_v24  ;;  %2936 = vmatpush3.bf16.msra.mxu0 %v3099_v23 }
  0xa8   : > { %2883 = vmatprep.mubr.msk.bf16.mxu0 %vm3127_vm0, %v3126_v1  ;;  %2937 = vmatprep.subr.bf16.mxu0 %v3126_v1 }
  0xa9   : > { %2919 = vmatprep.mubr.msk.bf16.mxu1 %vm3127_vm0, %v3126_v1  ;;  %2972 = vmatpush3.bf16.msra.mxu1 %v3112_v28 }
  0xaa   : > { %2973 = vmatprep.subr.bf16.mxu1 %v3126_v1 }
  0xab   : > { %2938 = vmatpush3.bf16.msra.mxu0 %v3101_v30 }
  0xac   : > { %2939 = vmatprep.subr.bf16.mxu0 %v3126_v1 }
  0xad   : > { %2974 = vmatpush3.bf16.msra.mxu1 %v3113_v37 }
  0xae   : > { %2884 = vmatmul.mubr.bf16.gmra.mrb[68].mxu0 %v1456_v34  ;;  %2975 = vmatprep.subr.bf16.mxu1 %v3126_v1 }
  0xaf   : > { %2920 = vmatmul.mubr.bf16.gmra.mrb[68].mxu1 %v1653_v35  ;;  %2940 = vmatpush3.bf16.msra.mxu0 %v3102_v27 }
  0xb0   : > { %2887 = vmatprep.mubr.msk.bf16.mxu0 %vm3127_vm0, %v3126_v1  ;;  %2923 = vmatprep.mubr.msk.bf16.mxu1 %vm3127_vm0, %v3126_v1 }
  0xb1   : > { %2941 = vmatprep.subr.bf16.mxu0 %v3126_v1  ;;  %2976 = vmatpush3.bf16.msra.mxu1 %v3114_v43 }
  0xb2   : > { %2977 = vmatprep.subr.bf16.mxu1 %v3126_v1 }
  0xb3   : > { %2942 = vmatpush3.bf16.msra.mxu0 %v3104_v41 }
  0xb4   : > { %2943 = vmatprep.subr.bf16.mxu0 %v3126_v1 }
  0xb5   : > { %2978 = vmatpush3.bf16.msra.mxu1 %v3115_v52 }
  0xb6   : > { %2888 = vmatmul.mubr.bf16.gmra.mrb[72].mxu0 %v1458_v46  ;;  %2979 = vmatprep.subr.bf16.mxu1 %v3126_v1 }
  0xb7   : > { %2924 = vmatmul.mubr.bf16.gmra.mrb[72].mxu1 %v1662_v48  ;;  %2891 = vmatprep.mubr.msk.bf16.mxu0 %vm3127_vm0, %v3126_v1 }
  0xb8   : > { %2944 = vmatpush3.bf16.msra.mxu0 %v3105_v49  ;;  %2927 = vmatprep.mubr.msk.bf16.mxu1 %vm3127_vm0, %v3126_v1 }
  0xb9   : > { %2945 = vmatprep.subr.bf16.mxu0 %v3126_v1 }
  0xbc   : > { %2946 = vmatpush3.bf16.msra.mxu0 %v3108_v55 }
  0xbe   : > { %2892 = vmatmul.mubr.bf16.gmra.mrb[76].mxu0 %v1460_v57 }
  0xbf   : > { %2928 = vmatmul.mubr.bf16.gmra.mrb[76].mxu1 %v1671_v58  ;;  %2947 = vmatprep.mubr.msk.bf16.mxu0 %vm3127_vm0, %v3126_v1 }
  0xc0   : > { %2983 = vmatprep.mubr.msk.bf16.mxu1 %vm3127_vm0, %v3126_v1 }
  0xc6   : > { %2948 = vmatmul.mubr.bf16.vlgmr.msra.gmra.mrb[80].mxu0 %v1832_v61  ;;  %v3116_v61 = vld [vmem:[%s3837_s3 + $0x30] sm:$0xff]  }
  0xc7   : > { %2951 = vmatprep.mubr.msk.bf16.mxu0 %vm3127_vm0, %v3126_v1  ;;  %2980 = vmatpush3.bf16.msra.mxu1 %v3116_v61 }
  0xc8   : > { %2981 = vmatprep.subr.bf16.mxu1 %v3126_v1 }
  0xcb   : > { %2982 = vmatpush3.bf16.msra.mxu1 %v3117_v51 }
  0xce   : > { %2952 = vmatmul.mubr.bf16.gmra.mrb[84].mxu0 %v1834_v62 }
  0xcf   : > { %2955 = vmatprep.mubr.msk.bf16.mxu0 %vm3127_vm0, %v3126_v1 }
  0xd6   : > { %2956 = vmatmul.mubr.bf16.gmra.mrb[88].mxu0 %v1836_v63 }
  0xd7   : > { %2959 = vmatprep.mubr.msk.bf16.mxu0 %vm3127_vm0, %v3126_v1 }
  0xde   : > { %2960 = vmatmul.mubr.bf16.gmra.mrb[92].mxu0 %v1838_v2 }
  0xdf   : > { %2963 = vmatprep.mubr.msk.bf16.mxu0 %vm3127_vm0, %v3126_v1 }
  0xe6   : > { %2964 = vmatmul.mubr.bf16.gmra.mrb[96].mxu0 %v1840_v4 }
  0xf9   : > { %v477_v5 = vpop.f32.mrb[0].mxu0 }
  0xfa   : > { %v603_v6 = vpop.f32.mrb[0].mxu1  ;;  %v2661_v7 = vpop.f32.mrb[1].mxu0 }
  0xfb   : > { %v3719_v8 = vadd.f32 %v603_v6, %v477_v5  ;;  %v2697_v9 = vpop.f32.mrb[1].mxu1  ;;  %v480_v11 = vpop.f32.mrb[2].mxu0 }
  0xfc   : > { %v606_v12 = vpop.f32.mrb[2].mxu1  ;;  %v2662_v10 = vpop.f32.mrb[3].mxu0 }
  0xfd   : > { %v3721_v13 = vadd.f32 %v606_v12, %v480_v11  ;;  %v2698_v14 = vpop.f32.mrb[3].mxu1 }
 0x101   : > { %v485_v17 = vpop.f32.mrb[4].mxu0 }
 0x102   : > { %v611_v18 = vpop.f32.mrb[4].mxu1  ;;  %v2665_v15 = vpop.f32.mrb[5].mxu0 }
 0x103   : > { %v3730_v21 = vadd.f32 %v611_v18, %v485_v17  ;;  %v2701_v22 = vpop.f32.mrb[5].mxu1  ;;  %v488_v19 = vpop.f32.mrb[6].mxu0 }
 0x104   : > { %v614_v23 = vpop.f32.mrb[6].mxu1  ;;  %v2666_v24 = vpop.f32.mrb[7].mxu0 }
 0x105   : > { %v3732_v25 = vadd.f32 %v614_v23, %v488_v19  ;;  %v2702_v26 = vpop.f32.mrb[7].mxu1 }
 0x109   : > { %v493_v29 = vpop.f32.mrb[8].mxu0 }
 0x10a   : > { %v619_v30 = vpop.f32.mrb[8].mxu1  ;;  %v2669_v31 = vpop.f32.mrb[9].mxu0 }
 0x10b   : > { %v3739_v32 = vadd.f32 %v619_v30, %v493_v29  ;;  %v2705_v33 = vpop.f32.mrb[9].mxu1  ;;  %v496_v34 = vpop.f32.mrb[10].mxu0 }
 0x10c   : > { %v622_v27 = vpop.f32.mrb[10].mxu1  ;;  %v2670_v35 = vpop.f32.mrb[11].mxu0 }
 0x10d   : > { %v3744_v38 = vadd.f32 %v622_v27, %v496_v34  ;;  %v2706_v39 = vpop.f32.mrb[11].mxu1 }
 0x111   : > { %v501_v40 = vpop.f32.mrb[12].mxu0 }
 0x112   : > { %v627_v41 = vpop.f32.mrb[12].mxu1  ;;  %v2673_v42 = vpop.f32.mrb[13].mxu0 }
 0x113   : > { %v3750_v44 = vadd.f32 %v627_v41, %v501_v40  ;;  %v2709_v46 = vpop.f32.mrb[13].mxu1  ;;  %v504_v47 = vpop.f32.mrb[14].mxu0 }
 0x114   : > { %v630_v48 = vpop.f32.mrb[14].mxu1  ;;  %v2674_v49 = vpop.f32.mrb[15].mxu0 }
 0x115   : > { %v3752_v36 = vadd.f32 %v630_v48, %v504_v47  ;;  %v2710_v50 = vpop.f32.mrb[15].mxu1 }
 0x119   : > { %v509_v54 = vpop.f32.mrb[16].mxu0 }
 0x11a   : > { %v635_v55 = vpop.f32.mrb[16].mxu1  ;;  %v2677_v56 = vpop.f32.mrb[17].mxu0 }
 0x11b   : > { %v636_v57 = vadd.f32 %v635_v55, %v509_v54  ;;  %v2713_v53 = vpop.f32.mrb[17].mxu1  ;;  %v512_v58 = vpop.f32.mrb[18].mxu0 }
 0x11c   : > { %v638_v59 = vpop.f32.mrb[18].mxu1  ;;  %v2678_v60 = vpop.f32.mrb[19].mxu0 }
 0x11d   : > { %v639_v45 = vadd.f32 %v638_v59, %v512_v58  ;;  %v2714_v62 = vpop.f32.mrb[19].mxu1 }
 0x121   : > { %v762_v63 = vpop.f32.mrb[20].mxu0 }
 0x122   : > { %v801_v0 = vadd.f32 %v762_v63, %v3719_v8  ;;  %v2733_v2 = vpop.f32.mrb[21].mxu0  ;;  %v965_v3 = vpop.f32.mrb[20].mxu1 }
 0x123   : > { %v765_v4 = vpop.f32.mrb[22].mxu0  ;;  %v2769_v5 = vpop.f32.mrb[21].mxu1 }
 0x124   : > { %v802_v6 = vadd.f32 %v765_v4, %v3721_v13  ;;  %v1004_v7 = vadd.f32 %v965_v3, %v801_v0  ;;  %v2734_v9 = vpop.f32.mrb[23].mxu0  ;;  %v968_v11 = vpop.f32.mrb[22].mxu1 }
 0x125   : > { %v2770_v12 = vpop.f32.mrb[23].mxu1 }
 0x126   : > { %v1005_v10 = vadd.f32 %v968_v11, %v802_v6 }
 0x129   : > { %v770_v14 = vpop.f32.mrb[24].mxu0 }
 0x12a   : > { %v803_v16 = vadd.f32 %v770_v14, %v3730_v21  ;;  %v2737_v17 = vpop.f32.mrb[25].mxu0  ;;  %v973_v18 = vpop.f32.mrb[24].mxu1 }
 0x12b   : > { %v773_v15 = vpop.f32.mrb[26].mxu0  ;;  %v2773_v20 = vpop.f32.mrb[25].mxu1 }
 0x12c   : > { %v804_v8 = vadd.f32 %v773_v15, %v3732_v25  ;;  %v1006_v22 = vadd.f32 %v973_v18, %v803_v16  ;;  %v2738_v19 = vpop.f32.mrb[27].mxu0  ;;  %v976_v23 = vpop.f32.mrb[26].mxu1 }
 0x12d   : > { %v2774_v24 = vpop.f32.mrb[27].mxu1 }
 0x12e   : > { %v1007_v26 = vadd.f32 %v976_v23, %v804_v8 }
 0x131   : > { %v778_v13 = vpop.f32.mrb[28].mxu0 }
 0x132   : > { %v805_v28 = vadd.f32 %v778_v13, %v3739_v32  ;;  %v2741_v29 = vpop.f32.mrb[29].mxu0  ;;  %v981_v30 = vpop.f32.mrb[28].mxu1 }
 0x133   : > { %v781_v31 = vpop.f32.mrb[30].mxu0  ;;  %v2777_v33 = vpop.f32.mrb[29].mxu1 }
 0x134   : > { %v806_v21 = vadd.f32 %v781_v31, %v3744_v38  ;;  %v1008_v34 = vadd.f32 %v981_v30, %v805_v28  ;;  %v2742_v27 = vpop.f32.mrb[31].mxu0  ;;  %v984_v35 = vpop.f32.mrb[30].mxu1 }
 0x135   : > { %v2778_v37 = vpop.f32.mrb[31].mxu1 }
 0x136   : > { %v1009_v39 = vadd.f32 %v984_v35, %v806_v21 }
 0x139   : > { %v786_v25 = vpop.f32.mrb[32].mxu0 }
 0x13a   : > { %v807_v40 = vadd.f32 %v786_v25, %v3750_v44  ;;  %v2745_v41 = vpop.f32.mrb[33].mxu0  ;;  %v989_v42 = vpop.f32.mrb[32].mxu1 }
 0x13b   : > { %v789_v43 = vpop.f32.mrb[34].mxu0  ;;  %v2781_v46 = vpop.f32.mrb[33].mxu1 }
 0x13c   : > { %v808_v32 = vadd.f32 %v789_v43, %v3752_v36  ;;  %v1010_v47 = vadd.f32 %v989_v42, %v807_v40  ;;  %v2746_v48 = vpop.f32.mrb[35].mxu0  ;;  %v992_v49 = vpop.f32.mrb[34].mxu1 }
 0x13d   : > { %v2782_v50 = vpop.f32.mrb[35].mxu1 }
 0x13e   : > { %v1011_v52 = vadd.f32 %v992_v49, %v808_v32 }
 0x141   : > { %v794_v38 = vpop.f32.mrb[36].mxu0 }
 0x142   : > { %v809_v54 = vadd.f32 %v794_v38, %v636_v57  ;;  %v2749_v55 = vpop.f32.mrb[37].mxu0  ;;  %v997_v56 = vpop.f32.mrb[36].mxu1 }
 0x143   : > { %v797_v53 = vpop.f32.mrb[38].mxu0  ;;  %v2785_v58 = vpop.f32.mrb[37].mxu1 }
 0x144   : > { %v810_v59 = vadd.f32 %v797_v53, %v639_v45  ;;  %v1012_v60 = vadd.f32 %v997_v56, %v809_v54  ;;  %v2750_v44 = vpop.f32.mrb[39].mxu0  ;;  %v1000_v61 = vpop.f32.mrb[38].mxu1 }
 0x145   : > { %v2786_v62 = vpop.f32.mrb[39].mxu1 }
 0x146   : > { %v1013_v51 = vadd.f32 %v1000_v61, %v810_v59 }
 0x149   : > { %v1176_v63 = vpop.f32.mrb[40].mxu0 }
 0x14a   : > { %v1215_v0 = vadd.f32 %v1176_v63, %v1004_v7  ;;  %v2805_v36 = vpop.f32.mrb[41].mxu0  ;;  %v1345_v2 = vpop.f32.mrb[40].mxu1 }
 0x14b   : > { %v1179_v3 = vpop.f32.mrb[42].mxu0  ;;  %v2841_v4 = vpop.f32.mrb[41].mxu1 }
 0x14c   : > { %v1216_v5 = vadd.f32 %v1179_v3, %v1005_v10  ;;  %v1384_v6 = vadd.f32 %v1345_v2, %v1215_v0  ;;  %v2806_v9 = vpop.f32.mrb[43].mxu0  ;;  %v1348_v57 = vpop.f32.mrb[42].mxu1 }
 0x14d   : > { %v2842_v11 = vpop.f32.mrb[43].mxu1 }
 0x14e   : > { %v1385_v12 = vadd.f32 %v1348_v57, %v1216_v5 }
 0x151   : > { %v1184_v14 = vpop.f32.mrb[44].mxu0 }
 0x152   : > { %v1217_v16 = vadd.f32 %v1184_v14, %v1006_v22  ;;  %v2809_v45 = vpop.f32.mrb[45].mxu0  ;;  %v1353_v17 = vpop.f32.mrb[44].mxu1 }
 0x153   : > { %v1187_v18 = vpop.f32.mrb[46].mxu0  ;;  %v2845_v15 = vpop.f32.mrb[45].mxu1 }
 0x154   : > { %v1218_v20 = vadd.f32 %v1187_v18, %v1007_v26  ;;  %v1386_v8 = vadd.f32 %v1353_v17, %v1217_v16  ;;  %v2810_v19 = vpop.f32.mrb[47].mxu0  ;;  %v1356_v7 = vpop.f32.mrb[46].mxu1 }
 0x155   : > { %v2846_v23 = vpop.f32.mrb[47].mxu1 }
 0x156   : > { %v1387_v24 = vadd.f32 %v1356_v7, %v1218_v20 }
 0x159   : > { %v1192_v13 = vpop.f32.mrb[48].mxu0 }
 0x15a   : > { %v1219_v28 = vadd.f32 %v1192_v13, %v1008_v34  ;;  %v2813_v10 = vpop.f32.mrb[49].mxu0  ;;  %v1361_v29 = vpop.f32.mrb[48].mxu1 }
 0x15b   : > { %v1195_v30 = vpop.f32.mrb[50].mxu0  ;;  %v2849_v31 = vpop.f32.mrb[49].mxu1 }
 0x15c   : > { %v1220_v33 = vadd.f32 %v1195_v30, %v1009_v39  ;;  %v1388_v21 = vadd.f32 %v1361_v29, %v1219_v28  ;;  %v2814_v27 = vpop.f32.mrb[51].mxu0  ;;  %v1364_v22 = vpop.f32.mrb[50].mxu1 }
 0x15d   : > { %v2850_v35 = vpop.f32.mrb[51].mxu1 }
 0x15e   : > { %v1389_v37 = vadd.f32 %v1364_v22, %v1220_v33 }
 0x161   : > { %v1200_v25 = vpop.f32.mrb[52].mxu0 }
 0x162   : > { %v1221_v40 = vadd.f32 %v1200_v25, %v1010_v47  ;;  %v2817_v26 = vpop.f32.mrb[53].mxu0  ;;  %v1369_v41 = vpop.f32.mrb[52].mxu1 }
 0x163   : > { %v1203_v42 = vpop.f32.mrb[54].mxu0  ;;  %v2853_v43 = vpop.f32.mrb[53].mxu1 }
 0x164   : > { %v1222_v46 = vadd.f32 %v1203_v42, %v1011_v52  ;;  %v1390_v32 = vadd.f32 %v1369_v41, %v1221_v40  ;;  %v2818_v48 = vpop.f32.mrb[55].mxu0  ;;  %v1372_v34 = vpop.f32.mrb[54].mxu1 }
 0x165   : > { %v2854_v49 = vpop.f32.mrb[55].mxu1 }
 0x166   : > { %v1391_v50 = vadd.f32 %v1372_v34, %v1222_v46 }
 0x169   : > { %v1208_v38 = vpop.f32.mrb[56].mxu0 }
 0x16a   : > { %v1223_v54 = vadd.f32 %v1208_v38, %v1012_v60  ;;  %v2821_v39 = vpop.f32.mrb[57].mxu0  ;;  %v1377_v55 = vpop.f32.mrb[56].mxu1 }
 0x16b   : > { %v1211_v56 = vpop.f32.mrb[58].mxu0  ;;  %v2857_v53 = vpop.f32.mrb[57].mxu1 }
 0x16c   : > { %v1224_v58 = vadd.f32 %v1211_v56, %v1013_v51  ;;  %v1392_v59 = vadd.f32 %v1377_v55, %v1223_v54  ;;  %v2822_v44 = vpop.f32.mrb[59].mxu0  ;;  %v1380_v47 = vpop.f32.mrb[58].mxu1 }
 0x16d   : > { %v2858_v61 = vpop.f32.mrb[59].mxu1 }
 0x16e   : > { %v1393_v62 = vadd.f32 %v1380_v47, %v1224_v58 }
 0x171   : > { %v1548_v63 = vpop.f32.mrb[60].mxu0 }
 0x172   : > { %v1587_v0 = vadd.f32 %v1548_v63, %v1384_v6  ;;  %v2877_v52 = vpop.f32.mrb[61].mxu0  ;;  %v1759_v36 = vpop.f32.mrb[60].mxu1 }
 0x173   : > { %v1551_v2 = vpop.f32.mrb[62].mxu0  ;;  %v2913_v3 = vpop.f32.mrb[61].mxu1 }
 0x174   : > { %v1588_v4 = vadd.f32 %v1551_v2, %v1385_v12  ;;  %v1798_v5 = vadd.f32 %v1759_v36, %v1587_v0  ;;  %v2878_v9 = vpop.f32.mrb[63].mxu0  ;;  %v1762_v60 = vpop.f32.mrb[62].mxu1 }
 0x175   : > { %v2914_v57 = vpop.f32.mrb[63].mxu1 }
 0x176   : > { %v1799_v11 = vadd.f32 %v1762_v60, %v1588_v4 }
 0x179   : > { %v1556_v14 = vpop.f32.mrb[64].mxu0 }
 0x17a   : > { %v1589_v16 = vadd.f32 %v1556_v14, %v1386_v8  ;;  %v2881_v51 = vpop.f32.mrb[65].mxu0  ;;  %v1767_v45 = vpop.f32.mrb[64].mxu1 }
 0x17b   : > { %v1559_v17 = vpop.f32.mrb[66].mxu0  ;;  %v2917_v18 = vpop.f32.mrb[65].mxu1 }
 0x17c   : > { %v1590_v15 = vadd.f32 %v1559_v17, %v1387_v24  ;;  %v1800_v20 = vadd.f32 %v1767_v45, %v1589_v16  ;;  %v2882_v19 = vpop.f32.mrb[67].mxu0  ;;  %v1770_v6 = vpop.f32.mrb[66].mxu1 }
 0x17d   : > { %v2918_v7 = vpop.f32.mrb[67].mxu1 }
 0x17e   : > { %v1801_v23 = vadd.f32 %v1770_v6, %v1590_v15 }
 0x181   : > { %v1564_v13 = vpop.f32.mrb[68].mxu0 }
 0x182   : > { %v1591_v28 = vadd.f32 %v1564_v13, %v1388_v21  ;;  %v2885_v12 = vpop.f32.mrb[69].mxu0  ;;  %v1775_v10 = vpop.f32.mrb[68].mxu1 }
 0x183   : > { %v1567_v29 = vpop.f32.mrb[70].mxu0  ;;  %v2921_v30 = vpop.f32.mrb[69].mxu1 }
 0x184   : > { %v1592_v31 = vadd.f32 %v1567_v29, %v1389_v37  ;;  %v1802_v33 = vadd.f32 %v1775_v10, %v1591_v28  ;;  %v2886_v27 = vpop.f32.mrb[71].mxu0  ;;  %v1778_v8 = vpop.f32.mrb[70].mxu1 }
 0x185   : > { %v2922_v22 = vpop.f32.mrb[71].mxu1 }
 0x186   : > { %v1803_v35 = vadd.f32 %v1778_v8, %v1592_v31 }
 0x189   : > { %v1572_v25 = vpop.f32.mrb[72].mxu0 }
 0x18a   : > { %v1593_v40 = vadd.f32 %v1572_v25, %v1390_v32  ;;  %v2889_v24 = vpop.f32.mrb[73].mxu0  ;;  %v1783_v26 = vpop.f32.mrb[72].mxu1 }
 0x18b   : > { %v1575_v41 = vpop.f32.mrb[74].mxu0  ;;  %v2925_v42 = vpop.f32.mrb[73].mxu1 }
 0x18c   : > { %v1594_v43 = vadd.f32 %v1575_v41, %v1391_v50  ;;  %v1804_v46 = vadd.f32 %v1783_v26, %v1593_v40  ;;  %v2890_v48 = vpop.f32.mrb[75].mxu0  ;;  %v1786_v21 = vpop.f32.mrb[74].mxu1  ;;  %v2501_v50 = vld [vmem:[%s3836_s2] ss:$0 sm:$0xff] }
 0x18d   : > { %v2926_v34 = vpop.f32.mrb[75].mxu1 }
 0x18e   : > { %v1805_v49 = vadd.f32 %v1786_v21, %v1594_v43 }
 0x191   : > { %v1580_v38 = vpop.f32.mrb[76].mxu0 }
 0x192   : > { %v1595_v54 = vadd.f32 %v1580_v38, %v1392_v59  ;;  %v2893_v37 = vpop.f32.mrb[77].mxu0  ;;  %v1791_v39 = vpop.f32.mrb[76].mxu1 }
 0x193   : > { %v1583_v55 = vpop.f32.mrb[78].mxu0  ;;  %v2929_v56 = vpop.f32.mrb[77].mxu1 }
 0x194   : > { %v1596_v53 = vadd.f32 %v1583_v55, %v1393_v62  ;;  %v1806_v58 = vadd.f32 %v1791_v39, %v1595_v54  ;;  %v2894_v44 = vpop.f32.mrb[79].mxu0  ;;  %v1794_v32 = vpop.f32.mrb[78].mxu1  ;;  %v3789_v56 = vld [vmem:[%s3838_s4] ss:$0 sm:$0xff] }
 0x195   : > { %v2930_v47 = vpop.f32.mrb[79].mxu1  ;;  %v2163_v44 = vld [vmem:[%s3794_s23] sm:$0xff] }
 0x196   : > { %v1807_v61 = vadd.f32 %v1794_v32, %v1596_v53 }
 0x199   : > { %v1928_v63 = vpop.f32.mrb[80].mxu0 }
 0x19a   : > { %v1967_v0 = vadd.f32 %v1928_v63, %v1798_v5  ;;  %v2949_v52 = vpop.f32.mrb[81].mxu0 }
 0x19b   : > { %v1931_v36 = vpop.f32.mrb[82].mxu0 }
 0x19c   : > { %v1984_v2 = vadd.f32 %v2501_v50, %v1967_v0  ;;  %v1968_v59 = vadd.f32 %v1931_v36, %v1799_v11  ;;  %v2950_v3 = vpop.f32.mrb[83].mxu0 }
 0x19e   : > { %v1985_v4 = vadd.f32 %v2501_v50, %v1968_v59  ;;  %v1994_v9 = vmax.f32 %v1984_v2, 0.0 }
 0x1a0   : > { %v1995_v60 = vmax.f32 %v1985_v4, 0.0 }
 0x1a1   : > { %v1936_v62 = vpop.f32.mrb[84].mxu0 }
 0x1a2   : > { %v2004_v57 = vpack.c.bf16 %v1995_v60, %v1994_v9  ;;  %v1969_v14 = vadd.f32 %v1936_v62, %v1800_v20  ;;  %v2953_v16 = vpop.f32.mrb[85].mxu0  ;;  %v2165_v60 = vld [vmem:[%s3794_s23 + $0x10] sm:$0xff] }
 0x1a3   : > { %v1939_v51 = vpop.f32.mrb[86].mxu0 }
 0x1a4   : > { %v1986_v45 = vadd.f32 %v2501_v50, %v1969_v14  ;;  %v1970_v17 = vadd.f32 %v1939_v51, %v1801_v23  ;;  %v2954_v18 = vpop.f32.mrb[87].mxu0  ;;  %2984 = vmatmul.mubr.bf16.vlgmr.msra.gmra.mrb[80].mxu1 %v2004_v57  ;;  %v2166_v51 = vld [vmem:[%s3794_s23 + $0x18] sm:$0xff] }
 0x1a5   : > { %2987 = vmatprep.mubr.msk.bf16.mxu1 %vm3127_vm0, %v3126_v1 }
 0x1a6   : > { %v1987_v5 = vadd.f32 %v2501_v50, %v1970_v17  ;;  %v1996_v15 = vmax.f32 %v1986_v45, 0.0 }
 0x1a8   : > { %v1997_v19 = vmax.f32 %v1987_v5, 0.0 }
 0x1a9   : > { %v1944_v11 = vpop.f32.mrb[88].mxu0 }
 0x1aa   : > { %v1971_v6 = vadd.f32 %v1944_v11, %v1802_v33  ;;  %v2957_v7 = vpop.f32.mrb[89].mxu0  ;;  %v2005_v13 = vpack.c.bf16 %v1997_v19, %v1996_v15 }
 0x1ab   : > { %v1947_v28 = vpop.f32.mrb[90].mxu0  ;;  %v2167_v7 = vld [vmem:[%s3794_s23 + $0x20] sm:$0xff] }
 0x1ac   : > { %v1988_v12 = vadd.f32 %v2501_v50, %v1971_v6  ;;  %v1972_v10 = vadd.f32 %v1947_v28, %v1803_v35  ;;  %v2958_v20 = vpop.f32.mrb[91].mxu0  ;;  %2988 = vmatmul.mubr.bf16.gmra.mrb[84].mxu1 %v2005_v13 }
 0x1ad   : > { %2991 = vmatprep.mubr.msk.bf16.mxu1 %vm3127_vm0, %v3126_v1  ;;  %v2168_v20 = vld [vmem:[%s3794_s23 + $0x28] sm:$0xff] }
 0x1ae   : > { %v1989_v23 = vadd.f32 %v2501_v50, %v1972_v10  ;;  %v1998_v29 = vmax.f32 %v1988_v12, 0.0 }
 0x1b0   : > { %v1999_v30 = vmax.f32 %v1989_v23, 0.0 }
 0x1b1   : > { %v1952_v31 = vpop.f32.mrb[92].mxu0 }
 0x1b2   : > { %v1973_v27 = vadd.f32 %v1952_v31, %v1804_v46  ;;  %v2961_v8 = vpop.f32.mrb[93].mxu0  ;;  %v2006_v22 = vpack.c.bf16 %v1999_v30, %v1998_v29 }
 0x1b3   : > { %v1955_v25 = vpop.f32.mrb[94].mxu0 }
 0x1b4   : > { %v1990_v40 = vadd.f32 %v2501_v50, %v1973_v27  ;;  %v1974_v33 = vadd.f32 %v1955_v25, %v1805_v49  ;;  %v2962_v24 = vpop.f32.mrb[95].mxu0  ;;  %2992 = vmatmul.mubr.bf16.gmra.mrb[88].mxu1 %v2006_v22 }
 0x1b5   : > { %2995 = vmatprep.mubr.msk.bf16.mxu1 %vm3127_vm0, %v3126_v1 }
 0x1b6   : > { %v1991_v35 = vadd.f32 %v2501_v50, %v1974_v33  ;;  %v2000_v26 = vmax.f32 %v1990_v40, 0.0  ;;  %v2169_v40 = vld [vmem:[%s3794_s23 + $0x30] sm:$0xff] }
 0x1b8   : > { %v2001_v41 = vmax.f32 %v1991_v35, 0.0 }
 0x1b9   : > { %v1960_v42 = vpop.f32.mrb[96].mxu0 }
 0x1ba   : > { %v1975_v43 = vadd.f32 %v1960_v42, %v1806_v58  ;;  %v2965_v48 = vpop.f32.mrb[97].mxu0  ;;  %v2007_v21 = vpack.c.bf16 %v2001_v41, %v2000_v26  ;;  %v2170_v41 = vld [vmem:[%s3794_s23 + $0x38] sm:$0xff] }
 0x1bb   : > { %v1963_v34 = vpop.f32.mrb[98].mxu0 }
 0x1bc   : > { %v1992_v46 = vadd.f32 %v2501_v50, %v1975_v43  ;;  %v1976_v38 = vadd.f32 %v1963_v34, %v1807_v61  ;;  %v2966_v54 = vpop.f32.mrb[99].mxu0  ;;  %2996 = vmatmul.mubr.bf16.gmra.mrb[92].mxu1 %v2007_v21 }
 0x1bd   : > { %2999 = vmatprep.mubr.msk.bf16.mxu1 %vm3127_vm0, %v3126_v1 }
 0x1be   : > { %v1993_v49 = vadd.f32 %v2501_v50, %v1976_v38  ;;  %v2002_v37 = vmax.f32 %v1992_v46, 0.0  ;;  %v2164_v50 = vld [vmem:[%s3794_s23 + $0x8] sm:$0xff] }
 0x1c0   : > { %v2003_v39 = vmax.f32 %v1993_v49, 0.0  ;;  %v2171_v49 = vld [vmem:[%s3794_s23 + $0x40] sm:$0xff] }
 0x1c2   : > { %v2008_v55 = vpack.c.bf16 %v2003_v39, %v2002_v37 }
 0x1c4   : > { %3000 = vmatmul.mubr.bf16.gmra.mrb[96].mxu1 %v2008_v55 }
 0x277   : > { %v2114_v53 = vpop.f32.mrb[80].mxu1 }
 0x278   : > { %v2115_v1 = vadd.f32 %v3789_v56, %v2114_v53  ;;  %v2985_v58 = vpop.f32.mrb[81].mxu1 }
 0x279   : > { %v2117_v32 = vpop.f32.mrb[82].mxu1 }
 0x27a   : > { %v2153_v47 = vmax.f32 %v2115_v1, 0.0  ;;  %v2118_v61 = vadd.f32 %v3789_v56, %v2117_v32  ;;  %v2986_v63 = vpop.f32.mrb[83].mxu1  ;;  %v2172_v1 = vld [vmem:[%s3794_s23 + $0x48] sm:$0xff] }
 0x27c   : > { %v2173_v0 = vadd.f32 %v2163_v44, %v2153_v47  ;;  %v2154_v52 = vmax.f32 %v2118_v61, 0.0 }
 0x27e   : > { %v2183_v36 = vmax.f32 %v2173_v0, 0.0  ;;  %v2174_v2 = vadd.f32 %v2164_v50, %v2154_v52 }
 0x27f   : > { %v2122_v59 = vpop.f32.mrb[84].mxu1 }
 0x280   : > { %2193 = vst [vmem:[%s3803_s25] sm:$0xff] %v2183_v36  ;;  %v2184_v3 = vmax.f32 %v2174_v2, 0.0  ;;  %v2123_v4 = vadd.f32 %v3789_v56, %v2122_v59  ;;  %v2989_v9 = vpop.f32.mrb[85].mxu1 }
 0x281   : > { %v2125_v62 = vpop.f32.mrb[86].mxu1 }
 0x282   : > { %2194 = vst [vmem:[%s3803_s25 + $0x8] sm:$0xff] %v2184_v3  ;;  %v2155_v57 = vmax.f32 %v2123_v4, 0.0  ;;  %v2126_v14 = vadd.f32 %v3789_v56, %v2125_v62  ;;  %v2990_v16 = vpop.f32.mrb[87].mxu1 }
 0x284   : > { %v2175_v45 = vadd.f32 %v2165_v60, %v2155_v57  ;;  %v2156_v17 = vmax.f32 %v2126_v14, 0.0 }
 0x286   : > { %v2185_v18 = vmax.f32 %v2175_v45, 0.0  ;;  %v2176_v5 = vadd.f32 %v2166_v51, %v2156_v17 }
 0x287   : > { %v2130_v15 = vpop.f32.mrb[88].mxu1 }
 0x288   : > { %2195 = vst [vmem:[%s3803_s25 + $0x10] sm:$0xff] %v2185_v18  ;;  %v2186_v19 = vmax.f32 %v2176_v5, 0.0  ;;  %v2131_v11 = vadd.f32 %v3789_v56, %v2130_v15  ;;  %v2993_v6 = vpop.f32.mrb[89].mxu1 }
 0x289   : > { %v2133_v13 = vpop.f32.mrb[90].mxu1 }
 0x28a   : > { %2196 = vst [vmem:[%s3803_s25 + $0x18] sm:$0xff] %v2186_v19  ;;  %v2157_v28 = vmax.f32 %v2131_v11, 0.0  ;;  %v2134_v12 = vadd.f32 %v3789_v56, %v2133_v13  ;;  %v2994_v10 = vpop.f32.mrb[91].mxu1 }
 0x28c   : > { %v2177_v23 = vadd.f32 %v2167_v7, %v2157_v28  ;;  %v2158_v29 = vmax.f32 %v2134_v12, 0.0 }
 0x28e   : > { %v2187_v30 = vmax.f32 %v2177_v23, 0.0  ;;  %v2178_v31 = vadd.f32 %v2168_v20, %v2158_v29 }
 0x28f   : > { %v2138_v27 = vpop.f32.mrb[92].mxu1 }
 0x290   : > { %2197 = vst [vmem:[%s3803_s25 + $0x20] sm:$0xff] %v2187_v30  ;;  %v2188_v8 = vmax.f32 %v2178_v31, 0.0  ;;  %v2139_v22 = vadd.f32 %v3789_v56, %v2138_v27  ;;  %v2997_v25 = vpop.f32.mrb[93].mxu1 }
 0x291   : > { %v2141_v33 = vpop.f32.mrb[94].mxu1 }
 0x292   : > { %2198 = vst [vmem:[%s3803_s25 + $0x28] sm:$0xff] %v2188_v8  ;;  %v2159_v24 = vmax.f32 %v2139_v22, 0.0  ;;  %v2142_v35 = vadd.f32 %v3789_v56, %v2141_v33  ;;  %v2998_v26 = vpop.f32.mrb[95].mxu1 }
 0x294   : > { %v2179_v42 = vadd.f32 %v2169_v40, %v2159_v24  ;;  %v2160_v43 = vmax.f32 %v2142_v35, 0.0 }
 0x296   : > { %v2189_v48 = vmax.f32 %v2179_v42, 0.0  ;;  %v2180_v21 = vadd.f32 %v2170_v41, %v2160_v43 }
 0x297   : > { %v2146_v34 = vpop.f32.mrb[96].mxu1 }
 0x298   : > { %2199 = vst [vmem:[%s3803_s25 + $0x30] sm:$0xff] %v2189_v48  ;;  %v2190_v46 = vmax.f32 %v2180_v21, 0.0  ;;  %v2147_v38 = vadd.f32 %v3789_v56, %v2146_v34  ;;  %v3001_v54 = vpop.f32.mrb[97].mxu1 }
 0x299   : > { %v2149_v37 = vpop.f32.mrb[98].mxu1 }
 0x29a   : > { %2200 = vst [vmem:[%s3803_s25 + $0x38] sm:$0xff] %v2190_v46  ;;  %v2161_v39 = vmax.f32 %v2147_v38, 0.0  ;;  %v2150_v55 = vadd.f32 %v3789_v56, %v2149_v37  ;;  %v3002_v53 = vpop.f32.mrb[99].mxu1 }
 0x29c   : > { %v2181_v58 = vadd.f32 %v2171_v49, %v2161_v39  ;;  %v2162_v44 = vmax.f32 %v2150_v55, 0.0 }
 0x29e   : > { %v2191_v32 = vmax.f32 %v2181_v58, 0.0  ;;  %v2182_v47 = vadd.f32 %v2172_v1, %v2162_v44 }
 0x2a0   : > { %2201 = vst [vmem:[%s3803_s25 + $0x40] sm:$0xff] %v2191_v32  ;;  %v2192_v61 = vmax.f32 %v2182_v47, 0.0 }
 0x2a2   : > { %2202 = vst [vmem:[%s3803_s25 + $0x48] sm:$0xff] %v2192_v61 }
 0x2a3 PF: > { %s16_s21 = sadd.s32 1, %s3124_s21  }
 0x2a4   : > { %p13_p4 = scmp.ge.s32.totalorder %s16_s21, 4  }
 0x2a6   :  { %15 = sbr.rel (!%p13_p4) target bundleno = 1 (0x1), region = 85 }

</bundles_post_ra>
